<compile_context>
chip_gen: v7x
topology: tpu7x:2x2x1
jax: 0.10.0
libtpu: 0.0.40
codegen_flags: <defaults>
</compile_context>

<pallas_src>
import functools

import jax
import jax.numpy as jnp
from jax import lax
from jax.experimental import pallas as pl
from jax.experimental.pallas import tpu as pltpu

NEG_SLOPE = 0.01  # F.leaky_relu default


def _round_up(v, m):
    return (v + m - 1) // m * m


def resblock_kernel(xa_ref, xb_ref, w1_ref, b1_ref, w2_ref, b2_ref, o_ref,
                    acc_ref, *, kernel_size, dilations, t_tile, halo, seq_len):
    t = pl.program_id(1)
    C = xa_ref.shape[-1]
    t_win = t_tile + 2 * halo
    K = kernel_size
    kc = K // 2                       # center tap (odd K)

    # Haloed window: original rows [t*tt - halo, (t+1)*tt + halo), assembled
    # from two blocks of the single halo-padded input array.  Residual stream
    # stays f32 end to end (only matmul operands are bf16).
    h = jnp.concatenate([xa_ref[0], xb_ref[0]], axis=0).astype(jnp.float32)

    # Validity mask over absolute sequence positions, computed once per tile.
    # Zeroing conv outputs outside [0, seq_len) reproduces nn.Conv1d's zero
    # padding at the true sequence boundaries.
    row = lax.broadcasted_iota(jnp.int32, (t_win, 1), 0) + (t * t_tile - halo)
    valid = jnp.logical_and(row >= 0, row < seq_len)

    def lrelu_conv(a_f32, w_ref, b_ref, i, d):
        # leaky_relu + 'same' dilated conv.  K per-tap matmuls on the full
        # window; tap shifts land as static-slice accumulator updates, so the
        # per-conv zero-pad / lane-concat copies of the previous version are
        # gone.  (For C >= 128 a single K*C-wide im2col contraction would use
        # the MXU better; at C = 32 the MXU has >10x headroom either way.)
        pad = (K - 1) * d // 2
        a16 = jnp.maximum(a_f32, NEG_SLOPE * a_f32).astype(jnp.bfloat16)
        acc_ref[...] = (jnp.dot(a16, w_ref[i, kc],
                                preferred_element_type=jnp.float32)
                        + b_ref[i])
        for k in range(K):
            if k == kc:
                continue
            delta = k * d - pad
            p = jnp.dot(a16, w_ref[i, k], preferred_element_type=jnp.float32)
            if delta > 0:
                acc_ref[:t_win - delta, :] += p[delta:, :]
            elif delta < 0:
                acc_ref[-delta:, :] += p[:t_win + delta, :]
            else:
                acc_ref[...] += p
        return jnp.where(valid, acc_ref[...], 0.0)

    for i, (d1, d2) in enumerate(dilations):     # static unroll: 3 sub-blocks
        out = lrelu_conv(h, w1_ref, b1_ref, i, d1)
        out = lrelu_conv(out, w2_ref, b2_ref, i, d2)
        h = h + out                              # residual add in f32

    o_ref[0] = h[halo:halo + t_tile, :].astype(o_ref.dtype)


def resblock_v1_ntc(x_ntc, w1_kcc, b1_r, w2_kcc, b2_r, *, kernel_size,
                    dilations, t_tile=None):
    """Core pallas call.  x_ntc: (N, T, C).  Weights in per-tap layout
    (NB, K, C_in, C_out) bf16; biases (NB, 1, C) f32.  Returns (N, T, C)."""
    N, T, C = x_ntc.shape
    NB = w1_kcc.shape[0]
    K = kernel_size

    # Cumulative receptive-field halo of the chained convs, rounded to the
    # 8-sublane granule.
    halo = _round_up(
        sum((K - 1) * d // 2 for pair in dilations for d in pair), 8)
    gran = 2 * halo        # tile granule: keeps the trailing-halo block index
                           # map integral and all blocks sublane-aligned.

    # Time tile: as large as a ~4 MiB f32-window budget allows (amortizes the
    # ~0.35 us per-grid-step overhead and shrinks the 2*halo redundant-compute
    # fraction to <1%), while double-buffered blocks + compiler temporaries
    # stay well inside VMEM on every generation (v5e 16 MiB scoped default,
    # v7x 64 MiB physical).
    if t_tile is None:
        t_tile = max(gran, min(8192, (4 * 1024 * 1024) // (4 * C)))
    tt = _round_up(max(int(t_tile), gran), gran)
    tt = max(gran, min(tt, _round_up(T, gran)))
    n_t = pl.cdiv(T, tt)
    t_round = n_t * tt
    r2 = tt // gran

    # ONE halo-padded copy of the input; both the shifted main window and the
    # trailing halo are blocks of this same array (no lhalo/rhalo side arrays,
    # no extra wrapper slice/concat passes, no output-side pad+slice).
    xp = jnp.pad(x_ntc, ((0, 0), (halo, t_round - T + halo), (0, 0)))

    kern = functools.partial(resblock_kernel, kernel_size=K,
                             dilations=dilations, t_tile=tt, halo=halo,
                             seq_len=T)

    out = pl.pallas_call(
        kern,
        out_shape=jax.ShapeDtypeStruct((N, T, C), x_ntc.dtype),
        grid_spec=pltpu.PrefetchScalarGridSpec(
            num_scalar_prefetch=0,
            grid=(N, n_t),
            in_specs=[
                # window rows [t*tt - halo, (t+1)*tt - halo) of the original x
                pl.BlockSpec((1, tt, C), lambda n, t: (n, t, 0)),
                # trailing rows [(t+1)*tt - halo, (t+1)*tt + halo)
                pl.BlockSpec((1, gran, C), lambda n, t: (n, (t + 1) * r2, 0)),
                # Weights/biases: constant index map -> fetched once, resident.
                pl.BlockSpec((NB, K, C, C), lambda n, t: (0, 0, 0, 0)),
                pl.BlockSpec((NB, 1, C), lambda n, t: (0, 0, 0)),
                pl.BlockSpec((NB, K, C, C), lambda n, t: (0, 0, 0, 0)),
                pl.BlockSpec((NB, 1, C), lambda n, t: (0, 0, 0)),
            ],
            out_specs=pl.BlockSpec((1, tt, C), lambda n, t: (n, t, 0)),
            scratch_shapes=[pltpu.VMEM((tt + 2 * halo, C), jnp.float32)],
        ),
        compiler_params=pltpu.CompilerParams(
            dimension_semantics=("parallel", "parallel"),
            vmem_limit_bytes=48 * 1024 * 1024),
    )(xp, xp, w1_kcc, b1_r, w2_kcc, b2_r)
    return out


def resblock_v1_pallas(x_nct, w1_oik, b1, w2_oik, b2, kernel_size, dilations,
                       t_tile=None):
    """x_nct: (N, C, T); conv weights in PyTorch layout (NB, C_out, C_in, K)."""
    N, C, T = x_nct.shape
    NB = w1_oik.shape[0]
    assert kernel_size % 2 == 1, "'same' padding formula assumes odd kernel_size"

    # Layout change done once at the module boundary (a model kept in NTC
    # layout should call resblock_v1_ntc directly and skip both transposes).
    x_ntc = jnp.transpose(x_nct, (0, 2, 1))

    # Per-tap weight layout (NB, K, C_in, C_out); bf16 operands (accumulation
    # stays f32 inside the kernel's dots).  Const-folds under jit when the
    # weights are compile-time constants.
    w1_kcc = jnp.transpose(w1_oik, (0, 3, 2, 1)).astype(jnp.bfloat16)
    w2_kcc = jnp.transpose(w2_oik, (0, 3, 2, 1)).astype(jnp.bfloat16)
    b1_r = b1.reshape(NB, 1, C).astype(jnp.float32)
    b2_r = b2.reshape(NB, 1, C).astype(jnp.float32)

    out_ntc = resblock_v1_ntc(x_ntc, w1_kcc, b1_r, w2_kcc, b2_r,
                              kernel_size=kernel_size, dilations=dilations,
                              t_tile=t_tile)
    return jnp.transpose(out_ntc, (0, 2, 1))


# ----------------------------- references ---------------------------------

def resblock_v1_ref_f32(x, w1_oik, b1, w2_oik, b2, kernel_size, dilations):
    """Full-f32 reference mirroring the PyTorch forward exactly."""
    def conv(h, w, b, d):
        pad = (kernel_size - 1) * d // 2
        y = lax.conv_general_dilated(
            h, w, window_strides=(1,), padding=[(pad, pad)],
            rhs_dilation=(d,), dimension_numbers=('NCH', 'OIH', 'NCH'),
            precision=lax.Precision.HIGHEST)
        return y + b[None, :, None]

    for i, (d1, d2) in enumerate(dilations):
        out = conv(jax.nn.leaky_relu(x, NEG_SLOPE), w1_oik[i], b1[i], d1)
        out = conv(jax.nn.leaky_relu(out, NEG_SLOPE), w2_oik[i], b2[i], d2)
        x = x + out
    return x


def resblock_v1_ref_bf16(x, w1_oik, b1, w2_oik, b2, kernel_size, dilations):
    """Precision-matched reference: the same per-tap bf16-operand /
    f32-accumulation structure as the kernel, untiled (no halo / mask logic)."""
    x_ntc = jnp.transpose(x, (0, 2, 1))
    N, T, C = x_ntc.shape
    K = kernel_size
    kc = K // 2

    def lrelu_conv(a, w_oik_i, b, d):                 # a: (N, T, C) f32
        pad = (K - 1) * d // 2
        a16 = jnp.maximum(a, NEG_SLOPE * a).astype(jnp.bfloat16)
        w16 = jnp.transpose(w_oik_i, (2, 1, 0)).astype(jnp.bfloat16)  # (K,Ci,Co)
        y = (jnp.einsum('ntc,cd->ntd', a16, w16[kc],
                        preferred_element_type=jnp.float32)
             + b[None, None, :])
        for k in range(K):
            if k == kc:
                continue
            delta = k * d - pad
            p = jnp.einsum('ntc,cd->ntd', a16, w16[k],
                           preferred_element_type=jnp.float32)
            if delta > 0:
                y = y.at[:, :T - delta, :].add(p[:, delta:, :])
            else:
                y = y.at[:, -delta:, :].add(p[:, :T + delta, :])
        return y

    h = x_ntc.astype(jnp.float32)
    for i, (d1, d2) in enumerate(dilations):
        out = lrelu_conv(h, w1_oik[i], b1[i], d1)
        out = lrelu_conv(out, w2_oik[i], b2[i], d2)
        h = h + out
    return jnp.transpose(h, (0, 2, 1))


if __name__ == "__main__":
    # Module config (ResBlockV1 defaults).
    channels = 32
    kernel_size = 3
    dilations = ((1, 1), (3, 1), (5, 1))
    num_blocks = len(dilations)

    # Small example shapes; T deliberately not a multiple of the time tile so
    # the halo, boundary-masking and ragged-final-tile paths are exercised.
    N, C, T = 2, channels, 200
    T_TILE = 64

    key = jax.random.PRNGKey(0)
    kx, kw1, kb1, kw2, kb2 = jax.random.split(key, 5)

    x = jax.random.normal(kx, (N, C, T), jnp.float32)
    # PyTorch conv layout: (C_out, C_in, K).
    w1 = 0.1 * jax.random.normal(kw1, (num_blocks, C, C, kernel_size), jnp.float32)
    b1 = 0.1 * jax.random.normal(kb1, (num_blocks, C), jnp.float32)
    w2 = 0.1 * jax.random.normal(kw2, (num_blocks, C, C, kernel_size), jnp.float32)
    b2 = 0.1 * jax.random.normal(kb2, (num_blocks, C), jnp.float32)
    # TODO(synk): weight_norm/spectral_norm are __init__-time reparameterizations
    # of the conv weights; the forward math is a plain conv, so plain
    # deterministic weights are used here.

    out = resblock_v1_pallas(x, w1, b1, w2, b2, kernel_size, dilations,
                             t_tile=T_TILE)
    out = jax.block_until_ready(out)
    assert out.shape == (N, C, T)

    # Structural check vs a precision-matched, untiled pure-JAX reference.
    # bf16 requantization of intermediates makes ~1-ULP (~1e-3) element-wise
    # divergence between independently compiled bf16 pipelines unavoidable, so
    # the tolerance sits above that chaos floor while still catching any
    # tiling / halo / boundary-mask bug (those show up at O(0.1-10)).
    ref16 = jax.block_until_ready(
        resblock_v1_ref_bf16(x, w1, b1, w2, b2, kernel_size, dilations))
    err16 = float(jnp.max(jnp.abs(out - ref16)))
    assert jnp.allclose(out, ref16, rtol=2e-2, atol=2e-2), err16

    # Sanity bound vs the full-f32 PyTorch-equivalent reference: bounds the
    # systematic error from bf16 matmul operands (f32 accumulation retained).
    ref32 = jax.block_until_ready(
        resblock_v1_ref_f32(x, w1, b1, w2, b2, kernel_size, dilations))
    err32 = float(jnp.max(jnp.abs(out - ref32)))
    assert jnp.allclose(out, ref32, rtol=1e-1, atol=1e-1), err32

    print("KERNEL_OK")
</pallas_src>

<mosaic_0001>
module attributes {stable_mosaic.version = 11 : i64} {
  func.func @resblock_kernel(%arg0: i32, %arg1: i32, %arg2: memref<1x64x32xf32, #tpu.memory_space<vmem>>, %arg3: memref<1x32x32xf32, #tpu.memory_space<vmem>>, %arg4: memref<3x3x32x32xbf16, #tpu.memory_space<vmem>>, %arg5: memref<3x1x32xf32, #tpu.memory_space<vmem>>, %arg6: memref<3x3x32x32xbf16, #tpu.memory_space<vmem>>, %arg7: memref<3x1x32xf32, #tpu.memory_space<vmem>>, %arg8: memref<1x64x32xf32, #tpu.memory_space<vmem>>, %arg9: memref<96x32xf32, #tpu.memory_space<vmem>>) attributes {dimension_semantics = [#tpu.dimension_semantics<parallel>, #tpu.dimension_semantics<parallel>], iteration_bounds = array<i64: 2, 4>, scalar_prefetch = 0 : i64, scratch_operands = 1 : i64, tpu.core_type = #tpu.core_type<tc>, window_params = [{transform_indices = @transform_0, window_bounds = array<i64: 1, 64, 32>}, {transform_indices = @transform_1, window_bounds = array<i64: 1, 32, 32>}, {pipeline_mode = #tpu.pipeline_mode<synchronous>, transform_indices = @transform_2, window_bounds = array<i64: 3, 3, 32, 32>}, {pipeline_mode = #tpu.pipeline_mode<synchronous>, transform_indices = @transform_3, window_bounds = array<i64: 3, 1, 32>}, {pipeline_mode = #tpu.pipeline_mode<synchronous>, transform_indices = @transform_4, window_bounds = array<i64: 3, 3, 32, 32>}, {pipeline_mode = #tpu.pipeline_mode<synchronous>, transform_indices = @transform_5, window_bounds = array<i64: 3, 1, 32>}, {transform_indices = @transform_6, window_bounds = array<i64: 1, 64, 32>}]} {
    %c0 = arith.constant 0 : index
    %c0_0 = arith.constant 0 : index
    %c0_1 = arith.constant 0 : index
    %0 = vector.load %arg2[%c0, %c0_0, %c0_1] : memref<1x64x32xf32, #tpu.memory_space<vmem>>, vector<1x64x32xf32>
    %1 = vector.shape_cast %0 : vector<1x64x32xf32> to vector<64x32xf32>
    %c0_2 = arith.constant 0 : index
    %c0_3 = arith.constant 0 : index
    %c0_4 = arith.constant 0 : index
    %2 = vector.load %arg3[%c0_2, %c0_3, %c0_4] : memref<1x32x32xf32, #tpu.memory_space<vmem>>, vector<1x32x32xf32>
    %3 = vector.shape_cast %2 : vector<1x32x32xf32> to vector<32x32xf32>
    %4 = tpu.concatenate %1, %3 in 0 : vector<64x32xf32>, vector<32x32xf32> -> vector<96x32xf32>
    %5 = tpu.iota {dimensions = array<i32: 0>} : vector<96x1xi32>
    %c64_i32 = arith.constant 64 : i32
    %6 = arith.muli %arg1, %c64_i32 : i32
    %c16_i32 = arith.constant 16 : i32
    %7 = arith.subi %6, %c16_i32 : i32
    %8 = vector.broadcast %7 : i32 to vector<96x1xi32>
    %9 = arith.addi %5, %8 : vector<96x1xi32>
    %c0_i32 = arith.constant 0 : i32
    %10 = vector.broadcast %c0_i32 : i32 to vector<96x1xi32>
    %11 = arith.cmpi sge, %9, %10 : vector<96x1xi32>
    %c200_i32 = arith.constant 200 : i32
    %12 = vector.broadcast %c200_i32 : i32 to vector<96x1xi32>
    %13 = arith.cmpi slt, %9, %12 : vector<96x1xi32>
    %14 = arith.andi %11, %13 : vector<96x1xi1>
    %cst = arith.constant 0.00999999977 : f32
    %15 = vector.broadcast %cst : f32 to vector<96x32xf32>
    %16 = arith.mulf %15, %4 : vector<96x32xf32>
    %17 = arith.maximumf %4, %16 : vector<96x32xf32>
    %18 = arith.truncf %17 : vector<96x32xf32> to vector<96x32xbf16>
    %c0_5 = arith.constant 0 : index
    %c1 = arith.constant 1 : index
    %c0_6 = arith.constant 0 : index
    %c0_7 = arith.constant 0 : index
    %19 = vector.load %arg4[%c0_5, %c1, %c0_6, %c0_7] : memref<3x3x32x32xbf16, #tpu.memory_space<vmem>>, vector<1x1x32x32xbf16>
    %20 = vector.shape_cast %19 : vector<1x1x32x32xbf16> to vector<32x32xbf16>
    %cst_8 = arith.constant dense<0.000000e+00> : vector<96x32xf32>
    %21 = tpu.matmul %18, %20, %cst_8 {dimension_numbers = #tpu.dot_dimension_numbers<[1], [0], [0], [1], [0, 0, 1, 1], [], []>} : vector<96x32xbf16>, vector<32x32xbf16>, vector<96x32xf32> -> vector<96x32xf32>
    %c0_9 = arith.constant 0 : index
    %c0_10 = arith.constant 0 : index
    %c0_11 = arith.constant 0 : index
    %22 = vector.load %arg5[%c0_9, %c0_10, %c0_11] : memref<3x1x32xf32, #tpu.memory_space<vmem>>, vector<1x1x32xf32>
    %23 = vector.shape_cast %22 : vector<1x1x32xf32> to vector<1x32xf32>
    %24 = vector.broadcast %23 : vector<1x32xf32> to vector<96x32xf32>
    %25 = arith.addf %21, %24 : vector<96x32xf32>
    %c0_12 = arith.constant 0 : index
    %c0_13 = arith.constant 0 : index
    %26 = vector.load %arg9[%c0_12, %c0_13] : memref<96x32xf32, #tpu.memory_space<vmem>>, vector<96x32xf32>
    tpu.vector_store %arg9[%c0_12, %c0_13], %25 {strides = array<i32>} : memref<96x32xf32, #tpu.memory_space<vmem>>, vector<96x32xf32>,
    %c0_14 = arith.constant 0 : index
    %c0_15 = arith.constant 0 : index
    %c0_16 = arith.constant 0 : index
    %c0_17 = arith.constant 0 : index
    %27 = vector.load %arg4[%c0_14, %c0_15, %c0_16, %c0_17] : memref<3x3x32x32xbf16, #tpu.memory_space<vmem>>, vector<1x1x32x32xbf16>
    %28 = vector.shape_cast %27 : vector<1x1x32x32xbf16> to vector<32x32xbf16>
    %cst_18 = arith.constant dense<0.000000e+00> : vector<96x32xf32>
    %29 = tpu.matmul %18, %28, %cst_18 {dimension_numbers = #tpu.dot_dimension_numbers<[1], [0], [0], [1], [0, 0, 1, 1], [], []>} : vector<96x32xbf16>, vector<32x32xbf16>, vector<96x32xf32> -> vector<96x32xf32>
    %c1_19 = arith.constant 1 : index
    %c0_20 = arith.constant 0 : index
    %30 = vector.load %arg9[%c1_19, %c0_20] : memref<96x32xf32, #tpu.memory_space<vmem>>, vector<95x32xf32>
    %31 = vector.extract_strided_slice %29 {offsets = [0, 0], sizes = [95, 32], strides = [1, 1]} : vector<96x32xf32> to vector<95x32xf32>
    %32 = arith.addf %30, %31 : vector<95x32xf32>
    %c1_21 = arith.constant 1 : index
    %c0_22 = arith.constant 0 : index
    %33 = vector.load %arg9[%c1_21, %c0_22] : memref<96x32xf32, #tpu.memory_space<vmem>>, vector<95x32xf32>
    tpu.vector_store %arg9[%c1_21, %c0_22], %32 {strides = array<i32>} : memref<96x32xf32, #tpu.memory_space<vmem>>, vector<95x32xf32>,
    %c0_23 = arith.constant 0 : index
    %c2 = arith.constant 2 : index
    %c0_24 = arith.constant 0 : index
    %c0_25 = arith.constant 0 : index
    %34 = vector.load %arg4[%c0_23, %c2, %c0_24, %c0_25] : memref<3x3x32x32xbf16, #tpu.memory_space<vmem>>, vector<1x1x32x32xbf16>
    %35 = vector.shape_cast %34 : vector<1x1x32x32xbf16> to vector<32x32xbf16>
    %cst_26 = arith.constant dense<0.000000e+00> : vector<96x32xf32>
    %36 = tpu.matmul %18, %35, %cst_26 {dimension_numbers = #tpu.dot_dimension_numbers<[1], [0], [0], [1], [0, 0, 1, 1], [], []>} : vector<96x32xbf16>, vector<32x32xbf16>, vector<96x32xf32> -> vector<96x32xf32>
    %c0_27 = arith.constant 0 : index
    %c0_28 = arith.constant 0 : index
    %37 = vector.load %arg9[%c0_27, %c0_28] : memref<96x32xf32, #tpu.memory_space<vmem>>, vector<95x32xf32>
    %38 = vector.extract_strided_slice %36 {offsets = [1, 0], sizes = [95, 32], strides = [1, 1]} : vector<96x32xf32> to vector<95x32xf32>
    %39 = arith.addf %37, %38 : vector<95x32xf32>
    %c0_29 = arith.constant 0 : index
    %c0_30 = arith.constant 0 : index
    %40 = vector.load %arg9[%c0_29, %c0_30] : memref<96x32xf32, #tpu.memory_space<vmem>>, vector<95x32xf32>
    tpu.vector_store %arg9[%c0_29, %c0_30], %39 {strides = array<i32>} : memref<96x32xf32, #tpu.memory_space<vmem>>, vector<95x32xf32>,
    %c0_31 = arith.constant 0 : index
    %c0_32 = arith.constant 0 : index
    %41 = vector.load %arg9[%c0_31, %c0_32] : memref<96x32xf32, #tpu.memory_space<vmem>>, vector<96x32xf32>
    %cst_33 = arith.constant 0.000000e+00 : f32
    %42 = vector.shape_cast %14 : vector<96x1xi1> to vector<96x1xi1>
    %43 = vector.broadcast %42 : vector<96x1xi1> to vector<96x32xi1>
    %44 = vector.broadcast %cst_33 : f32 to vector<96x32xf32>
    %45 = arith.select %43, %41, %44 : vector<96x32xi1>, vector<96x32xf32>
    %cst_34 = arith.constant 0.00999999977 : f32
    %46 = vector.broadcast %cst_34 : f32 to vector<96x32xf32>
    %47 = arith.mulf %46, %45 : vector<96x32xf32>
    %48 = arith.maximumf %45, %47 : vector<96x32xf32>
    %49 = arith.truncf %48 : vector<96x32xf32> to vector<96x32xbf16>
    %c0_35 = arith.constant 0 : index
    %c1_36 = arith.constant 1 : index
    %c0_37 = arith.constant 0 : index
    %c0_38 = arith.constant 0 : index
    %50 = vector.load %arg6[%c0_35, %c1_36, %c0_37, %c0_38] : memref<3x3x32x32xbf16, #tpu.memory_space<vmem>>, vector<1x1x32x32xbf16>
    %51 = vector.shape_cast %50 : vector<1x1x32x32xbf16> to vector<32x32xbf16>
    %cst_39 = arith.constant dense<0.000000e+00> : vector<96x32xf32>
    %52 = tpu.matmul %49, %51, %cst_39 {dimension_numbers = #tpu.dot_dimension_numbers<[1], [0], [0], [1], [0, 0, 1, 1], [], []>} : vector<96x32xbf16>, vector<32x32xbf16>, vector<96x32xf32> -> vector<96x32xf32>
    %c0_40 = arith.constant 0 : index
    %c0_41 = arith.constant 0 : index
    %c0_42 = arith.constant 0 : index
    %53 = vector.load %arg7[%c0_40, %c0_41, %c0_42] : memref<3x1x32xf32, #tpu.memory_space<vmem>>, vector<1x1x32xf32>
    %54 = vector.shape_cast %53 : vector<1x1x32xf32> to vector<1x32xf32>
    %55 = vector.broadcast %54 : vector<1x32xf32> to vector<96x32xf32>
    %56 = arith.addf %52, %55 : vector<96x32xf32>
    %c0_43 = arith.constant 0 : index
    %c0_44 = arith.constant 0 : index
    %57 = vector.load %arg9[%c0_43, %c0_44] : memref<96x32xf32, #tpu.memory_space<vmem>>, vector<96x32xf32>
    tpu.vector_store %arg9[%c0_43, %c0_44], %56 {strides = array<i32>} : memref<96x32xf32, #tpu.memory_space<vmem>>, vector<96x32xf32>,
    %c0_45 = arith.constant 0 : index
    %c0_46 = arith.constant 0 : index
    %c0_47 = arith.constant 0 : index
    %c0_48 = arith.constant 0 : index
    %58 = vector.load %arg6[%c0_45, %c0_46, %c0_47, %c0_48] : memref<3x3x32x32xbf16, #tpu.memory_space<vmem>>, vector<1x1x32x32xbf16>
    %59 = vector.shape_cast %58 : vector<1x1x32x32xbf16> to vector<32x32xbf16>
    %cst_49 = arith.constant dense<0.000000e+00> : vector<96x32xf32>
    %60 = tpu.matmul %49, %59, %cst_49 {dimension_numbers = #tpu.dot_dimension_numbers<[1], [0], [0], [1], [0, 0, 1, 1], [], []>} : vector<96x32xbf16>, vector<32x32xbf16>, vector<96x32xf32> -> vector<96x32xf32>
    %c1_50 = arith.constant 1 : index
    %c0_51 = arith.constant 0 : index
    %61 = vector.load %arg9[%c1_50, %c0_51] : memref<96x32xf32, #tpu.memory_space<vmem>>, vector<95x32xf32>
    %62 = vector.extract_strided_slice %60 {offsets = [0, 0], sizes = [95, 32], strides = [1, 1]} : vector<96x32xf32> to vector<95x32xf32>
    %63 = arith.addf %61, %62 : vector<95x32xf32>
    %c1_52 = arith.constant 1 : index
    %c0_53 = arith.constant 0 : index
    %64 = vector.load %arg9[%c1_52, %c0_53] : memref<96x32xf32, #tpu.memory_space<vmem>>, vector<95x32xf32>
    tpu.vector_store %arg9[%c1_52, %c0_53], %63 {strides = array<i32>} : memref<96x32xf32, #tpu.memory_space<vmem>>, vector<95x32xf32>,
    %c0_54 = arith.constant 0 : index
    %c2_55 = arith.constant 2 : index
    %c0_56 = arith.constant 0 : index
    %c0_57 = arith.constant 0 : index
    %65 = vector.load %arg6[%c0_54, %c2_55, %c0_56, %c0_57] : memref<3x3x32x32xbf16, #tpu.memory_space<vmem>>, vector<1x1x32x32xbf16>
    %66 = vector.shape_cast %65 : vector<1x1x32x32xbf16> to vector<32x32xbf16>
    %cst_58 = arith.constant dense<0.000000e+00> : vector<96x32xf32>
    %67 = tpu.matmul %49, %66, %cst_58 {dimension_numbers = #tpu.dot_dimension_numbers<[1], [0], [0], [1], [0, 0, 1, 1], [], []>} : vector<96x32xbf16>, vector<32x32xbf16>, vector<96x32xf32> -> vector<96x32xf32>
    %c0_59 = arith.constant 0 : index
    %c0_60 = arith.constant 0 : index
    %68 = vector.load %arg9[%c0_59, %c0_60] : memref<96x32xf32, #tpu.memory_space<vmem>>, vector<95x32xf32>
    %69 = vector.extract_strided_slice %67 {offsets = [1, 0], sizes = [95, 32], strides = [1, 1]} : vector<96x32xf32> to vector<95x32xf32>
    %70 = arith.addf %68, %69 : vector<95x32xf32>
    %c0_61 = arith.constant 0 : index
    %c0_62 = arith.constant 0 : index
    %71 = vector.load %arg9[%c0_61, %c0_62] : memref<96x32xf32, #tpu.memory_space<vmem>>, vector<95x32xf32>
    tpu.vector_store %arg9[%c0_61, %c0_62], %70 {strides = array<i32>} : memref<96x32xf32, #tpu.memory_space<vmem>>, vector<95x32xf32>,
    %c0_63 = arith.constant 0 : index
    %c0_64 = arith.constant 0 : index
    %72 = vector.load %arg9[%c0_63, %c0_64] : memref<96x32xf32, #tpu.memory_space<vmem>>, vector<96x32xf32>
    %cst_65 = arith.constant 0.000000e+00 : f32
    %73 = vector.shape_cast %14 : vector<96x1xi1> to vector<96x1xi1>
    %74 = vector.broadcast %73 : vector<96x1xi1> to vector<96x32xi1>
    %75 = vector.broadcast %cst_65 : f32 to vector<96x32xf32>
    %76 = arith.select %74, %72, %75 : vector<96x32xi1>, vector<96x32xf32>
    %77 = arith.addf %4, %76 : vector<96x32xf32>
    %cst_66 = arith.constant 0.00999999977 : f32
    %78 = vector.broadcast %cst_66 : f32 to vector<96x32xf32>
    %79 = arith.mulf %78, %77 : vector<96x32xf32>
    %80 = arith.maximumf %77, %79 : vector<96x32xf32>
    %81 = arith.truncf %80 : vector<96x32xf32> to vector<96x32xbf16>
    %c1_67 = arith.constant 1 : index
    %c1_68 = arith.constant 1 : index
    %c0_69 = arith.constant 0 : index
    %c0_70 = arith.constant 0 : index
    %82 = vector.load %arg4[%c1_67, %c1_68, %c0_69, %c0_70] : memref<3x3x32x32xbf16, #tpu.memory_space<vmem>>, vector<1x1x32x32xbf16>
    %83 = vector.shape_cast %82 : vector<1x1x32x32xbf16> to vector<32x32xbf16>
    %cst_71 = arith.constant dense<0.000000e+00> : vector<96x32xf32>
    %84 = tpu.matmul %81, %83, %cst_71 {dimension_numbers = #tpu.dot_dimension_numbers<[1], [0], [0], [1], [0, 0, 1, 1], [], []>} : vector<96x32xbf16>, vector<32x32xbf16>, vector<96x32xf32> -> vector<96x32xf32>
    %c1_72 = arith.constant 1 : index
    %c0_73 = arith.constant 0 : index
    %c0_74 = arith.constant 0 : index
    %85 = vector.load %arg5[%c1_72, %c0_73, %c0_74] : memref<3x1x32xf32, #tpu.memory_space<vmem>>, vector<1x1x32xf32>
    %86 = vector.shape_cast %85 : vector<1x1x32xf32> to vector<1x32xf32>
    %87 = vector.broadcast %86 : vector<1x32xf32> to vector<96x32xf32>
    %88 = arith.addf %84, %87 : vector<96x32xf32>
    %c0_75 = arith.constant 0 : index
    %c0_76 = arith.constant 0 : index
    %89 = vector.load %arg9[%c0_75, %c0_76] : memref<96x32xf32, #tpu.memory_space<vmem>>, vector<96x32xf32>
    tpu.vector_store %arg9[%c0_75, %c0_76], %88 {strides = array<i32>} : memref<96x32xf32, #tpu.memory_space<vmem>>, vector<96x32xf32>,
    %c1_77 = arith.constant 1 : index
    %c0_78 = arith.constant 0 : index
    %c0_79 = arith.constant 0 : index
    %c0_80 = arith.constant 0 : index
    %90 = vector.load %arg4[%c1_77, %c0_78, %c0_79, %c0_80] : memref<3x3x32x32xbf16, #tpu.memory_space<vmem>>, vector<1x1x32x32xbf16>
    %91 = vector.shape_cast %90 : vector<1x1x32x32xbf16> to vector<32x32xbf16>
    %cst_81 = arith.constant dense<0.000000e+00> : vector<96x32xf32>
    %92 = tpu.matmul %81, %91, %cst_81 {dimension_numbers = #tpu.dot_dimension_numbers<[1], [0], [0], [1], [0, 0, 1, 1], [], []>} : vector<96x32xbf16>, vector<32x32xbf16>, vector<96x32xf32> -> vector<96x32xf32>
    %c3 = arith.constant 3 : index
    %c0_82 = arith.constant 0 : index
    %93 = vector.load %arg9[%c3, %c0_82] : memref<96x32xf32, #tpu.memory_space<vmem>>, vector<93x32xf32>
    %94 = vector.extract_strided_slice %92 {offsets = [0, 0], sizes = [93, 32], strides = [1, 1]} : vector<96x32xf32> to vector<93x32xf32>
    %95 = arith.addf %93, %94 : vector<93x32xf32>
    %c3_83 = arith.constant 3 : index
    %c0_84 = arith.constant 0 : index
    %96 = vector.load %arg9[%c3_83, %c0_84] : memref<96x32xf32, #tpu.memory_space<vmem>>, vector<93x32xf32>
    tpu.vector_store %arg9[%c3_83, %c0_84], %95 {strides = array<i32>} : memref<96x32xf32, #tpu.memory_space<vmem>>, vector<93x32xf32>,
    %c1_85 = arith.constant 1 : index
    %c2_86 = arith.constant 2 : index
    %c0_87 = arith.constant 0 : index
    %c0_88 = arith.constant 0 : index
    %97 = vector.load %arg4[%c1_85, %c2_86, %c0_87, %c0_88] : memref<3x3x32x32xbf16, #tpu.memory_space<vmem>>, vector<1x1x32x32xbf16>
    %98 = vector.shape_cast %97 : vector<1x1x32x32xbf16> to vector<32x32xbf16>
    %cst_89 = arith.constant dense<0.000000e+00> : vector<96x32xf32>
    %99 = tpu.matmul %81, %98, %cst_89 {dimension_numbers = #tpu.dot_dimension_numbers<[1], [0], [0], [1], [0, 0, 1, 1], [], []>} : vector<96x32xbf16>, vector<32x32xbf16>, vector<96x32xf32> -> vector<96x32xf32>
    %c0_90 = arith.constant 0 : index
    %c0_91 = arith.constant 0 : index
    %100 = vector.load %arg9[%c0_90, %c0_91] : memref<96x32xf32, #tpu.memory_space<vmem>>, vector<93x32xf32>
    %101 = vector.extract_strided_slice %99 {offsets = [3, 0], sizes = [93, 32], strides = [1, 1]} : vector<96x32xf32> to vector<93x32xf32>
    %102 = arith.addf %100, %101 : vector<93x32xf32>
    %c0_92 = arith.constant 0 : index
    %c0_93 = arith.constant 0 : index
    %103 = vector.load %arg9[%c0_92, %c0_93] : memref<96x32xf32, #tpu.memory_space<vmem>>, vector<93x32xf32>
    tpu.vector_store %arg9[%c0_92, %c0_93], %102 {strides = array<i32>} : memref<96x32xf32, #tpu.memory_space<vmem>>, vector<93x32xf32>,
    %c0_94 = arith.constant 0 : index
    %c0_95 = arith.constant 0 : index
    %104 = vector.load %arg9[%c0_94, %c0_95] : memref<96x32xf32, #tpu.memory_space<vmem>>, vector<96x32xf32>
    %cst_96 = arith.constant 0.000000e+00 : f32
    %105 = vector.shape_cast %14 : vector<96x1xi1> to vector<96x1xi1>
    %106 = vector.broadcast %105 : vector<96x1xi1> to vector<96x32xi1>
    %107 = vector.broadcast %cst_96 : f32 to vector<96x32xf32>
    %108 = arith.select %106, %104, %107 : vector<96x32xi1>, vector<96x32xf32>
    %cst_97 = arith.constant 0.00999999977 : f32
    %109 = vector.broadcast %cst_97 : f32 to vector<96x32xf32>
    %110 = arith.mulf %109, %108 : vector<96x32xf32>
    %111 = arith.maximumf %108, %110 : vector<96x32xf32>
    %112 = arith.truncf %111 : vector<96x32xf32> to vector<96x32xbf16>
    %c1_98 = arith.constant 1 : index
    %c1_99 = arith.constant 1 : index
    %c0_100 = arith.constant 0 : index
    %c0_101 = arith.constant 0 : index
    %113 = vector.load %arg6[%c1_98, %c1_99, %c0_100, %c0_101] : memref<3x3x32x32xbf16, #tpu.memory_space<vmem>>, vector<1x1x32x32xbf16>
    %114 = vector.shape_cast %113 : vector<1x1x32x32xbf16> to vector<32x32xbf16>
    %cst_102 = arith.constant dense<0.000000e+00> : vector<96x32xf32>
    %115 = tpu.matmul %112, %114, %cst_102 {dimension_numbers = #tpu.dot_dimension_numbers<[1], [0], [0], [1], [0, 0, 1, 1], [], []>} : vector<96x32xbf16>, vector<32x32xbf16>, vector<96x32xf32> -> vector<96x32xf32>
    %c1_103 = arith.constant 1 : index
    %c0_104 = arith.constant 0 : index
    %c0_105 = arith.constant 0 : index
    %116 = vector.load %arg7[%c1_103, %c0_104, %c0_105] : memref<3x1x32xf32, #tpu.memory_space<vmem>>, vector<1x1x32xf32>
    %117 = vector.shape_cast %116 : vector<1x1x32xf32> to vector<1x32xf32>
    %118 = vector.broadcast %117 : vector<1x32xf32> to vector<96x32xf32>
    %119 = arith.addf %115, %118 : vector<96x32xf32>
    %c0_106 = arith.constant 0 : index
    %c0_107 = arith.constant 0 : index
    %120 = vector.load %arg9[%c0_106, %c0_107] : memref<96x32xf32, #tpu.memory_space<vmem>>, vector<96x32xf32>
    tpu.vector_store %arg9[%c0_106, %c0_107], %119 {strides = array<i32>} : memref<96x32xf32, #tpu.memory_space<vmem>>, vector<96x32xf32>,
    %c1_108 = arith.constant 1 : index
    %c0_109 = arith.constant 0 : index
    %c0_110 = arith.constant 0 : index
    %c0_111 = arith.constant 0 : index
    %121 = vector.load %arg6[%c1_108, %c0_109, %c0_110, %c0_111] : memref<3x3x32x32xbf16, #tpu.memory_space<vmem>>, vector<1x1x32x32xbf16>
    %122 = vector.shape_cast %121 : vector<1x1x32x32xbf16> to vector<32x32xbf16>
    %cst_112 = arith.constant dense<0.000000e+00> : vector<96x32xf32>
    %123 = tpu.matmul %112, %122, %cst_112 {dimension_numbers = #tpu.dot_dimension_numbers<[1], [0], [0], [1], [0, 0, 1, 1], [], []>} : vector<96x32xbf16>, vector<32x32xbf16>, vector<96x32xf32> -> vector<96x32xf32>
    %c1_113 = arith.constant 1 : index
    %c0_114 = arith.constant 0 : index
    %124 = vector.load %arg9[%c1_113, %c0_114] : memref<96x32xf32, #tpu.memory_space<vmem>>, vector<95x32xf32>
    %125 = vector.extract_strided_slice %123 {offsets = [0, 0], sizes = [95, 32], strides = [1, 1]} : vector<96x32xf32> to vector<95x32xf32>
    %126 = arith.addf %124, %125 : vector<95x32xf32>
    %c1_115 = arith.constant 1 : index
    %c0_116 = arith.constant 0 : index
    %127 = vector.load %arg9[%c1_115, %c0_116] : memref<96x32xf32, #tpu.memory_space<vmem>>, vector<95x32xf32>
    tpu.vector_store %arg9[%c1_115, %c0_116], %126 {strides = array<i32>} : memref<96x32xf32, #tpu.memory_space<vmem>>, vector<95x32xf32>,
    %c1_117 = arith.constant 1 : index
    %c2_118 = arith.constant 2 : index
    %c0_119 = arith.constant 0 : index
    %c0_120 = arith.constant 0 : index
    %128 = vector.load %arg6[%c1_117, %c2_118, %c0_119, %c0_120] : memref<3x3x32x32xbf16, #tpu.memory_space<vmem>>, vector<1x1x32x32xbf16>
    %129 = vector.shape_cast %128 : vector<1x1x32x32xbf16> to vector<32x32xbf16>
    %cst_121 = arith.constant dense<0.000000e+00> : vector<96x32xf32>
    %130 = tpu.matmul %112, %129, %cst_121 {dimension_numbers = #tpu.dot_dimension_numbers<[1], [0], [0], [1], [0, 0, 1, 1], [], []>} : vector<96x32xbf16>, vector<32x32xbf16>, vector<96x32xf32> -> vector<96x32xf32>
    %c0_122 = arith.constant 0 : index
    %c0_123 = arith.constant 0 : index
    %131 = vector.load %arg9[%c0_122, %c0_123] : memref<96x32xf32, #tpu.memory_space<vmem>>, vector<95x32xf32>
    %132 = vector.extract_strided_slice %130 {offsets = [1, 0], sizes = [95, 32], strides = [1, 1]} : vector<96x32xf32> to vector<95x32xf32>
    %133 = arith.addf %131, %132 : vector<95x32xf32>
    %c0_124 = arith.constant 0 : index
    %c0_125 = arith.constant 0 : index
    %134 = vector.load %arg9[%c0_124, %c0_125] : memref<96x32xf32, #tpu.memory_space<vmem>>, vector<95x32xf32>
    tpu.vector_store %arg9[%c0_124, %c0_125], %133 {strides = array<i32>} : memref<96x32xf32, #tpu.memory_space<vmem>>, vector<95x32xf32>,
    %c0_126 = arith.constant 0 : index
    %c0_127 = arith.constant 0 : index
    %135 = vector.load %arg9[%c0_126, %c0_127] : memref<96x32xf32, #tpu.memory_space<vmem>>, vector<96x32xf32>
    %cst_128 = arith.constant 0.000000e+00 : f32
    %136 = vector.shape_cast %14 : vector<96x1xi1> to vector<96x1xi1>
    %137 = vector.broadcast %136 : vector<96x1xi1> to vector<96x32xi1>
    %138 = vector.broadcast %cst_128 : f32 to vector<96x32xf32>
    %139 = arith.select %137, %135, %138 : vector<96x32xi1>, vector<96x32xf32>
    %140 = arith.addf %77, %139 : vector<96x32xf32>
    %cst_129 = arith.constant 0.00999999977 : f32
    %141 = vector.broadcast %cst_129 : f32 to vector<96x32xf32>
    %142 = arith.mulf %141, %140 : vector<96x32xf32>
    %143 = arith.maximumf %140, %142 : vector<96x32xf32>
    %144 = arith.truncf %143 : vector<96x32xf32> to vector<96x32xbf16>
    %c2_130 = arith.constant 2 : index
    %c1_131 = arith.constant 1 : index
    %c0_132 = arith.constant 0 : index
    %c0_133 = arith.constant 0 : index
    %145 = vector.load %arg4[%c2_130, %c1_131, %c0_132, %c0_133] : memref<3x3x32x32xbf16, #tpu.memory_space<vmem>>, vector<1x1x32x32xbf16>
    %146 = vector.shape_cast %145 : vector<1x1x32x32xbf16> to vector<32x32xbf16>
    %cst_134 = arith.constant dense<0.000000e+00> : vector<96x32xf32>
    %147 = tpu.matmul %144, %146, %cst_134 {dimension_numbers = #tpu.dot_dimension_numbers<[1], [0], [0], [1], [0, 0, 1, 1], [], []>} : vector<96x32xbf16>, vector<32x32xbf16>, vector<96x32xf32> -> vector<96x32xf32>
    %c2_135 = arith.constant 2 : index
    %c0_136 = arith.constant 0 : index
    %c0_137 = arith.constant 0 : index
    %148 = vector.load %arg5[%c2_135, %c0_136, %c0_137] : memref<3x1x32xf32, #tpu.memory_space<vmem>>, vector<1x1x32xf32>
    %149 = vector.shape_cast %148 : vector<1x1x32xf32> to vector<1x32xf32>
    %150 = vector.broadcast %149 : vector<1x32xf32> to vector<96x32xf32>
    %151 = arith.addf %147, %150 : vector<96x32xf32>
    %c0_138 = arith.constant 0 : index
    %c0_139 = arith.constant 0 : index
    %152 = vector.load %arg9[%c0_138, %c0_139] : memref<96x32xf32, #tpu.memory_space<vmem>>, vector<96x32xf32>
    tpu.vector_store %arg9[%c0_138, %c0_139], %151 {strides = array<i32>} : memref<96x32xf32, #tpu.memory_space<vmem>>, vector<96x32xf32>,
    %c2_140 = arith.constant 2 : index
    %c0_141 = arith.constant 0 : index
    %c0_142 = arith.constant 0 : index
    %c0_143 = arith.constant 0 : index
    %153 = vector.load %arg4[%c2_140, %c0_141, %c0_142, %c0_143] : memref<3x3x32x32xbf16, #tpu.memory_space<vmem>>, vector<1x1x32x32xbf16>
    %154 = vector.shape_cast %153 : vector<1x1x32x32xbf16> to vector<32x32xbf16>
    %cst_144 = arith.constant dense<0.000000e+00> : vector<96x32xf32>
    %155 = tpu.matmul %144, %154, %cst_144 {dimension_numbers = #tpu.dot_dimension_numbers<[1], [0], [0], [1], [0, 0, 1, 1], [], []>} : vector<96x32xbf16>, vector<32x32xbf16>, vector<96x32xf32> -> vector<96x32xf32>
    %c5 = arith.constant 5 : index
    %c0_145 = arith.constant 0 : index
    %156 = vector.load %arg9[%c5, %c0_145] : memref<96x32xf32, #tpu.memory_space<vmem>>, vector<91x32xf32>
    %157 = vector.extract_strided_slice %155 {offsets = [0, 0], sizes = [91, 32], strides = [1, 1]} : vector<96x32xf32> to vector<91x32xf32>
    %158 = arith.addf %156, %157 : vector<91x32xf32>
    %c5_146 = arith.constant 5 : index
    %c0_147 = arith.constant 0 : index
    %159 = vector.load %arg9[%c5_146, %c0_147] : memref<96x32xf32, #tpu.memory_space<vmem>>, vector<91x32xf32>
    tpu.vector_store %arg9[%c5_146, %c0_147], %158 {strides = array<i32>} : memref<96x32xf32, #tpu.memory_space<vmem>>, vector<91x32xf32>,
    %c2_148 = arith.constant 2 : index
    %c2_149 = arith.constant 2 : index
    %c0_150 = arith.constant 0 : index
    %c0_151 = arith.constant 0 : index
    %160 = vector.load %arg4[%c2_148, %c2_149, %c0_150, %c0_151] : memref<3x3x32x32xbf16, #tpu.memory_space<vmem>>, vector<1x1x32x32xbf16>
    %161 = vector.shape_cast %160 : vector<1x1x32x32xbf16> to vector<32x32xbf16>
    %cst_152 = arith.constant dense<0.000000e+00> : vector<96x32xf32>
    %162 = tpu.matmul %144, %161, %cst_152 {dimension_numbers = #tpu.dot_dimension_numbers<[1], [0], [0], [1], [0, 0, 1, 1], [], []>} : vector<96x32xbf16>, vector<32x32xbf16>, vector<96x32xf32> -> vector<96x32xf32>
    %c0_153 = arith.constant 0 : index
    %c0_154 = arith.constant 0 : index
    %163 = vector.load %arg9[%c0_153, %c0_154] : memref<96x32xf32, #tpu.memory_space<vmem>>, vector<91x32xf32>
    %164 = vector.extract_strided_slice %162 {offsets = [5, 0], sizes = [91, 32], strides = [1, 1]} : vector<96x32xf32> to vector<91x32xf32>
    %165 = arith.addf %163, %164 : vector<91x32xf32>
    %c0_155 = arith.constant 0 : index
    %c0_156 = arith.constant 0 : index
    %166 = vector.load %arg9[%c0_155, %c0_156] : memref<96x32xf32, #tpu.memory_space<vmem>>, vector<91x32xf32>
    tpu.vector_store %arg9[%c0_155, %c0_156], %165 {strides = array<i32>} : memref<96x32xf32, #tpu.memory_space<vmem>>, vector<91x32xf32>,
    %c0_157 = arith.constant 0 : index
    %c0_158 = arith.constant 0 : index
    %167 = vector.load %arg9[%c0_157, %c0_158] : memref<96x32xf32, #tpu.memory_space<vmem>>, vector<96x32xf32>
    %cst_159 = arith.constant 0.000000e+00 : f32
    %168 = vector.shape_cast %14 : vector<96x1xi1> to vector<96x1xi1>
    %169 = vector.broadcast %168 : vector<96x1xi1> to vector<96x32xi1>
    %170 = vector.broadcast %cst_159 : f32 to vector<96x32xf32>
    %171 = arith.select %169, %167, %170 : vector<96x32xi1>, vector<96x32xf32>
    %cst_160 = arith.constant 0.00999999977 : f32
    %172 = vector.broadcast %cst_160 : f32 to vector<96x32xf32>
    %173 = arith.mulf %172, %171 : vector<96x32xf32>
    %174 = arith.maximumf %171, %173 : vector<96x32xf32>
    %175 = arith.truncf %174 : vector<96x32xf32> to vector<96x32xbf16>
    %c2_161 = arith.constant 2 : index
    %c1_162 = arith.constant 1 : index
    %c0_163 = arith.constant 0 : index
    %c0_164 = arith.constant 0 : index
    %176 = vector.load %arg6[%c2_161, %c1_162, %c0_163, %c0_164] : memref<3x3x32x32xbf16, #tpu.memory_space<vmem>>, vector<1x1x32x32xbf16>
    %177 = vector.shape_cast %176 : vector<1x1x32x32xbf16> to vector<32x32xbf16>
    %cst_165 = arith.constant dense<0.000000e+00> : vector<96x32xf32>
    %178 = tpu.matmul %175, %177, %cst_165 {dimension_numbers = #tpu.dot_dimension_numbers<[1], [0], [0], [1], [0, 0, 1, 1], [], []>} : vector<96x32xbf16>, vector<32x32xbf16>, vector<96x32xf32> -> vector<96x32xf32>
    %c2_166 = arith.constant 2 : index
    %c0_167 = arith.constant 0 : index
    %c0_168 = arith.constant 0 : index
    %179 = vector.load %arg7[%c2_166, %c0_167, %c0_168] : memref<3x1x32xf32, #tpu.memory_space<vmem>>, vector<1x1x32xf32>
    %180 = vector.shape_cast %179 : vector<1x1x32xf32> to vector<1x32xf32>
    %181 = vector.broadcast %180 : vector<1x32xf32> to vector<96x32xf32>
    %182 = arith.addf %178, %181 : vector<96x32xf32>
    %c0_169 = arith.constant 0 : index
    %c0_170 = arith.constant 0 : index
    %183 = vector.load %arg9[%c0_169, %c0_170] : memref<96x32xf32, #tpu.memory_space<vmem>>, vector<96x32xf32>
    tpu.vector_store %arg9[%c0_169, %c0_170], %182 {strides = array<i32>} : memref<96x32xf32, #tpu.memory_space<vmem>>, vector<96x32xf32>,
    %c2_171 = arith.constant 2 : index
    %c0_172 = arith.constant 0 : index
    %c0_173 = arith.constant 0 : index
    %c0_174 = arith.constant 0 : index
    %184 = vector.load %arg6[%c2_171, %c0_172, %c0_173, %c0_174] : memref<3x3x32x32xbf16, #tpu.memory_space<vmem>>, vector<1x1x32x32xbf16>
    %185 = vector.shape_cast %184 : vector<1x1x32x32xbf16> to vector<32x32xbf16>
    %cst_175 = arith.constant dense<0.000000e+00> : vector<96x32xf32>
    %186 = tpu.matmul %175, %185, %cst_175 {dimension_numbers = #tpu.dot_dimension_numbers<[1], [0], [0], [1], [0, 0, 1, 1], [], []>} : vector<96x32xbf16>, vector<32x32xbf16>, vector<96x32xf32> -> vector<96x32xf32>
    %c1_176 = arith.constant 1 : index
    %c0_177 = arith.constant 0 : index
    %187 = vector.load %arg9[%c1_176, %c0_177] : memref<96x32xf32, #tpu.memory_space<vmem>>, vector<95x32xf32>
    %188 = vector.extract_strided_slice %186 {offsets = [0, 0], sizes = [95, 32], strides = [1, 1]} : vector<96x32xf32> to vector<95x32xf32>
    %189 = arith.addf %187, %188 : vector<95x32xf32>
    %c1_178 = arith.constant 1 : index
    %c0_179 = arith.constant 0 : index
    %190 = vector.load %arg9[%c1_178, %c0_179] : memref<96x32xf32, #tpu.memory_space<vmem>>, vector<95x32xf32>
    tpu.vector_store %arg9[%c1_178, %c0_179], %189 {strides = array<i32>} : memref<96x32xf32, #tpu.memory_space<vmem>>, vector<95x32xf32>,
    %c2_180 = arith.constant 2 : index
    %c2_181 = arith.constant 2 : index
    %c0_182 = arith.constant 0 : index
    %c0_183 = arith.constant 0 : index
    %191 = vector.load %arg6[%c2_180, %c2_181, %c0_182, %c0_183] : memref<3x3x32x32xbf16, #tpu.memory_space<vmem>>, vector<1x1x32x32xbf16>
    %192 = vector.shape_cast %191 : vector<1x1x32x32xbf16> to vector<32x32xbf16>
    %cst_184 = arith.constant dense<0.000000e+00> : vector<96x32xf32>
    %193 = tpu.matmul %175, %192, %cst_184 {dimension_numbers = #tpu.dot_dimension_numbers<[1], [0], [0], [1], [0, 0, 1, 1], [], []>} : vector<96x32xbf16>, vector<32x32xbf16>, vector<96x32xf32> -> vector<96x32xf32>
    %c0_185 = arith.constant 0 : index
    %c0_186 = arith.constant 0 : index
    %194 = vector.load %arg9[%c0_185, %c0_186] : memref<96x32xf32, #tpu.memory_space<vmem>>, vector<95x32xf32>
    %195 = vector.extract_strided_slice %193 {offsets = [1, 0], sizes = [95, 32], strides = [1, 1]} : vector<96x32xf32> to vector<95x32xf32>
    %196 = arith.addf %194, %195 : vector<95x32xf32>
    %c0_187 = arith.constant 0 : index
    %c0_188 = arith.constant 0 : index
    %197 = vector.load %arg9[%c0_187, %c0_188] : memref<96x32xf32, #tpu.memory_space<vmem>>, vector<95x32xf32>
    tpu.vector_store %arg9[%c0_187, %c0_188], %196 {strides = array<i32>} : memref<96x32xf32, #tpu.memory_space<vmem>>, vector<95x32xf32>,
    %c0_189 = arith.constant 0 : index
    %c0_190 = arith.constant 0 : index
    %198 = vector.load %arg9[%c0_189, %c0_190] : memref<96x32xf32, #tpu.memory_space<vmem>>, vector<96x32xf32>
    %cst_191 = arith.constant 0.000000e+00 : f32
    %199 = vector.shape_cast %14 : vector<96x1xi1> to vector<96x1xi1>
    %200 = vector.broadcast %199 : vector<96x1xi1> to vector<96x32xi1>
    %201 = vector.broadcast %cst_191 : f32 to vector<96x32xf32>
    %202 = arith.select %200, %198, %201 : vector<96x32xi1>, vector<96x32xf32>
    %203 = arith.addf %140, %202 : vector<96x32xf32>
    %204 = vector.extract_strided_slice %203 {offsets = [16, 0], sizes = [64, 32], strides = [1, 1]} : vector<96x32xf32> to vector<64x32xf32>
    %c0_192 = arith.constant 0 : index
    %c0_193 = arith.constant 0 : index
    %c0_194 = arith.constant 0 : index
    %205 = vector.load %arg8[%c0_192, %c0_193, %c0_194] : memref<1x64x32xf32, #tpu.memory_space<vmem>>, vector<1x64x32xf32>
    %206 = vector.shape_cast %205 : vector<1x64x32xf32> to vector<64x32xf32>
    %207 = vector.shape_cast %204 : vector<64x32xf32> to vector<1x64x32xf32>
    tpu.vector_store %arg8[%c0_192, %c0_193, %c0_194], %207 {strides = array<i32>} : memref<1x64x32xf32, #tpu.memory_space<vmem>>, vector<1x64x32xf32>,
    return
  }
  func.func @transform_0(%arg0: i32, %arg1: i32) -> (i32, i32, i32) {
    %c0_i32 = arith.constant 0 : i32
    %c0_i32_0 = arith.constant 0 : i32
    return %arg0, %arg1, %c0_i32 : i32, i32, i32
  }
  func.func @transform_1(%arg0: i32, %arg1: i32) -> (i32, i32, i32) {
    %c1_i32 = arith.constant 1 : i32
    %0 = arith.addi %arg1, %c1_i32 : i32
    %c2_i32 = arith.constant 2 : i32
    %1 = arith.muli %0, %c2_i32 : i32
    %c0_i32 = arith.constant 0 : i32
    %c0_i32_0 = arith.constant 0 : i32
    return %arg0, %1, %c0_i32 : i32, i32, i32
  }
  func.func @transform_2(%arg0: i32, %arg1: i32) -> (i32, i32, i32, i32) {
    %c0_i32 = arith.constant 0 : i32
    %c0_i32_0 = arith.constant 0 : i32
    %c0_i32_1 = arith.constant 0 : i32
    %c0_i32_2 = arith.constant 0 : i32
    %c0_i32_3 = arith.constant 0 : i32
    return %c0_i32, %c0_i32_0, %c0_i32_1, %c0_i32_2 : i32, i32, i32, i32
  }
  func.func @transform_3(%arg0: i32, %arg1: i32) -> (i32, i32, i32) {
    %c0_i32 = arith.constant 0 : i32
    %c0_i32_0 = arith.constant 0 : i32
    %c0_i32_1 = arith.constant 0 : i32
    %c0_i32_2 = arith.constant 0 : i32
    return %c0_i32, %c0_i32_0, %c0_i32_1 : i32, i32, i32
  }
  func.func @transform_4(%arg0: i32, %arg1: i32) -> (i32, i32, i32, i32) {
    %c0_i32 = arith.constant 0 : i32
    %c0_i32_0 = arith.constant 0 : i32
    %c0_i32_1 = arith.constant 0 : i32
    %c0_i32_2 = arith.constant 0 : i32
    %c0_i32_3 = arith.constant 0 : i32
    return %c0_i32, %c0_i32_0, %c0_i32_1, %c0_i32_2 : i32, i32, i32, i32
  }
  func.func @transform_5(%arg0: i32, %arg1: i32) -> (i32, i32, i32) {
    %c0_i32 = arith.constant 0 : i32
    %c0_i32_0 = arith.constant 0 : i32
    %c0_i32_1 = arith.constant 0 : i32
    %c0_i32_2 = arith.constant 0 : i32
    return %c0_i32, %c0_i32_0, %c0_i32_1 : i32, i32, i32
  }
  func.func @transform_6(%arg0: i32, %arg1: i32) -> (i32, i32, i32) {
    %c0_i32 = arith.constant 0 : i32
    %c0_i32_0 = arith.constant 0 : i32
    return %arg0, %arg1, %c0_i32 : i32, i32, i32
  }
}

</mosaic_0001>

<bundles_post_ra>
// kernel: tpu_custom_call.1
= control target key start
LH: loop header
LB: loop body
LE: loop exit
PB: predicated region body
PF: predicated region fallthrough
CT: control target
= control target key end

     0   :  { %s4818_s21 = smov 0   ;;  %s4820_s22 = smov 0   ;;  %s5970_s0 = inlined_call_operand.vmem [shape: f32[2,288,32], index: 0, kind: input, shape index: {}]   ;;  %s5971_s1 = inlined_call_operand.vmem [shape: f32[2,288,32], index: 1, kind: input, shape index: {}]   ;;  %s5972_s2 = inlined_call_operand.vmem [shape: bf16[3,3,32,32], index: 2, kind: input, shape index: {}]   ;;  %s5973_s3 = inlined_call_operand.vmem [shape: f32[3,1,32], index: 3, kind: input, shape index: {}]   ;;  %s5974_s4 = inlined_call_operand.vmem [shape: bf16[3,3,32,32], index: 4, kind: input, shape index: {}]   ;;  %s5975_s5 = inlined_call_operand.vmem [shape: f32[3,1,32], index: 5, kind: input, shape index: {}]   ;;  %s5976_s6 = inlined_call_operand.vmem [shape: f32[2,200,32], index: 6, kind: output, shape index: {}]  }
   0x1   :  { %s4822_s23 = smov 0   ;;  %s4824_s24 = smov 0  }
   0x2   :  { %s4826_s25 = smov 0   ;;  %s4828_s26 = smov 0  }
   0x3   :  { %s4830_s27 = smov 0  }
   0x4 LB: > { %s25_s28 = sadd.s32 1, %s4741_s25  ;;  %s28_s29 = sadd.s32 1, %s4745_s26  ;;  %s4749_s27 = sphi %s4830_s27, %s16_s27   ;;  %s4745_s26 = sphi %s4828_s26, %s6324_s26   ;;  %s4741_s25 = sphi %s4826_s25, %s6323_s25   ;;  %s4737_s24 = sphi %s4824_s24, %s6322_s24   ;;  %s4733_s23 = sphi %s4822_s23, %s6321_s23   ;;  %s4729_s22 = sphi %s4820_s22, %s6320_s22   ;;  %s4725_s21 = sphi %s4818_s21, %s6319_s21  }
   0x5   : > { %p26_p0 = scmp.ge.s32.totalorder %s25_s28, 4  ;;  %s3800_s30 = sadd.s32 4294967295, %s4749_s27  }
   0x6   : > { %p191_p1 = scmp.ne.s32.totalorder %s4729_s22, %s4725_s21  ;;  %p192_p2 = scmp.eq.s32.totalorder %s3800_s30, 7 }
   0x7   : > { %s6326_s28 = smov (%p26_p0, %s25_s28), 0  ;;  %s6328_s29 = smov (!%p26_p0, %s28_s29), %s4745_s26 }
   0x8   : > { %s177_s7 = ssub.s32 %s4741_s25, %s6326_s28  ;;  %p30_p3 = scmp.ge.s32.totalorder %s6328_s29, 2 }
   0x9   : > { %p3806_p4 = scmp.ge.s32.totalorder %s4749_s27, 1  ;;  %p4864_p5 = por %p192_p2, %p191_p1 }
   0xa   : > { %p266_p6 = scmp.lt.s32.totalorder %s4749_s27, 9  ;;  %s6330_s29 = smov (%p30_p3, %s6328_s29), 0 }
   0xb   : > { %5998 = sst [smem:[#allocation4_spill]] %s6330_s29  ;;  %s176_s9 = ssub.s32 %s4745_s26, %s6330_s29 }
   0xc   : > { %p267_p7 = pnand %p3806_p4, %p266_p6  ;;  %s178_s10 = sor.u32 %s177_s7, %s176_s9 }
   0xd   : > { %s181_s11 = sadd.s32 1, %s4729_s22  ;;  %p179_p8 = scmp.eq.s32.totalorder %s178_s10, 0  ;;  %v4615_v0 = vld [vmem:[%s5972_s2 + $0x10] sm:$0xff] (!%p267_p7)   ;;  %v4616_v1 = vld [vmem:[%s5972_s2 + $0x18] sm:$0xff] (!%p267_p7)   ;;  %v4617_v2 = vld [vmem:[%s5972_s2 + $0x20] sm:$0xff] (!%p267_p7)   ;;  %vm5980_vm0 = vcmask (!%p267_p7), 261120  }
   0xe   : > { %270 = sbr.rel (%p267_p7) target bundleno = 1689 (0x699), region = 44  ;;  %s4881_s15 = sshll.u32 (!%p267_p7), %s4733_s23, 3  ;;  %4205 = vmatprep.subr.bf16.mxu0 (!%p267_p7), %v4615_v0  ;;  %v4618_v3 = vld [vmem:[%s5972_s2] sm:$0xff] (!%p267_p7)   ;;  %v4619_v4 = vld [vmem:[%s5972_s2 + $0x8] sm:$0xff] (!%p267_p7)   ;;  %v4621_v48 = vld [vmem:[%s5974_s4 + $0x10] sm:$0xff] (!%p267_p7)   ;;  %vm5979_vm1 = vcmask (!%p267_p7), 1046528  }
   0xf   : > { %s4875_s12 = scalar_select %p179_p8, %s4729_s22, %s181_s11  }
  0x10   : > { %p319_p9 = scmp.lt.s32.totalorder (!%p267_p7), %s4737_s24, 1  ;;  %p321_p10 = scmp.lt.s32.totalorder (!%p267_p7), %s4881_s15, 35  ;;  %4206 = vmatpush3.bf16.msra.mxu0 (!%p267_p7), %v4615_v0  ;;  %4221 = vmatprep.subr.bf16.mxu1 (!%p267_p7), %v4618_v3  ;;  %v4620_v32 = vld [vmem:[%s5972_s2 + $0x28] sm:$0xff] (!%p267_p7)   ;;  %v4623_v49 = vld [vmem:[%s5974_s4] sm:$0xff] (!%p267_p7)   ;;  %v4622_v50 = vld [vmem:[%s5974_s4 + $0x18] sm:$0xff] (!%p267_p7)   ;;  %vm5978_vm2 = vcmask (!%p267_p7), 260096  }
  0x11   : > { %4207 = vmatprep.subr.bf16.mxu0 (!%p267_p7), %v4616_v1  ;;  %s4060_s14 = sadd.s32 (!%p267_p7), 8, %s4881_s15  ;;  %4222 = vmatpush3.bf16.msra.mxu1 (!%p267_p7), %v4618_v3  ;;  %v4624_v51 = vld [vmem:[%s5974_s4 + $0x8] sm:$0xff] (!%p267_p7)   ;;  %v4961_v52 = vld [vmem:[%s5974_s4 + $0x20] sm:$0xff] (!%p267_p7)  }
  0x12   : > { %p337_p11 = scmp.lt.s32.totalorder (!%p267_p7), %s4060_s14, 35  ;;  %4223 = vmatprep.subr.bf16.mxu1 (!%p267_p7), %v4619_v4  ;;  %v3819_v53 = vld [vmem:[%s5973_s3] ss:$0 sm:$0xff] (!%p267_p7) }
  0x14   : > { %4208 = vmatpush3.bf16.msra.mxu0 (!%p267_p7), %v4616_v1 }
  0x15   : > { %s4889_s18 = scalar_select %p319_p9, %s4737_s24, 1  ;;  %4237 = vmatprep.subr.bf16.mxu0 %v4617_v2  ;;  %4224 = vmatpush3.bf16.msra.mxu1 %v4619_v4 }
  0x16   : > { %s322_s30 = scalar_select %p321_p10, %s4881_s15, 35  ;;  %4253 = vmatprep.subr.bf16.mxu1 %v4621_v48 }
  0x17   : > { %s4493_s10 = smul.u32 36, %s4889_s18  ;;  %s6332_s14 = smov (!%p337_p11, %s4060_s14), 35 }
  0x18   : > { %s3525_s9 = ssub.s32 (%p4864_p5), 25, %s4881_s15 }
  0x19   : > { %s324_s16 = sadd.s32 %s4493_s10, %s322_s30  ;;  %s340_s18 = sadd.s32 %s4493_s10, %s6332_s14 }
  0x1a   : > { %s3809_s17 = sshll.u32 %s324_s16, 3  ;;  %s3812_s30 = sshll.u32 %s340_s18, 3 }
  0x1b   : > { %s4906_s29 = scalar_lea.vmem %s5970_s0, %s3809_s17  ;;  %s4919_s11 = scalar_lea.vmem %s5971_s1, %s3812_s30 }
  0x1c   : > { %v352_v5 = vld [vmem:[%s4906_s29] sm:$0xff]  ;;  %v353_v6 = vld [vmem:[%s4906_s29 + $0x8] sm:$0xff]  ;;  %v354_v7 = vld [vmem:[%s4906_s29 + $0x10] sm:$0xff]  ;;  %s3813_s16 = sshll.u32 %s4733_s23, 6  ;;  %s311_s30 = sand.u32 1, %s4725_s21  }
  0x1d   : > { %v428_v8 = vmul.f32 0.01, %v352_v5  ;;  %v429_v9 = vmul.f32 0.01, %v353_v6  ;;  %v355_v10 = vld [vmem:[%s4906_s29 + $0x18] sm:$0xff]  ;;  %v356_v11 = vld [vmem:[%s4906_s29 + $0x20] sm:$0xff] }
  0x1e   : > { %v430_v12 = vmul.f32 0.01, %v354_v7  ;;  %v431_v13 = vmul.f32 0.01, %v355_v10  ;;  %v357_v14 = vld [vmem:[%s4906_s29 + $0x28] sm:$0xff]  ;;  %v358_v15 = vld [vmem:[%s4906_s29 + $0x30] sm:$0xff] }
  0x1f   : > { %v440_v16 = vmax.f32 %v352_v5, %v428_v8  ;;  %v441_v17 = vmax.f32 %v353_v6, %v429_v9  ;;  %v432_v18 = vmul.f32 0.01, %v356_v11  ;;  %v433_v19 = vmul.f32 0.01, %v357_v14  ;;  %v359_v20 = vld [vmem:[%s4906_s29 + $0x38] sm:$0xff]  ;;  %v360_v28 = vld [vmem:[%s4919_s11] sm:$0xff] }
  0x20   : > { %v442_v21 = vmax.f32 %v354_v7, %v430_v12  ;;  %v443_v22 = vmax.f32 %v355_v10, %v431_v13  ;;  %v434_v23 = vmul.f32 0.01, %v358_v15  ;;  %v435_v24 = vmul.f32 0.01, %v359_v20  ;;  %v361_v29 = vld [vmem:[%s4919_s11 + $0x8] sm:$0xff]  ;;  %v362_v30 = vld [vmem:[%s4919_s11 + $0x10] sm:$0xff] }
  0x21   : > { %v452_v25 = vpack.c.bf16 %v441_v17, %v440_v16  ;;  %v444_v26 = vmax.f32 %v356_v11, %v432_v18  ;;  %v445_v27 = vmax.f32 %v357_v14, %v433_v19  ;;  %v436_v33 = vmul.f32 0.01, %v360_v28  ;;  %v363_v34 = vld [vmem:[%s4919_s11 + $0x18] sm:$0xff]  ;;  %s3814_s17 = sadd.s32 4294967280, %s3813_s16  ;;  %s3807_s7 = sshll.u32 %s311_s30, 6 }
  0x22   : > { %v453_v31 = vpack.c.bf16 %v443_v22, %v442_v21  ;;  %v437_v36 = vmul.f32 0.01, %v361_v29  ;;  %v438_v37 = vmul.f32 0.01, %v362_v30  ;;  %v439_v38 = vmul.f32 0.01, %v363_v34 }
  0x23   : > { %4209 = vmatprep.mubr.msk.bf16.mxu0 %vm5980_vm0, %v452_v25  ;;  %v454_v35 = vpack.c.bf16 %v445_v27, %v444_v26  ;;  %4225 = vmatprep.mubr.msk.bf16.mxu1 %vm5980_vm0, %v452_v25  ;;  %v446_v39 = vmax.f32 %v358_v15, %v434_v23  ;;  %v447_v40 = vmax.f32 %v359_v20, %v435_v24  ;;  %v364_v18 = vlaneseq  ;;  %s5849_s21 = scalar_lea.vmem [#allocation3], %s3807_s7   ;;  %s4494_s10 = smul.u32 (%p4864_p5), 25, %s4737_s24 }
  0x24   : > { %4210 = vmatmul.mubr.msk.bf16.vlgmr.msra.gmra.mrb[0].mxu0 %vm5980_vm0, %v453_v31  ;;  %4226 = vmatmul.mubr.msk.bf16.vlgmr.msra.gmra.mrb[0].mxu1 %vm5980_vm0, %v453_v31  ;;  %v448_v41 = vmax.f32 %v360_v28, %v436_v33  ;;  %v449_v42 = vmax.f32 %v361_v29, %v437_v36  ;;  %v450_v45 = vmax.f32 %v362_v30, %v438_v37  ;;  %p3526_p12 = scmp.lt.s32.totalorder (%p4864_p5), %s3525_s9, 8 }
  0x25   : > { %4238 = vmatpush3.bf16.msra.mxu0 %v4617_v2  ;;  %4213 = vmatprep.mubr.msk.bf16.mxu0 %vm5980_vm0, %v454_v35  ;;  %v455_v43 = vpack.c.bf16 %v447_v40, %v446_v39  ;;  %v451_v46 = vmax.f32 %v363_v34, %v439_v38  ;;  %v4981_v26 = vshrl.u32 %v364_v18, 7  ;;  %s3531_s13 = sadd.s32 (%p4864_p5), %s4494_s10, %s4881_s15 }
  0x26   : > { %4239 = vmatprep.subr.bf16.mxu0 %v4620_v32  ;;  %4229 = vmatprep.mubr.msk.bf16.mxu1 %vm5980_vm0, %v454_v35  ;;  %v456_v44 = vpack.c.bf16 %v449_v42, %v448_v41  ;;  %s4037_s14 = sshll.u32 (%p4864_p5), %s3531_s13, 3 }
  0x27   : > { %v457_v47 = vpack.c.bf16 %v451_v46, %v450_v45  ;;  %4254 = vmatpush3.bf16.msra.mxu1 %v4621_v48  ;;  %v367_v40 = vadd.s32 16, %v4981_v26  ;;  %v368_v46 = vadd.s32 24, %v4981_v26  ;;  %v372_v18 = vadd.s32 56, %v4981_v26  ;;  %s5908_s19 = scalar_lea.vmem (%p4864_p5), %s5976_s6, %s4037_s14  }
  0x28   : > { %4255 = vmatprep.subr.bf16.mxu1 %v4622_v50 }
  0x29   : > { %4240 = vmatpush3.bf16.msra.mxu0 %v4620_v32 }
  0x2a   : > { %4269 = vmatprep.subr.bf16.mxu0 %v4623_v49 }
  0x2b   : > { %4256 = vmatpush3.bf16.msra.mxu1 %v4622_v50 }
  0x2c   : > { %4214 = vmatmul.mubr.msk.bf16.gmra.mrb[4].mxu0 %vm5980_vm0, %v455_v43  ;;  %4230 = vmatmul.mubr.msk.bf16.gmra.mrb[4].mxu1 %vm5980_vm0, %v455_v43 }
  0x2d   : > { %4217 = vmatprep.mubr.msk.bf16.mxu0 %vm5980_vm0, %v456_v44  ;;  %4233 = vmatprep.mubr.msk.bf16.mxu1 %vm5980_vm0, %v456_v44 }
  0x2e   : > { %4285 = vmatprep.subr.bf16.mxu1 %v4961_v52 }
  0x34   : > { %4218 = vmatmul.mubr.msk.bf16.gmra.mrb[8].mxu0 %vm5980_vm0, %v457_v47  ;;  %4234 = vmatmul.mubr.msk.bf16.gmra.mrb[8].mxu1 %vm5980_vm0, %v457_v47 }
  0x35   : > { %4241 = vmatprep.mubr.msk.bf16.mxu0 %vm5980_vm0, %v452_v25 }
  0x3c   : > { %4242 = vmatmul.mubr.msk.bf16.vlgmr.msra.gmra.mrb[12].mxu0 %vm5980_vm0, %v453_v31 }
  0x3d   : > { %4245 = vmatprep.mubr.msk.bf16.mxu0 %vm5980_vm0, %v454_v35  ;;  %4270 = vmatpush3.bf16.msra.mxu0 %v4623_v49 }
  0x3e   : > { %4271 = vmatprep.subr.bf16.mxu0 %v4624_v51 }
  0x41   : > { %4272 = vmatpush3.bf16.msra.mxu0 %v4624_v51 }
  0x44   : > { %4246 = vmatmul.mubr.msk.bf16.gmra.mrb[16].mxu0 %vm5980_vm0, %v455_v43  ;;  %v4989_v43 = vstv %s3814_s17 }
  0x45   : > { %4249 = vmatprep.mubr.msk.bf16.mxu0 %vm5980_vm0, %v456_v44  ;;  %v366_v44 = vadd.s32 8, %v4981_v26  ;;  %v4997_v48 = vadd.s32 %v4989_v43, %v367_v40  ;;  %v5003_v50 = vadd.s32 %v4989_v43, %v4981_v26 }
  0x47   : > { %vm394_vm3 = vcmp.ge.s32.totalorder %v4997_v48, 0  ;;  %vm392_vm4 = vcmp.ge.s32.totalorder %v5003_v50, 0  ;;  %vm406_vm5 = vcmp.lt.s32.totalorder %v4997_v48, 200  ;;  %vm404_vm7 = vcmp.lt.s32.totalorder %v5003_v50, 200 }
  0x48   : > { %vm5068_vm13 = vmand %vm392_vm4, %vm404_vm7 }
  0x49   : > { %vm5089_vm7 = vmand %vm394_vm3, %vm406_vm5 }
  0x4c   : > { %4250 = vmatmul.mubr.msk.bf16.gmra.mrb[20].mxu0 %vm5980_vm0, %v457_v47 }
  0xf7   : > { %v4211_v54 = vpop.f32.mrb[0].mxu0  ;;  %v4227_v55 = vpop.f32.mrb[0].mxu1 }
  0xf8   : > { %v544_v56 = vadd.f32 %v4211_v54, %v3819_v53  ;;  %v535_v57 = vpop.f32.mrb[1].mxu0  ;;  %v644_v58 = vpop.f32.mrb[1].mxu1 }
  0xf9   : > { %v536_v59 = vadd.f32 %v3819_v53, %v535_v57  ;;  %v4212_v60 = vpop.f32.mrb[2].mxu0  ;;  %v4228_v61 = vpop.f32.mrb[2].mxu1  ;;  %v371_v57 = vadd.s32 48, %v4981_v26 }
  0xfa   : > { %584 = vst.msk [vmem:[#allocation2 + $0x10] sm:$0xff] %vm5980_vm0, %v544_v56  ;;  %v547_v62 = vadd.f32 %v4212_v60, %v3819_v53  ;;  %v538_v63 = vpop.f32.mrb[3].mxu0  ;;  %v647_v0 = vpop.f32.mrb[3].mxu1  ;;  %v5007_v56 = vadd.s32 %v4989_v43, %v366_v44 }
  0xfb   : > { %582 = vst.msk [vmem:[#allocation2] sm:$0xff] %vm5980_vm0, %v536_v59  ;;  %v539_v1 = vadd.f32 %v3819_v53, %v538_v63  ;;  %v5012_v63 = vadd.s32 %v4989_v43, %v368_v46 }
  0xfc   : > { %585 = vst.msk [vmem:[#allocation2 + $0x18] sm:$0xff] %vm5980_vm0, %v547_v62  ;;  %vm393_vm6 = vcmp.ge.s32.totalorder %v5007_v56, 0  ;;  %vm405_vm8 = vcmp.lt.s32.totalorder %v5007_v56, 200 }
  0xfd   : > { %583 = vst.msk [vmem:[#allocation2 + $0x8] sm:$0xff] %vm5980_vm0, %v539_v1  ;;  %vm395_vm9 = vcmp.ge.s32.totalorder %v5012_v63, 0  ;;  %vm407_vm10 = vcmp.lt.s32.totalorder %v5012_v63, 200  ;;  %vm5078_vm15 = vmand %vm393_vm6, %vm405_vm8 }
  0xfe   : > { %vm5117_vm3 = vmand %vm395_vm9, %vm407_vm10 }
  0xff   : > { %v4215_v2 = vpop.f32.mrb[4].mxu0  ;;  %v4231_v3 = vpop.f32.mrb[4].mxu1 }
 0x100   : > { %v560_v4 = vadd.f32 %v4215_v2, %v3819_v53  ;;  %v551_v5 = vpop.f32.mrb[5].mxu0  ;;  %v660_v6 = vpop.f32.mrb[5].mxu1 }
 0x101   : > { %v552_v7 = vadd.f32 %v3819_v53, %v551_v5  ;;  %v4216_v8 = vpop.f32.mrb[6].mxu0  ;;  %v4971_v9 = vpop.f32.mrb[6].mxu1 }
 0x102   : > { %588 = vst.msk [vmem:[#allocation2 + $0x30] sm:$0xff] %vm5980_vm0, %v560_v4  ;;  %v563_v10 = vadd.f32 %v4216_v8, %v3819_v53  ;;  %v554_v11 = vpop.f32.mrb[7].mxu0  ;;  %v663_v12 = vpop.f32.mrb[7].mxu1 }
 0x103   : > { %586 = vst.msk [vmem:[#allocation2 + $0x20] sm:$0xff] %vm5980_vm0, %v552_v7  ;;  %v693_v13 = vld [vmem:[#allocation2 + $0x11] sm:$0xff]  ;;  %v555_v14 = vadd.f32 %v3819_v53, %v554_v11 }
 0x104   : > { %589 = vst.msk [vmem:[#allocation2 + $0x38] sm:$0xff] %vm5980_vm0, %v563_v10  ;;  %v705_v15 = vadd.f32 %v4227_v55, %v693_v13  ;;  %v691_v16 = vld [vmem:[#allocation2 + $0x1] sm:$0xff]  ;;  %v692_v17 = vld [vmem:[#allocation2 + $0x9] sm:$0xff] }
 0x105   : > { %587 = vst.msk [vmem:[#allocation2 + $0x28] sm:$0xff] %vm5980_vm0, %v555_v14  ;;  %v703_v19 = vadd.f32 %v691_v16, %v644_v58  ;;  %v704_v20 = vadd.f32 %v692_v17, %v647_v0  ;;  %v370_v16 = vadd.s32 40, %v4981_v26 }
 0x106   : > { %717 = vst.msk [vmem:[#allocation2 + $0x11] sm:$0xff] %vm5980_vm0, %v705_v15 }
 0x107   : > { %715 = vst.msk [vmem:[#allocation2 + $0x1] sm:$0xff] %vm5980_vm0, %v703_v19  ;;  %716 = vst.msk [vmem:[#allocation2 + $0x9] sm:$0xff] %vm5980_vm0, %v704_v20  ;;  %v4219_v21 = vpop.f32.mrb[8].mxu0  ;;  %v4235_v22 = vpop.f32.mrb[8].mxu1  ;;  %v5029_v19 = vadd.s32 %v4989_v43, %v371_v57 }
 0x108   : > { %v576_v23 = vadd.f32 %v4219_v21, %v3819_v53  ;;  %v567_v24 = vpop.f32.mrb[9].mxu0  ;;  %v676_v25 = vpop.f32.mrb[9].mxu1  ;;  %v375_v21 = vadd.s32 80, %v4981_v26 }
 0x109   : > { %v568_v27 = vadd.f32 %v3819_v53, %v567_v24  ;;  %v4220_v28 = vpop.f32.mrb[10].mxu0  ;;  %v4236_v29 = vpop.f32.mrb[10].mxu1  ;;  %vm410_vm12 = vcmp.lt.s32.totalorder %v5029_v19, 200 }
 0x10a   : > { %v694_v30 = vld [vmem:[#allocation2 + $0x19] sm:$0xff]  ;;  %592 = vst.msk [vmem:[#allocation2 + $0x50] sm:$0xff] %vm5980_vm0, %v576_v23  ;;  %v579_v31 = vadd.f32 %v4220_v28, %v3819_v53  ;;  %v570_v32 = vpop.f32.mrb[11].mxu0  ;;  %v679_v33 = vpop.f32.mrb[11].mxu1  ;;  %v5060_v40 = vadd.s32 %v4989_v43, %v375_v21 }
 0x10b   : > { %v706_v34 = vadd.f32 %v4228_v61, %v694_v30  ;;  %590 = vst.msk [vmem:[#allocation2 + $0x40] sm:$0xff] %vm5980_vm0, %v568_v27  ;;  %v697_v35 = vld [vmem:[#allocation2 + $0x31] sm:$0xff]  ;;  %v571_v36 = vadd.f32 %v3819_v53, %v570_v32  ;;  %v376_v30 = vadd.s32 88, %v4981_v26 }
 0x10c   : > { %593 = vst.msk [vmem:[#allocation2 + $0x58] sm:$0xff] %vm5980_vm0, %v579_v31  ;;  %v709_v37 = vadd.f32 %v4231_v3, %v697_v35  ;;  %v695_v38 = vld [vmem:[#allocation2 + $0x21] sm:$0xff]  ;;  %v696_v39 = vld [vmem:[#allocation2 + $0x29] sm:$0xff]  ;;  %v373_v35 = vadd.s32 64, %v4981_v26  ;;  %vm414_vm8 = vcmp.lt.s32.totalorder %v5060_v40, 200  ;;  %vm6018_vm9 = vcmp.ge.s32.totalorder %v5060_v40, 0 }
 0x10d   : > { %718 = vst.msk [vmem:[#allocation2 + $0x19] sm:$0xff] %vm5980_vm0, %v706_v34  ;;  %591 = vst.msk [vmem:[#allocation2 + $0x48] sm:$0xff] %vm5980_vm0, %v571_v36  ;;  %v707_v41 = vadd.f32 %v695_v38, %v660_v6  ;;  %v708_v42 = vadd.f32 %v696_v39, %v663_v12  ;;  %v369_v6 = vadd.s32 32, %v4981_v26  ;;  %v5052_v34 = vadd.s32 %v4989_v43, %v372_v18  ;;  %v4626_v40 = vld [vmem:[%s5974_s4 + $0x28] sm:$0xff]  }
 0x10e   : > { %721 = vst.msk [vmem:[#allocation2 + $0x31] sm:$0xff] %vm5980_vm0, %v709_v37  ;;  %v828_v1 = vld [vmem:[#allocation2 + $0x10] sm:$0xff]  ;;  %v827_v10 = vld [vmem:[#allocation2 + $0x8] sm:$0xff]  ;;  %v374_v39 = vadd.s32 72, %v4981_v26  ;;  %v5096_v56 = vadd.s32 %v4989_v43, %v373_v35  ;;  %v5099_v57 = vadd.s32 %v4989_v43, %v376_v30 }
 0x10f   : > { %719 = vst.msk [vmem:[#allocation2 + $0x21] sm:$0xff] %vm5980_vm0, %v707_v41  ;;  %720 = vst.msk [vmem:[#allocation2 + $0x29] sm:$0xff] %vm5980_vm0, %v708_v42  ;;  %v4243_v45 = vpop.f32.mrb[12].mxu0  ;;  %v5043_v24 = vadd.s32 %v4989_v43, %v369_v6 }
 0x110   : > { %v779_v47 = vpop.f32.mrb[13].mxu0  ;;  %v854_v53 = vrot.slane %v4243_v45, 1 }
 0x111   : > { %v4999_v49 = vpop.f32.mrb[14].mxu0  ;;  %v851_v60 = vrot.slane %v779_v47, 1  ;;  %vm396_vm14 = vcmp.ge.s32.totalorder %v5043_v24, 0  ;;  %vm408_vm4 = vcmp.lt.s32.totalorder %v5043_v24, 200 }
 0x112   : > { %v698_v51 = vld [vmem:[#allocation2 + $0x39] sm:$0xff]  ;;  %v856_v54 = vrot.slane %v4999_v49, 1  ;;  %v782_v55 = vpop.f32.mrb[15].mxu0  ;;  %vm5128_vm5 = vmand %vm396_vm14, %vm408_vm4  ;;  %vm415_vm4 = vcmp.lt.s32.totalorder %v5099_v57, 200 }
 0x113   : > { %v702_v58 = vld [vmem:[#allocation2 + $0x59] sm:$0x7f]  ;;  %v710_v59 = vadd.f32 %v4971_v9, %v698_v51  ;;  %v701_v61 = vld [vmem:[#allocation2 + $0x51] sm:$0xff]  ;;  %v852_v62 = vrot.slane %v782_v55, 1  ;;  %v826_v9 = vld [vmem:[#allocation2] sm:$0xff] }
 0x114   : > { %v713_v0 = vadd.f32 %v4235_v22, %v701_v61  ;;  %v857_v2 = vsel %vm5979_vm1, %v854_v53, %v856_v54  ;;  %v699_v3 = vld [vmem:[#allocation2 + $0x41] sm:$0xff]  ;;  %v714_v4 = vadd.f32 %v4236_v29, %v702_v58  ;;  %v700_v5 = vld [vmem:[#allocation2 + $0x49] sm:$0xff]  ;;  %v5047_v29 = vadd.s32 %v4989_v43, %v370_v16  ;;  %v829_v31 = vld [vmem:[#allocation2 + $0x18] sm:$0xff] }
 0x115   : > { %722 = vst.msk [vmem:[#allocation2 + $0x39] sm:$0xff] %vm5980_vm0, %v710_v59  ;;  %v888_v7 = vadd.f32 %v857_v2, %v828_v1  ;;  %v711_v8 = vadd.f32 %v699_v3, %v676_v25  ;;  %v853_v11 = vsel %vm5979_vm1, %v851_v60, %v852_v62  ;;  %v855_v12 = vsel %vm5979_vm1, %v852_v62, %v854_v53 }
 0x116   : > { %725 = vst.msk [vmem:[#allocation2 + $0x51] sm:$0xff] %vm5980_vm0, %v713_v0  ;;  %v886_v13 = vadd.f32 %v853_v11, %v826_v9  ;;  %v887_v14 = vadd.f32 %v855_v12, %v827_v10  ;;  %v712_v15 = vadd.f32 %v700_v5, %v679_v33  ;;  %v832_v37 = vld [vmem:[#allocation2 + $0x30] sm:$0xff]  ;;  %v830_v42 = vld [vmem:[#allocation2 + $0x20] sm:$0xff]  ;;  %v831_v44 = vld [vmem:[#allocation2 + $0x28] sm:$0xff]  ;;  %vm397_vm11 = vcmp.ge.s32.totalorder %v5047_v29, 0 }
 0x117   : > { %727 = vst.msk [vmem:[#allocation2 + $0x59] sm:$0x7f] %vm5978_vm2, %v714_v4  ;;  %v4247_v17 = vpop.f32.mrb[16].mxu0  ;;  %vm409_vm6 = vcmp.lt.s32.totalorder %v5047_v29, 200  ;;  %v5107_v60 = vadd.s32 %v4989_v43, %v374_v39  ;;  %v6007_v12 = vmov 0 }
 0x118   : > { %900 = vst.msk [vmem:[#allocation2 + $0x10] sm:$0xff] %vm5980_vm0, %v888_v7  ;;  %723 = vst.msk [vmem:[#allocation2 + $0x41] sm:$0xff] %vm5980_vm0, %v711_v8  ;;  %v795_v20 = vpop.f32.mrb[17].mxu0  ;;  %v862_v25 = vrot.slane %v4247_v17, 1  ;;  %v6008_v12 = vsel %vm5128_vm5, 4294967295, %v6007_v12  ;;  %v6009_v17 = vmov 0 }
 0x119   : > { %898 = vst.msk [vmem:[#allocation2] sm:$0xff] %vm5980_vm0, %v886_v13  ;;  %899 = vst.msk [vmem:[#allocation2 + $0x8] sm:$0xff] %vm5980_vm0, %v887_v14  ;;  %v858_v22 = vrot.slane %v795_v20, 1  ;;  %v5038_v23 = vpop.f32.mrb[18].mxu0 }
 0x11a   : > { %724 = vst.msk [vmem:[#allocation2 + $0x49] sm:$0xff] %vm5980_vm0, %v712_v15  ;;  %v864_v27 = vrot.slane %v5038_v23, 1  ;;  %v798_v28 = vpop.f32.mrb[19].mxu0  ;;  %vm5138_vm10 = vmand %vm397_vm11, %vm409_vm6  ;;  %vm6011_vm11 = vcmp.ge.s32.totalorder %v5029_v19, 0  ;;  %vm413_vm6 = vcmp.lt.s32.totalorder %v5107_v60, 200 }
 0x11b   : > { %v859_v32 = vsel %vm5979_vm1, %v856_v54, %v858_v22  ;;  %v860_v33 = vrot.slane %v798_v28, 1  ;;  %v6010_v17 = vsel %vm5138_vm10, 4294967295, %v6009_v17  ;;  %vm5154_vm14 = vmand %vm6011_vm11, %vm410_vm12  ;;  %vm412_vm12 = vcmp.lt.s32.totalorder %v5096_v56, 200 }
 0x11c   : > { %v889_v36 = vadd.f32 %v859_v32, %v829_v31  ;;  %v865_v38 = vsel %vm5979_vm1, %v862_v25, %v864_v27  ;;  %v833_v7 = vld [vmem:[#allocation2 + $0x38] sm:$0xff]  ;;  %v6012_v31 = vmov 0  ;;  %vm6014_vm11 = vcmp.lt.s32.totalorder %v5052_v34, 200 }
 0x11d   : > { %v892_v41 = vadd.f32 %v865_v38, %v832_v37  ;;  %v861_v45 = vsel %vm5979_vm1, %v858_v22, %v860_v33  ;;  %v863_v46 = vsel %vm5979_vm1, %v860_v33, %v862_v25  ;;  %v6013_v31 = vsel %vm5154_vm14, 4294967295, %v6012_v31 }
 0x11e   : > { %901 = vst.msk [vmem:[#allocation2 + $0x18] sm:$0xff] %vm5980_vm0, %v889_v36  ;;  %v890_v26 = vadd.f32 %v861_v45, %v830_v42  ;;  %v891_v49 = vadd.f32 %v863_v46, %v831_v44  ;;  %v837_v9 = vld [vmem:[#allocation2 + $0x58] sm:$0x7f]  ;;  %v6016_v44 = vmov 0  ;;  %v6019_v46 = vmov 0 }
 0x11f   : > { %904 = vst.msk [vmem:[#allocation2 + $0x30] sm:$0xff] %vm5980_vm0, %v892_v41  ;;  %v4251_v50 = vpop.f32.mrb[20].mxu0  ;;  %v912_v55 = vld [vmem:[#allocation2 + $0x10] sm:$0xff]  ;;  %v834_v20 = vld [vmem:[#allocation2 + $0x40] sm:$0xff] }
 0x120   : > { %v910_v53 = vld [vmem:[#allocation2] sm:$0xff]  ;;  %902 = vst.msk [vmem:[#allocation2 + $0x20] sm:$0xff] %vm5980_vm0, %v890_v26  ;;  %903 = vst.msk [vmem:[#allocation2 + $0x28] sm:$0xff] %vm5980_vm0, %v891_v49  ;;  %v811_v48 = vpop.f32.mrb[21].mxu0  ;;  %v911_v58 = vld [vmem:[#allocation2 + $0x8] sm:$0xff]  ;;  %v870_v2 = vrot.slane %v4251_v50, 1 }
 0x121   : > { %v946_v59 = vsel %vm5068_vm13, %v910_v53, 0.0  ;;  %v866_v61 = vrot.slane %v811_v48, 1  ;;  %v4252_v62 = vpop.f32.mrb[22].mxu0  ;;  %v947_v0 = vsel %vm5078_vm15, %v911_v58, 0.0  ;;  %v948_v6 = vsel %vm5089_vm7, %v912_v55, 0.0  ;;  %v836_v13 = vld [vmem:[#allocation2 + $0x50] sm:$0xff] }
 0x122   : > { %v958_v1 = vmul.f32 0.01, %v946_v59  ;;  %v872_v3 = vrot.slane %v4252_v62, 1  ;;  %v814_v4 = vpop.f32.mrb[23].mxu0  ;;  %v959_v5 = vmul.f32 0.01, %v947_v0 }
 0x123   : > { %v867_v8 = vsel %vm5979_vm1, %v864_v27, %v866_v61  ;;  %v868_v10 = vrot.slane %v814_v4, 1  ;;  %v835_v21 = vld [vmem:[#allocation2 + $0x48] sm:$0xff]  ;;  %v960_v25 = vmul.f32 0.01, %v948_v6  ;;  %v6022_v50 = vmov 0 }
 0x124   : > { %v970_v11 = vmax.f32 %v946_v59, %v958_v1  ;;  %v893_v63 = vadd.f32 %v867_v8, %v833_v7  ;;  %v873_v14 = vsel %vm5979_vm1, %v870_v2, %v872_v3  ;;  %v897_v15 = vadd.f32 %v872_v3, %v837_v9 }
 0x125   : > { %v971_v16 = vmax.f32 %v947_v0, %v959_v5  ;;  %v896_v18 = vadd.f32 %v873_v14, %v836_v13  ;;  %v869_v22 = vsel %vm5979_vm1, %v866_v61, %v868_v10  ;;  %v871_v23 = vsel %vm5979_vm1, %v868_v10, %v870_v2  ;;  %v913_v24 = vld [vmem:[#allocation2 + $0x18] sm:$0xff] }
 0x126   : > { %905 = vst.msk [vmem:[#allocation2 + $0x38] sm:$0xff] %vm5980_vm0, %v893_v63  ;;  %v894_v27 = vadd.f32 %v869_v22, %v834_v20  ;;  %v895_v28 = vadd.f32 %v871_v23, %v835_v21  ;;  %v949_v30 = vsel %vm5117_vm3, %v913_v24, 0.0  ;;  %v916_v36 = vld [vmem:[#allocation2 + $0x30] sm:$0xff]  ;;  %v972_v38 = vmax.f32 %v948_v6, %v960_v25  ;;  %v4628_v21 = vld [vmem:[%s5972_s2 + $0x48] sm:$0xff]   ;;  %v4630_v22 = vld [vmem:[%s5972_s2 + $0x38] sm:$0xff]  }
 0x127   : > { %909 = vst.msk [vmem:[#allocation2 + $0x58] sm:$0x7f] %vm5978_vm2, %v897_v15  ;;  %v5146_v29 = vpack.c.bf16 %v971_v16, %v970_v11  ;;  %v961_v32 = vmul.f32 0.01, %v949_v30  ;;  %v914_v33 = vld [vmem:[#allocation2 + $0x20] sm:$0xff]  ;;  %v915_v35 = vld [vmem:[#allocation2 + $0x28] sm:$0xff] }
 0x128   : > { %908 = vst.msk [vmem:[#allocation2 + $0x50] sm:$0xff] %vm5980_vm0, %v896_v18  ;;  %906 = vst.msk [vmem:[#allocation2 + $0x40] sm:$0xff] %vm5980_vm0, %v894_v27  ;;  %v950_v19 = vsel %vm5128_vm5, %v914_v33, 0.0  ;;  %v951_v37 = vsel %vm5138_vm10, %v915_v35, 0.0  ;;  %vm6015_vm2 = vcmp.ge.s32.totalorder %v5052_v34, 0  ;;  %v952_v45 = vsel %vm5154_vm14, %v916_v36, 0.0 }
 0x129   : > { %907 = vst.msk [vmem:[#allocation2 + $0x48] sm:$0xff] %vm5980_vm0, %v895_v28  ;;  %4257 = vmatprep.mubr.msk.bf16.mxu1 %vm5980_vm0, %v5146_v29  ;;  %4273 = vmatprep.mubr.msk.bf16.mxu0 %vm5980_vm0, %v5146_v29  ;;  %v973_v39 = vmax.f32 %v949_v30, %v961_v32  ;;  %v962_v41 = vmul.f32 0.01, %v950_v19  ;;  %v963_v42 = vmul.f32 0.01, %v951_v37  ;;  %vm5176_vm1 = vmand %vm6015_vm2, %vm6014_vm11  ;;  %vm403_vm0 = vcmp.ge.s32.totalorder %v5099_v57, 0 }
 0x12a   : > { %v6017_v44 = vsel %vm5176_vm1, 4294967295, %v6016_v44  ;;  %vm5188_vm10 = vmand %vm6018_vm9, %vm414_vm8  ;;  %vm6021_vm2 = vcmp.ge.s32.totalorder %v5096_v56, 0  ;;  %vm6024_vm14 = vcmp.ge.s32.totalorder %v5107_v60, 0  ;;  %v6025_v53 = vmov 0  ;;  %v4627_v18 = vld [vmem:[%s5972_s2 + $0x40] sm:$0xff]   ;;  %v4629_v20 = vld [vmem:[%s5972_s2 + $0x30] sm:$0xff]  }
 0x12b   : > { %v6020_v46 = vsel %vm5188_vm10, 4294967295, %v6019_v46  ;;  %v983_v34 = vpack.c.bf16 %v973_v39, %v972_v38  ;;  %v974_v26 = vmax.f32 %v950_v19, %v962_v41  ;;  %v975_v49 = vmax.f32 %v951_v37, %v963_v42  ;;  %vm5194_vm11 = vmand %vm6021_vm2, %vm412_vm12  ;;  %4301 = vmatprep.subr.bf16.mxu0 %v4627_v18  ;;  %v5254_v23 = vld [vmem:[%s5972_s2 + $0x50] sm:$0xff]   ;;  %v3852_v24 = vld [vmem:[%s5975_s5] ss:$0 sm:$0xff] }
 0x12c   : > { %v6023_v50 = vsel %vm5194_vm11, 4294967295, %v6022_v50  ;;  %vm5200_vm5 = vmand %vm6024_vm14, %vm413_vm6  ;;  %vm6027_vm8 = vcmask 261120   ;;  %v964_v57 = vmul.f32 0.01, %v952_v45  ;;  %v6029_v48 = vmov 0 }
 0x12d   : > { %v6026_v53 = vsel %vm5200_vm5, 4294967295, %v6025_v53  ;;  %4258 = vmatmul.mubr.msk.bf16.vlgmr.msra.gmra.mrb[12].mxu1 %vm6027_vm8, %v983_v34  ;;  %vm6028_vm9 = vmmov %vm6027_vm8  ;;  %v984_v55 = vpack.c.bf16 %v975_v49, %v974_v26  ;;  %v917_v56 = vld [vmem:[#allocation2 + $0x38] sm:$0xff] }
 0x12e   : > { %4274 = vmatmul.mubr.msk.bf16.vlgmr.msra.gmra.mrb[24].mxu0 %vm6028_vm9, %v983_v34  ;;  %vm5209_vm12 = vmand %vm403_vm0, %vm415_vm4  ;;  %v921_v58 = vld [vmem:[#allocation2 + $0x58] sm:$0xff]  ;;  %4286 = vmatpush3.bf16.msra.mxu1 %v4961_v52  ;;  %v953_v59 = vsel %vm5176_vm1, %v917_v56, 0.0  ;;  %v976_v4 = vmax.f32 %v952_v45, %v964_v57 }
 0x12f   : > { %v6030_v48 = vsel %vm5209_vm12, 4294967295, %v6029_v48  ;;  %v920_v60 = vld [vmem:[#allocation2 + $0x50] sm:$0xff]  ;;  %vm6031_vm14 = vmmov %vm6027_vm8  ;;  %v965_v61 = vmul.f32 0.01, %v953_v59  ;;  %v918_v62 = vld [vmem:[#allocation2 + $0x40] sm:$0xff]  ;;  %4287 = vmatprep.subr.bf16.mxu1 %v4626_v40  ;;  %v957_v3 = vsel %vm5209_vm12, %v921_v58, 0.0  ;;  %4302 = vmatpush3.bf16.msra.mxu0 %v4627_v18 }
 0x130   : > { %4261 = vmatprep.mubr.msk.bf16.mxu1 %vm6031_vm14, %v984_v55  ;;  %vm6032_vm6 = vmmov %vm6027_vm8  ;;  %v919_v0 = vld [vmem:[#allocation2 + $0x48] sm:$0xff]  ;;  %v956_v1 = vsel %vm5188_vm10, %v920_v60, 0.0  ;;  %v954_v2 = vsel %vm5194_vm11, %v918_v62, 0.0  ;;  %v969_v63 = vmul.f32 0.01, %v957_v3  ;;  %4303 = vmatprep.subr.bf16.mxu0 %v4628_v21 }
 0x131   : > { %4277 = vmatprep.mubr.msk.bf16.mxu0 %vm6032_vm6, %v984_v55  ;;  %v955_v52 = vsel %vm5200_vm5, %v919_v0, 0.0  ;;  %v977_v5 = vmax.f32 %v953_v59, %v965_v61  ;;  %v966_v6 = vmul.f32 0.01, %v954_v2  ;;  %v968_v8 = vmul.f32 0.01, %v956_v1  ;;  %vm6033_vm0 = vmmov %vm6032_vm6 }
 0x132   : > { %v967_v7 = vmul.f32 0.01, %v955_v52  ;;  %4288 = vmatpush3.bf16.msra.mxu1 %v4626_v40  ;;  %vm6034_vm4 = vmmov %vm6033_vm0  ;;  %v981_v15 = vmax.f32 %v957_v3, %v969_v63 }
 0x133   : > { %v985_v9 = vpack.c.bf16 %v977_v5, %v976_v4  ;;  %v978_v10 = vmax.f32 %v954_v2, %v966_v6  ;;  %vm6035_vm2 = vmmov %vm6033_vm0  ;;  %v980_v14 = vmax.f32 %v956_v1, %v968_v8  ;;  %4317 = vmatprep.subr.bf16.mxu1 %v4629_v20  ;;  %4304 = vmatpush3.bf16.msra.mxu0 %v4628_v21 }
 0x134   : > { %v979_v11 = vmax.f32 %v955_v52, %v967_v7  ;;  %vm6036_vm8 = vmmov %vm6033_vm0  ;;  %4333 = vmatprep.subr.bf16.mxu0 %v5254_v23 }
 0x135   : > { %4262 = vmatmul.mubr.msk.bf16.gmra.mrb[16].mxu1 %vm6033_vm0, %v985_v9  ;;  %v987_v16 = vpack.c.bf16 %v981_v15, %v980_v14  ;;  %vm6037_vm9 = vmmov %vm6033_vm0 }
 0x136   : > { %4278 = vmatmul.mubr.msk.bf16.gmra.mrb[28].mxu0 %vm6034_vm4, %v985_v9  ;;  %v986_v13 = vpack.c.bf16 %v979_v11, %v978_v10  ;;  %vm6038_vm14 = vmmov %vm6033_vm0 }
 0x137   : > { %vm6039_vm6 = vmmov %vm6033_vm0 }
 0x138   : > { %4265 = vmatprep.mubr.msk.bf16.mxu1 %vm6035_vm2, %v986_v13  ;;  %4281 = vmatprep.mubr.msk.bf16.mxu0 %vm6036_vm8, %v986_v13  ;;  %vm6040_vm5 = vmmov %vm6033_vm0 }
 0x139   : > { %vm6041_vm4 = vmmov %vm6033_vm0 }
 0x13a   : > { %vm6042_vm11 = vmmov %vm6033_vm0 }
 0x13b   : > { %vm6043_vm2 = vmmov %vm6033_vm0 }
 0x13c   : > { %vm6046_vm8 = vmmov %vm6033_vm0 }
 0x13d   : > { %4266 = vmatmul.mubr.msk.bf16.gmra.mrb[20].mxu1 %vm6037_vm9, %v987_v16  ;;  %vm6047_vm9 = vmmov %vm6033_vm0 }
 0x13e   : > { %4282 = vmatmul.mubr.msk.bf16.gmra.mrb[32].mxu0 %vm6038_vm14, %v987_v16  ;;  %4289 = vmatprep.mubr.msk.bf16.mxu1 %vm6039_vm6, %v5146_v29  ;;  %vm6048_vm14 = vmmov %vm6033_vm0 }
 0x13f   : > { %vm6049_vm6 = vmmov %vm6033_vm0 }
 0x145   : > { %4290 = vmatmul.mubr.msk.bf16.vlgmr.msra.gmra.mrb[24].mxu1 %vm6040_vm5, %v983_v34  ;;  %vm6044_vm5 = vmmov %vm6033_vm0 }
 0x146   : > { %4293 = vmatprep.mubr.msk.bf16.mxu1 %vm6033_vm0, %v984_v55  ;;  %4318 = vmatpush3.bf16.msra.mxu1 %v4629_v20 }
 0x147   : > { %4319 = vmatprep.subr.bf16.mxu1 %v4630_v22 }
 0x14a   : > { %4320 = vmatpush3.bf16.msra.mxu1 %v4630_v22 }
 0x14d   : > { %4294 = vmatmul.mubr.msk.bf16.gmra.mrb[28].mxu1 %vm6041_vm4, %v985_v9  ;;  %vm6050_vm4 = vmmov %vm6033_vm0 }
 0x14e   : > { %4297 = vmatprep.mubr.msk.bf16.mxu1 %vm6042_vm11, %v986_v13  ;;  %vm6045_vm11 = vmmov %vm6033_vm0 }
 0x155   : > { %4298 = vmatmul.mubr.msk.bf16.gmra.mrb[32].mxu1 %vm6043_vm2, %v987_v16  ;;  %vm6051_vm2 = vmmov %vm6033_vm0 }
 0x200   : > { %v4259_v25 = vpop.f32.mrb[12].mxu1 }
 0x201   : > { %v4275_v27 = vpop.f32.mrb[24].mxu0  ;;  %v1073_v28 = vadd.f32 %v4259_v25, %v3852_v24  ;;  %v1064_v29 = vpop.f32.mrb[13].mxu1 }
 0x202   : > { %v1173_v30 = vpop.f32.mrb[25].mxu0  ;;  %v1065_v32 = vadd.f32 %v3852_v24, %v1064_v29  ;;  %v4260_v33 = vpop.f32.mrb[14].mxu1 }
 0x203   : > { %v4276_v35 = vpop.f32.mrb[26].mxu0  ;;  %1113 = vst.msk [vmem:[#allocation2 + $0x10] sm:$0xff] %vm6044_vm5, %v1073_v28  ;;  %v1076_v36 = vadd.f32 %v4260_v33, %v3852_v24  ;;  %v1067_v19 = vpop.f32.mrb[15].mxu1  ;;  %vm6052_vm5 = vmmov %vm6033_vm0 }
 0x204   : > { %v1176_v37 = vpop.f32.mrb[27].mxu0  ;;  %1111 = vst.msk [vmem:[#allocation2] sm:$0xff] %vm6045_vm11, %v1065_v32  ;;  %v1068_v38 = vadd.f32 %v3852_v24, %v1067_v19  ;;  %vm6053_vm11 = vmmov %vm6033_vm0 }
 0x205   : > { %1114 = vst.msk [vmem:[#allocation2 + $0x18] sm:$0xff] %vm6046_vm8, %v1076_v36  ;;  %vm6054_vm8 = vmmov %vm6033_vm0 }
 0x206   : > { %1112 = vst.msk [vmem:[#allocation2 + $0x8] sm:$0xff] %vm6047_vm9, %v1068_v38  ;;  %vm6055_vm9 = vmmov %vm6033_vm0 }
 0x208   : > { %v4263_v39 = vpop.f32.mrb[16].mxu1 }
 0x209   : > { %v4279_v41 = vpop.f32.mrb[28].mxu0  ;;  %v1089_v42 = vadd.f32 %v4263_v39, %v3852_v24  ;;  %v1080_v45 = vpop.f32.mrb[17].mxu1 }
 0x20a   : > { %v1189_v34 = vpop.f32.mrb[29].mxu0  ;;  %v1081_v26 = vadd.f32 %v3852_v24, %v1080_v45  ;;  %v4264_v49 = vpop.f32.mrb[18].mxu1 }
 0x20b   : > { %v4280_v40 = vpop.f32.mrb[30].mxu0  ;;  %1117 = vst.msk [vmem:[#allocation2 + $0x30] sm:$0xff] %vm6048_vm14, %v1089_v42  ;;  %v1092_v55 = vadd.f32 %v4264_v49, %v3852_v24  ;;  %v1083_v56 = vpop.f32.mrb[19].mxu1  ;;  %vm6056_vm14 = vmmov %vm6033_vm0 }
 0x20c   : > { %v1192_v57 = vpop.f32.mrb[31].mxu0  ;;  %v1222_v58 = vld [vmem:[#allocation2 + $0x11] sm:$0xff]  ;;  %1115 = vst.msk [vmem:[#allocation2 + $0x20] sm:$0xff] %vm6049_vm6, %v1081_v26  ;;  %v1084_v59 = vadd.f32 %v3852_v24, %v1083_v56  ;;  %vm6057_vm6 = vmmov %vm6033_vm0 }
 0x20d   : > { %v1234_v60 = vadd.f32 %v4275_v27, %v1222_v58  ;;  %v1220_v61 = vld [vmem:[#allocation2 + $0x1] sm:$0xff]  ;;  %v1221_v62 = vld [vmem:[#allocation2 + $0x9] sm:$0xff]  ;;  %1118 = vst.msk [vmem:[#allocation2 + $0x38] sm:$0xff] %vm6033_vm0, %v1092_v55 }
 0x20e   : > { %v1232_v0 = vadd.f32 %v1220_v61, %v1173_v30  ;;  %v1233_v1 = vadd.f32 %v1221_v62, %v1176_v37  ;;  %1116 = vst.msk [vmem:[#allocation2 + $0x28] sm:$0xff] %vm6050_vm4, %v1084_v59  ;;  %vm6058_vm4 = vmmov %vm6033_vm0 }
 0x20f   : > { %1246 = vst.msk [vmem:[#allocation2 + $0x11] sm:$0xff] %vm6051_vm2, %v1234_v60  ;;  %vm6059_vm2 = vmmov %vm6033_vm0 }
 0x210   : > { %1244 = vst.msk [vmem:[#allocation2 + $0x1] sm:$0xff] %vm6052_vm5, %v1232_v0  ;;  %v4267_v2 = vpop.f32.mrb[20].mxu1  ;;  %vm6060_vm5 = vmmov %vm6033_vm0 }
 0x211   : > { %1245 = vst.msk [vmem:[#allocation2 + $0x9] sm:$0xff] %vm6053_vm11, %v1233_v1  ;;  %v4283_v52 = vpop.f32.mrb[32].mxu0  ;;  %v1105_v3 = vadd.f32 %v4267_v2, %v3852_v24  ;;  %v1096_v4 = vpop.f32.mrb[21].mxu1  ;;  %vm6061_vm11 = vcmask 1046528  }
 0x212   : > { %v1205_v5 = vpop.f32.mrb[33].mxu0  ;;  %v1097_v6 = vadd.f32 %v3852_v24, %v1096_v4  ;;  %v4268_v7 = vpop.f32.mrb[22].mxu1 }
 0x213   : > { %v4284_v8 = vpop.f32.mrb[34].mxu0  ;;  %v1223_v9 = vld [vmem:[#allocation2 + $0x19] sm:$0xff]  ;;  %1121 = vst.msk [vmem:[#allocation2 + $0x50] sm:$0xff] %vm6054_vm8, %v1105_v3  ;;  %v1108_v10 = vadd.f32 %v4268_v7, %v3852_v24  ;;  %v1099_v11 = vpop.f32.mrb[23].mxu1  ;;  %vm6062_vm8 = vmmov %vm6033_vm0 }
 0x214   : > { %v1208_v63 = vpop.f32.mrb[35].mxu0  ;;  %v1235_v13 = vadd.f32 %v4276_v35, %v1223_v9  ;;  %v1226_v14 = vld [vmem:[#allocation2 + $0x31] sm:$0xff]  ;;  %1119 = vst.msk [vmem:[#allocation2 + $0x40] sm:$0xff] %vm6055_vm9, %v1097_v6  ;;  %v1100_v15 = vadd.f32 %v3852_v24, %v1099_v11  ;;  %vm6063_vm9 = vmmov %vm6061_vm11 }
 0x215   : > { %v1238_v16 = vadd.f32 %v4279_v41, %v1226_v14  ;;  %v1224_v18 = vld [vmem:[#allocation2 + $0x21] sm:$0xff]  ;;  %v1225_v20 = vld [vmem:[#allocation2 + $0x29] sm:$0xff]  ;;  %1122 = vst.msk [vmem:[#allocation2 + $0x58] sm:$0xff] %vm6056_vm14, %v1108_v10  ;;  %vm6064_vm14 = vcmask 260096  }
 0x216   : > { %1247 = vst.msk [vmem:[#allocation2 + $0x19] sm:$0xff] %vm6057_vm6, %v1235_v13  ;;  %v1236_v21 = vadd.f32 %v1224_v18, %v1189_v34  ;;  %v1237_v22 = vadd.f32 %v1225_v20, %v1192_v57  ;;  %vm6065_vm6 = vmmov %vm6063_vm9 }
 0x217   : > { %1120 = vst.msk [vmem:[#allocation2 + $0x48] sm:$0xff] %vm6033_vm0, %v1100_v15  ;;  %v1354_v56 = vld [vmem:[#allocation2] sm:$0xff] }
 0x218   : > { %1250 = vst.msk [vmem:[#allocation2 + $0x31] sm:$0xff] %vm6058_vm4, %v1238_v16  ;;  %v4291_v25 = vpop.f32.mrb[24].mxu1  ;;  %v1356_v42 = vld [vmem:[#allocation2 + $0x10] sm:$0xff]  ;;  %vm6066_vm4 = vmmov %vm6033_vm0 }
 0x219   : > { %1248 = vst.msk [vmem:[#allocation2 + $0x21] sm:$0xff] %vm6059_vm2, %v1236_v21  ;;  %v1307_v27 = vpop.f32.mrb[25].mxu1  ;;  %v1381_v29 = vrot.slane %v4291_v25, 1  ;;  %vm6067_vm2 = vmmov %vm6033_vm0 }
 0x21a   : > { %1249 = vst.msk [vmem:[#allocation2 + $0x29] sm:$0xff] %vm6060_vm5, %v1237_v22  ;;  %v4292_v24 = vpop.f32.mrb[26].mxu1  ;;  %v1378_v36 = vrot.slane %v1307_v27, 1  ;;  %vm6068_vm5 = vmmov %vm6033_vm0 }
 0x21b   : > { %v1227_v28 = vld [vmem:[#allocation2 + $0x39] sm:$0xff]  ;;  %v1383_v30 = vrot.slane %v4292_v24, 1  ;;  %v1310_v32 = vpop.f32.mrb[27].mxu1 }
 0x21c   : > { %v1239_v33 = vadd.f32 %v4280_v40, %v1227_v28  ;;  %v1231_v35 = vld [vmem:[#allocation2 + $0x59] sm:$0x7f]  ;;  %v1379_v19 = vrot.slane %v1310_v32, 1  ;;  %v1230_v37 = vld [vmem:[#allocation2 + $0x51] sm:$0xff]  ;;  %v1355_v40 = vld [vmem:[#allocation2 + $0x8] sm:$0xff] }
 0x21d   : > { %v1243_v38 = vadd.f32 %v4284_v8, %v1231_v35  ;;  %v1384_v45 = vsel %vm6061_vm11, %v1381_v29, %v1383_v30  ;;  %v1242_v34 = vadd.f32 %v4283_v52, %v1230_v37  ;;  %vm6069_vm11 = vmmov %vm6033_vm0  ;;  %v1357_v4 = vld [vmem:[#allocation2 + $0x18] sm:$0xff]  ;;  %v4651_v32 = vld [vmem:[%s4906_s29] sm:$0xff] }
 0x21e   : > { %v1228_v39 = vld [vmem:[#allocation2 + $0x41] sm:$0xff]  ;;  %v1229_v41 = vld [vmem:[#allocation2 + $0x49] sm:$0xff]  ;;  %1251 = vst.msk [vmem:[#allocation2 + $0x39] sm:$0xff] %vm6062_vm8, %v1239_v33  ;;  %v1415_v55 = vadd.f32 %v1384_v45, %v1356_v42  ;;  %v1380_v57 = vsel %vm6063_vm9, %v1378_v36, %v1379_v19  ;;  %v1382_v58 = vsel %vm6065_vm6, %v1379_v19, %v1381_v29  ;;  %vm6070_vm8 = vmmov %vm6033_vm0 }
 0x21f   : > { %v1240_v26 = vadd.f32 %v1228_v39, %v1205_v5  ;;  %v1241_v49 = vadd.f32 %v1229_v41, %v1208_v63  ;;  %1255 = vst.msk [vmem:[#allocation2 + $0x59] sm:$0x7f] %vm6064_vm14, %v1243_v38  ;;  %v1413_v59 = vadd.f32 %v1380_v57, %v1354_v56  ;;  %v1414_v60 = vadd.f32 %v1382_v58, %v1355_v40  ;;  %vm6071_vm9 = vmmov %vm6065_vm6  ;;  %v4652_v35 = vld [vmem:[%s4906_s29 + $0x10] sm:$0xff]  ;;  %v4653_v41 = vld [vmem:[%s4906_s29 + $0x8] sm:$0xff] }
 0x220   : > { %1254 = vst.msk [vmem:[#allocation2 + $0x51] sm:$0xff] %vm6033_vm0, %v1242_v34  ;;  %v4295_v61 = vpop.f32.mrb[28].mxu1  ;;  %vm6072_vm14 = vmmov %vm6065_vm6  ;;  %v1358_v11 = vld [vmem:[#allocation2 + $0x20] sm:$0xff] }
 0x221   : > { %1252 = vst.msk [vmem:[#allocation2 + $0x41] sm:$0xff] %vm6066_vm4, %v1240_v26  ;;  %v1323_v62 = vpop.f32.mrb[29].mxu1  ;;  %v1389_v2 = vrot.slane %v4295_v61, 1  ;;  %v1360_v8 = vld [vmem:[#allocation2 + $0x30] sm:$0xff]  ;;  %v1359_v63 = vld [vmem:[#allocation2 + $0x28] sm:$0xff]  ;;  %vm6073_vm0 = vmmov %vm6065_vm6 }
 0x222   : > { %1253 = vst.msk [vmem:[#allocation2 + $0x49] sm:$0xff] %vm6067_vm2, %v1241_v49  ;;  %v1385_v0 = vrot.slane %v1323_v62, 1  ;;  %v4296_v1 = vpop.f32.mrb[30].mxu1  ;;  %vm6074_vm4 = vmmov %vm6067_vm2 }
 0x223   : > { %1427 = vst.msk [vmem:[#allocation2 + $0x10] sm:$0xff] %vm6068_vm5, %v1415_v55  ;;  %v1391_v52 = vrot.slane %v4296_v1, 1  ;;  %v1326_v3 = vpop.f32.mrb[31].mxu1  ;;  %vm6075_vm5 = vmmov %vm6067_vm2 }
 0x224   : > { %1425 = vst.msk [vmem:[#allocation2] sm:$0xff] %vm6069_vm11, %v1413_v59  ;;  %v1386_v5 = vsel %vm6071_vm9, %v1383_v30, %v1385_v0  ;;  %v1387_v6 = vrot.slane %v1326_v3, 1  ;;  %vm6076_vm11 = vmmov %vm6067_vm2 }
 0x225   : > { %1426 = vst.msk [vmem:[#allocation2 + $0x8] sm:$0xff] %vm6070_vm8, %v1414_v60  ;;  %v1416_v7 = vadd.f32 %v1386_v5, %v1357_v4  ;;  %v1392_v9 = vsel %vm6072_vm14, %v1389_v2, %v1391_v52  ;;  %v1361_v45 = vld [vmem:[#allocation2 + $0x38] sm:$0xff]  ;;  %vm6077_vm8 = vmmov %vm6073_vm0 }
 0x226   : > { %v1419_v10 = vadd.f32 %v1392_v9, %v1360_v8  ;;  %v1388_v13 = vsel %vm6065_vm6, %v1385_v0, %v1387_v6  ;;  %v1390_v14 = vsel %vm6073_vm0, %v1387_v6, %v1389_v2  ;;  %vm6078_vm9 = vmmov %vm6073_vm0  ;;  %v4654_v8 = vld [vmem:[%s4906_s29 + $0x18] sm:$0xff] }
 0x227   : > { %1428 = vst.msk [vmem:[#allocation2 + $0x18] sm:$0xff] %vm6074_vm4, %v1416_v7  ;;  %v1417_v15 = vadd.f32 %v1388_v13, %v1358_v11  ;;  %v1418_v16 = vadd.f32 %v1390_v14, %v1359_v63  ;;  %v1365_v37 = vld [vmem:[#allocation2 + $0x58] sm:$0x7f]  ;;  %vm6079_vm14 = vmmov %vm6073_vm0  ;;  %vm6082_vm4 = vcmask 260096  }
 0x228   : > { %1431 = vst.msk [vmem:[#allocation2 + $0x30] sm:$0xff] %vm6067_vm2, %v1419_v10  ;;  %v4299_v18 = vpop.f32.mrb[32].mxu1  ;;  %v1362_v61 = vld [vmem:[#allocation2 + $0x40] sm:$0xff]  ;;  %vm6080_vm6 = vmmov %vm6073_vm0 }
 0x229   : > { %1429 = vst.msk [vmem:[#allocation2 + $0x20] sm:$0xff] %vm6075_vm5, %v1417_v15  ;;  %v1339_v22 = vpop.f32.mrb[33].mxu1  ;;  %v1397_v19 = vrot.slane %v4299_v18, 1  ;;  %v1364_v57 = vld [vmem:[#allocation2 + $0x50] sm:$0xff]  ;;  %v1363_v62 = vld [vmem:[#allocation2 + $0x48] sm:$0xff]  ;;  %vm6081_vm0 = vmmov %vm6067_vm2 }
 0x22a   : > { %v1439_v21 = vld [vmem:[#allocation2 + $0x10] sm:$0xff]  ;;  %1430 = vst.msk [vmem:[#allocation2 + $0x28] sm:$0xff] %vm6076_vm11, %v1418_v16  ;;  %v1393_v28 = vrot.slane %v1339_v22, 1  ;;  %v4300_v29 = vpop.f32.mrb[34].mxu1  ;;  %vm6083_vm2 = vmmov %vm6081_vm0  ;;  %v4655_v18 = vld [vmem:[%s4906_s29 + $0x20] sm:$0xff] }
 0x22b   : > { %v1437_v20 = vld [vmem:[#allocation2] sm:$0xff]  ;;  %v1451_v24 = vsel %vm5089_vm7, %v1439_v21, 0.0  ;;  %v1399_v38 = vrot.slane %v4300_v29, 1  ;;  %v1342_v39 = vpop.f32.mrb[35].mxu1  ;;  %vm6084_vm5 = vmmov %vm6081_vm0  ;;  %v4656_v21 = vld [vmem:[%s4906_s29 + $0x28] sm:$0xff] }
 0x22c   : > { %v1438_v25 = vld [vmem:[#allocation2 + $0x8] sm:$0xff]  ;;  %v1449_v27 = vsel %vm5068_vm13, %v1437_v20, 0.0  ;;  %v5308_v36 = vadd.f32 %v4652_v35, %v1451_v24  ;;  %v1394_v34 = vsel %vm6077_vm8, %v1391_v52, %v1393_v28  ;;  %v1395_v26 = vrot.slane %v1342_v39, 1  ;;  %vm6085_vm11 = vmmov %vm6081_vm0  ;;  %v4657_v29 = vld [vmem:[%s4906_s29 + $0x30] sm:$0xff] }
 0x22d   : > { %v1450_v30 = vsel %vm5078_vm15, %v1438_v25, 0.0  ;;  %v5305_v33 = vadd.f32 %v4651_v32, %v1449_v27  ;;  %v1420_v56 = vadd.f32 %v1394_v34, %v1361_v45  ;;  %v1400_v40 = vsel %vm6078_vm9, %v1397_v19, %v1399_v38 }
 0x22e   : > { %v5311_v42 = vadd.f32 %v4653_v41, %v1450_v30  ;;  %v1475_v55 = vmul.f32 0.01, %v5308_v36  ;;  %v1424_v58 = vadd.f32 %v1399_v38, %v1365_v37  ;;  %v1423_v60 = vadd.f32 %v1400_v40, %v1364_v57  ;;  %v1440_v52 = vld [vmem:[#allocation2 + $0x18] sm:$0xff] }
 0x22f   : > { %v1473_v49 = vmul.f32 0.01, %v5305_v33  ;;  %v1396_v0 = vsel %vm6079_vm14, %v1393_v28, %v1395_v26  ;;  %v1398_v1 = vsel %vm6080_vm6, %v1395_v26, %v1397_v19  ;;  %1432 = vst.msk [vmem:[#allocation2 + $0x38] sm:$0xff] %vm6081_vm0, %v1420_v56  ;;  %v1452_v6 = vsel %vm5117_vm3, %v1440_v52, 0.0  ;;  %v1443_v7 = vld [vmem:[#allocation2 + $0x30] sm:$0xff]  ;;  %vm6089_vm6 = vmmov %vm6081_vm0  ;;  %v4632_v41 = vld [vmem:[%s5972_s2 + $0x58] sm:$0xff]  }
 0x230   : > { %v1474_v59 = vmul.f32 0.01, %v5311_v42  ;;  %1436 = vst.msk [vmem:[#allocation2 + $0x58] sm:$0x7f] %vm6082_vm4, %v1424_v58  ;;  %v1421_v3 = vadd.f32 %v1396_v0, %v1362_v61  ;;  %v1422_v4 = vadd.f32 %v1398_v1, %v1363_v62  ;;  %v5328_v9 = vadd.f32 %v4654_v8, %v1452_v6  ;;  %v1441_v10 = vld [vmem:[#allocation2 + $0x20] sm:$0xff]  ;;  %vm6090_vm4 = vmmov %vm6081_vm0  ;;  %v4659_v61 = vld [vmem:[%s4919_s11 + $0x18] sm:$0xff] }
 0x231   : > { %v1485_v2 = vmax.f32 %v5305_v33, %v1473_v49  ;;  %1435 = vst.msk [vmem:[#allocation2 + $0x50] sm:$0xff] %vm6083_vm2, %v1423_v60  ;;  %v1442_v11 = vld [vmem:[#allocation2 + $0x28] sm:$0xff]  ;;  %vm6086_vm8 = vnez %v6008_v12  ;;  %vm6087_vm9 = vnez %v6010_v17  ;;  %vm6088_vm14 = vnez %v6013_v31  ;;  %vm6091_vm2 = vmmov %vm6081_vm0  ;;  %v4658_v49 = vld [vmem:[%s4906_s29 + $0x38] sm:$0xff] }
 0x232   : > { %v1486_v5 = vmax.f32 %v5311_v42, %v1474_v59  ;;  %1433 = vst.msk [vmem:[#allocation2 + $0x40] sm:$0xff] %vm6084_vm5, %v1421_v3  ;;  %v1453_v13 = vsel %vm6086_vm8, %v1441_v10, 0.0  ;;  %v1454_v14 = vsel %vm6087_vm9, %v1442_v11, 0.0  ;;  %v1455_v15 = vsel %vm6088_vm14, %v1443_v7, 0.0  ;;  %v4660_v1 = vld [vmem:[%s4919_s11] sm:$0xff]  ;;  %v4661_v52 = vld [vmem:[%s4919_s11 + $0x8] sm:$0xff] }
 0x233   : > { %1434 = vst.msk [vmem:[#allocation2 + $0x48] sm:$0xff] %vm6085_vm11, %v1422_v4  ;;  %v1476_v16 = vmul.f32 0.01, %v5328_v9  ;;  %v5342_v20 = vadd.f32 %v4655_v18, %v1453_v13  ;;  %v5345_v22 = vadd.f32 %v4656_v21, %v1454_v14  ;;  %v1487_v25 = vmax.f32 %v5308_v36, %v1475_v55  ;;  %v4662_v3 = vld [vmem:[%s4919_s11 + $0x10] sm:$0xff] }
 0x234   : > { %v5332_v63 = vpack.c.bf16 %v1486_v5, %v1485_v2  ;;  %v5356_v30 = vadd.f32 %v4657_v29, %v1455_v15  ;;  %vm6092_vm5 = vnez %v6023_v50  ;;  %vm6093_vm11 = vnez %v6026_v53  ;;  %v5433_v29 = vld [vmem:[%s5974_s4 + $0x50] sm:$0xff]  }
 0x235   : > { %v1488_v27 = vmax.f32 %v5328_v9, %v1476_v16  ;;  %v1477_v24 = vmul.f32 0.01, %v5342_v20  ;;  %v1478_v28 = vmul.f32 0.01, %v5345_v22 }
 0x236   : > { %4305 = vmatprep.mubr.msk.bf16.mxu0 %vm6089_vm6, %v5332_v63  ;;  %4321 = vmatprep.mubr.msk.bf16.mxu1 %vm6081_vm0, %v5332_v63  ;;  %v1444_v37 = vld [vmem:[#allocation2 + $0x38] sm:$0xff]  ;;  %v1479_v56 = vmul.f32 0.01, %v5356_v30  ;;  %vm6094_vm6 = vmmov %vm6081_vm0 }
 0x237   : > { %v1498_v32 = vpack.c.bf16 %v1488_v27, %v1487_v25  ;;  %v1489_v35 = vmax.f32 %v5342_v20, %v1477_v24  ;;  %v1490_v19 = vmax.f32 %v5345_v22, %v1478_v28  ;;  %v1448_v38 = vld [vmem:[#allocation2 + $0x58] sm:$0xff]  ;;  %v1456_v39 = vsel %vm5176_vm1, %v1444_v37, 0.0  ;;  %v4633_v27 = vld [vmem:[%s5974_s4 + $0x40] sm:$0xff]   ;;  %v4635_v24 = vld [vmem:[%s5974_s4 + $0x30] sm:$0xff]  }
 0x238   : > { %v1447_v45 = vld [vmem:[#allocation2 + $0x50] sm:$0xff]  ;;  %v1460_v34 = vsel %vm5209_vm12, %v1448_v38, 0.0  ;;  %v5370_v55 = vadd.f32 %v4658_v49, %v1456_v39  ;;  %v1491_v5 = vmax.f32 %v5356_v30, %v1479_v56  ;;  %vm6098_vm12 = vmmov %vm6081_vm0  ;;  %4349 = vmatprep.subr.bf16.mxu1 %v4633_v27  ;;  %v4636_v28 = vld [vmem:[%s5974_s4 + $0x38] sm:$0xff]  }
 0x239   : > { %4306 = vmatmul.mubr.msk.bf16.vlgmr.msra.gmra.mrb[36].mxu0 %vm6090_vm4, %v1498_v32  ;;  %4322 = vmatmul.mubr.msk.bf16.vlgmr.msra.gmra.mrb[36].mxu1 %vm6091_vm2, %v1498_v32  ;;  %v1499_v26 = vpack.c.bf16 %v1490_v19, %v1489_v35  ;;  %v1445_v57 = vld [vmem:[#allocation2 + $0x40] sm:$0xff]  ;;  %v1459_v58 = vsel %vm5188_vm10, %v1447_v45, 0.0  ;;  %v5381_v62 = vadd.f32 %v4659_v61, %v1460_v34  ;;  %vm6095_vm4 = vmmov %vm6081_vm0 }
 0x23a   : > { %v1446_v40 = vld [vmem:[#allocation2 + $0x48] sm:$0xff]  ;;  %4334 = vmatpush3.bf16.msra.mxu0 %v5254_v23  ;;  %v1457_v59 = vsel %vm6092_vm5, %v1445_v57, 0.0  ;;  %v1480_v0 = vmul.f32 0.01, %v5370_v55  ;;  %v5393_v4 = vadd.f32 %v4662_v3, %v1459_v58  ;;  %vm6096_vm2 = vmmov %vm6081_vm0  ;;  %4350 = vmatpush3.bf16.msra.mxu1 %v4633_v27 }
 0x23b   : > { %v1458_v60 = vsel %vm6093_vm11, %v1446_v40, 0.0  ;;  %4309 = vmatprep.mubr.msk.bf16.mxu0 %vm6094_vm6, %v1499_v26  ;;  %4325 = vmatprep.mubr.msk.bf16.mxu1 %vm6081_vm0, %v1499_v26  ;;  %v5387_v2 = vadd.f32 %v4660_v1, %v1457_v59  ;;  %v1484_v10 = vmul.f32 0.01, %v5381_v62  ;;  %vm6097_vm6 = vmmov %vm6081_vm0 }
 0x23c   : > { %v5390_v23 = vadd.f32 %v4661_v52, %v1458_v60  ;;  %4335 = vmatprep.subr.bf16.mxu0 %v4632_v41  ;;  %v1492_v6 = vmax.f32 %v5370_v55, %v1480_v0  ;;  %v1483_v15 = vmul.f32 0.01, %v5393_v4  ;;  %vm6099_vm11 = vmmov %vm6081_vm0 }
 0x23d   : > { %v1481_v7 = vmul.f32 0.01, %v5387_v2  ;;  %v1496_v21 = vmax.f32 %v5381_v62, %v1484_v10  ;;  %vm6100_vm5 = vmmov %vm6081_vm0 }
 0x23e   : > { %v1482_v8 = vmul.f32 0.01, %v5390_v23  ;;  %4336 = vmatpush3.bf16.msra.mxu0 %v4632_v41  ;;  %v1500_v11 = vpack.c.bf16 %v1492_v6, %v1491_v5  ;;  %v1495_v18 = vmax.f32 %v5393_v4, %v1483_v15  ;;  %vm6103_vm10 = vmmov %vm6081_vm0 }
 0x23f   : > { %v1493_v13 = vmax.f32 %v5387_v2, %v1481_v7  ;;  %4365 = vmatprep.subr.bf16.mxu0 %v4635_v24 }
 0x240   : > { %v1494_v14 = vmax.f32 %v5390_v23, %v1482_v8  ;;  %v1502_v25 = vpack.c.bf16 %v1496_v21, %v1495_v18 }
 0x241   : > { %4310 = vmatmul.mubr.msk.bf16.gmra.mrb[40].mxu0 %vm6095_vm4, %v1500_v11  ;;  %4326 = vmatmul.mubr.msk.bf16.gmra.mrb[40].mxu1 %vm6096_vm2, %v1500_v11  ;;  %vm6101_vm4 = vmmov %vm6081_vm0 }
 0x242   : > { %v1501_v16 = vpack.c.bf16 %v1494_v14, %v1493_v13  ;;  %vm6102_vm2 = vmmov %vm6081_vm0 }
 0x244   : > { %4313 = vmatprep.mubr.msk.bf16.mxu0 %vm6097_vm6, %v1501_v16  ;;  %4329 = vmatprep.mubr.msk.bf16.mxu1 %vm6081_vm0, %v1501_v16  ;;  %vm6104_vm6 = vmmov %vm6081_vm0 }
 0x249   : > { %4314 = vmatmul.mubr.msk.bf16.gmra.mrb[44].mxu0 %vm6098_vm12, %v1502_v25  ;;  %4330 = vmatmul.mubr.msk.bf16.gmra.mrb[44].mxu1 %vm6099_vm11, %v1502_v25  ;;  %vm6106_vm12 = vmmov %vm6081_vm0 }
 0x24a   : > { %4337 = vmatprep.mubr.msk.bf16.mxu0 %vm6100_vm5, %v5332_v63  ;;  %v4634_v63 = vld [vmem:[%s5974_s4 + $0x48] sm:$0xff]   ;;  %vm6107_vm5 = vmmov %vm6081_vm0 }
 0x24b   : > { %4351 = vmatprep.subr.bf16.mxu1 %v4634_v63  ;;  %vm6108_vm11 = vmmov %vm6081_vm0 }
 0x24c   : > { %4352 = vmatpush3.bf16.msra.mxu1 %v4634_v63 }
 0x24d   : > { %4381 = vmatprep.subr.bf16.mxu1 %v5433_v29 }
 0x251   : > { %4338 = vmatmul.mubr.msk.bf16.vlgmr.msra.gmra.mrb[48].mxu0 %vm6101_vm4, %v1498_v32  ;;  %v3886_v32 = vld [vmem:[%s5973_s3 + $0x1] ss:$0 sm:$0xff]  ;;  %vm6109_vm4 = vmmov %vm6081_vm0 }
 0x252   : > { %4341 = vmatprep.mubr.msk.bf16.mxu0 %vm6102_vm2, %v1499_v26  ;;  %4366 = vmatpush3.bf16.msra.mxu0 %v4635_v24  ;;  %vm6110_vm2 = vmmov %vm6081_vm0 }
 0x253   : > { %4367 = vmatprep.subr.bf16.mxu0 %v4636_v28 }
 0x256   : > { %4368 = vmatpush3.bf16.msra.mxu0 %v4636_v28 }
 0x259   : > { %4342 = vmatmul.mubr.msk.bf16.gmra.mrb[52].mxu0 %vm6103_vm10, %v1500_v11  ;;  %vm6105_vm10 = vmmov %vm6081_vm0 }
 0x25a   : > { %4345 = vmatprep.mubr.msk.bf16.mxu0 %vm6104_vm6, %v1501_v16  ;;  %vm6111_vm6 = vmmov %vm6081_vm0 }
 0x261   : > { %4346 = vmatmul.mubr.msk.bf16.gmra.mrb[56].mxu0 %vm6081_vm0, %v1502_v25 }
 0x30c   : > { %v4307_v35 = vpop.f32.mrb[36].mxu0  ;;  %v4323_v19 = vpop.f32.mrb[36].mxu1 }
 0x30d   : > { %v1589_v37 = vadd.f32 %v4307_v35, %v3886_v32  ;;  %v1580_v38 = vpop.f32.mrb[37].mxu0  ;;  %v1690_v39 = vpop.f32.mrb[37].mxu1 }
 0x30e   : > { %v1581_v41 = vadd.f32 %v3886_v32, %v1580_v38  ;;  %v4308_v45 = vpop.f32.mrb[38].mxu0  ;;  %v4324_v34 = vpop.f32.mrb[38].mxu1 }
 0x30f   : > { %1629 = vst.msk [vmem:[#allocation2 + $0x10] sm:$0xff] %vm6105_vm10, %v1589_v37  ;;  %v1592_v26 = vadd.f32 %v4308_v45, %v3886_v32  ;;  %v1583_v49 = vpop.f32.mrb[39].mxu0  ;;  %v1693_v56 = vpop.f32.mrb[39].mxu1  ;;  %vm6112_vm10 = vmmov %vm6081_vm0 }
 0x310   : > { %1627 = vst.msk [vmem:[#allocation2] sm:$0xff] %vm6106_vm12, %v1581_v41  ;;  %v1584_v57 = vadd.f32 %v3886_v32, %v1583_v49  ;;  %vm6113_vm12 = vmmov %vm6081_vm0 }
 0x311   : > { %1630 = vst.msk [vmem:[#allocation2 + $0x18] sm:$0xff] %vm6107_vm5, %v1592_v26  ;;  %vm6114_vm5 = vmmov %vm6081_vm0 }
 0x312   : > { %1628 = vst.msk [vmem:[#allocation2 + $0x8] sm:$0xff] %vm6108_vm11, %v1584_v57  ;;  %vm6115_vm11 = vmmov %vm6081_vm0 }
 0x314   : > { %v4311_v40 = vpop.f32.mrb[40].mxu0  ;;  %v4327_v58 = vpop.f32.mrb[40].mxu1 }
 0x315   : > { %v1605_v59 = vadd.f32 %v4311_v40, %v3886_v32  ;;  %v1596_v60 = vpop.f32.mrb[41].mxu0  ;;  %v1706_v61 = vpop.f32.mrb[41].mxu1 }
 0x316   : > { %v1597_v0 = vadd.f32 %v3886_v32, %v1596_v60  ;;  %v4312_v1 = vpop.f32.mrb[42].mxu0  ;;  %v4328_v52 = vpop.f32.mrb[42].mxu1 }
 0x317   : > { %1633 = vst.msk [vmem:[#allocation2 + $0x30] sm:$0xff] %vm6109_vm4, %v1605_v59  ;;  %v1608_v3 = vadd.f32 %v4312_v1, %v3886_v32  ;;  %v1599_v5 = vpop.f32.mrb[43].mxu0  ;;  %v1709_v6 = vpop.f32.mrb[43].mxu1  ;;  %vm6116_vm4 = vmmov %vm6081_vm0 }
 0x318   : > { %v1739_v7 = vld [vmem:[#allocation2 + $0x13] sm:$0xff]  ;;  %1631 = vst.msk [vmem:[#allocation2 + $0x20] sm:$0xff] %vm6110_vm2, %v1597_v0  ;;  %v1600_v8 = vadd.f32 %v3886_v32, %v1599_v5  ;;  %vm6117_vm2 = vmmov %vm6081_vm0 }
 0x319   : > { %v1751_v10 = vadd.f32 %v4323_v19, %v1739_v7  ;;  %v1737_v11 = vld [vmem:[#allocation2 + $0x3] sm:$0xff]  ;;  %v1738_v13 = vld [vmem:[#allocation2 + $0xb] sm:$0xff]  ;;  %1634 = vst.msk [vmem:[#allocation2 + $0x38] sm:$0xff] %vm6111_vm6, %v1608_v3  ;;  %vm6118_vm6 = vmmov %vm6081_vm0 }
 0x31a   : > { %v1749_v14 = vadd.f32 %v1737_v11, %v1690_v39  ;;  %v1750_v15 = vadd.f32 %v1738_v13, %v1693_v56  ;;  %1632 = vst.msk [vmem:[#allocation2 + $0x28] sm:$0xff] %vm6081_vm0, %v1600_v8 }
 0x31b   : > { %1763 = vst.msk [vmem:[#allocation2 + $0x13] sm:$0xff] %vm6112_vm10, %v1751_v10  ;;  %vm6119_vm10 = vmmov %vm6081_vm0 }
 0x31c   : > { %1761 = vst.msk [vmem:[#allocation2 + $0x3] sm:$0xff] %vm6113_vm12, %v1749_v14  ;;  %v4315_v16 = vpop.f32.mrb[44].mxu0  ;;  %v4331_v18 = vpop.f32.mrb[44].mxu1  ;;  %vm6120_vm12 = vmmov %vm6081_vm0 }
 0x31d   : > { %1762 = vst.msk [vmem:[#allocation2 + $0xb] sm:$0xff] %vm6114_vm5, %v1750_v15  ;;  %v1621_v21 = vadd.f32 %v4315_v16, %v3886_v32  ;;  %v1612_v25 = vpop.f32.mrb[45].mxu0  ;;  %v1722_v27 = vpop.f32.mrb[45].mxu1  ;;  %vm6121_vm5 = vmmov %vm6081_vm0 }
 0x31e   : > { %v1613_v63 = vadd.f32 %v3886_v32, %v1612_v25  ;;  %v4316_v24 = vpop.f32.mrb[46].mxu0  ;;  %v4332_v28 = vpop.f32.mrb[46].mxu1 }
 0x31f   : > { %v1740_v35 = vld [vmem:[#allocation2 + $0x1b] sm:$0xff]  ;;  %1637 = vst.msk [vmem:[#allocation2 + $0x50] sm:$0xff] %vm6115_vm11, %v1621_v21  ;;  %v1624_v19 = vadd.f32 %v4316_v24, %v3886_v32  ;;  %v1615_v37 = vpop.f32.mrb[47].mxu0  ;;  %v1725_v38 = vpop.f32.mrb[47].mxu1  ;;  %vm1896_vm11 = vcmask 1044480  }
 0x320   : > { %v1752_v39 = vadd.f32 %v4324_v34, %v1740_v35  ;;  %v1743_v41 = vld [vmem:[#allocation2 + $0x33] sm:$0xff]  ;;  %1635 = vst.msk [vmem:[#allocation2 + $0x40] sm:$0xff] %vm6116_vm4, %v1613_v63  ;;  %v1616_v45 = vadd.f32 %v3886_v32, %v1615_v37  ;;  %vm1772_vm4 = vcmask 258048  }
 0x321   : > { %v1755_v26 = vadd.f32 %v4327_v58, %v1743_v41  ;;  %v1741_v49 = vld [vmem:[#allocation2 + $0x23] sm:$0xff]  ;;  %v1742_v56 = vld [vmem:[#allocation2 + $0x2b] sm:$0xff]  ;;  %1638 = vst.msk [vmem:[#allocation2 + $0x58] sm:$0xff] %vm6117_vm2, %v1624_v19  ;;  %vm6122_vm2 = vmmov %vm6081_vm0 }
 0x322   : > { %1764 = vst.msk [vmem:[#allocation2 + $0x1b] sm:$0xff] %vm6118_vm6, %v1752_v39  ;;  %v1753_v57 = vadd.f32 %v1741_v49, %v1706_v61  ;;  %v1754_v40 = vadd.f32 %v1742_v56, %v1709_v6  ;;  %vm6123_vm6 = vmmov %vm6081_vm0 }
 0x323   : > { %1636 = vst.msk [vmem:[#allocation2 + $0x48] sm:$0xff] %vm6081_vm0, %v1616_v45  ;;  %v1872_v63 = vld [vmem:[#allocation2] sm:$0xff] }
 0x324   : > { %1767 = vst.msk [vmem:[#allocation2 + $0x33] sm:$0xff] %vm6119_vm10, %v1755_v26  ;;  %v4339_v34 = vpop.f32.mrb[48].mxu0  ;;  %v1874_v13 = vld [vmem:[#allocation2 + $0x10] sm:$0xff]  ;;  %v1873_v24 = vld [vmem:[#allocation2 + $0x8] sm:$0xff]  ;;  %vm6124_vm10 = vmmov %vm6081_vm0 }
 0x325   : > { %1765 = vst.msk [vmem:[#allocation2 + $0x23] sm:$0xff] %vm6120_vm12, %v1753_v57  ;;  %v1825_v59 = vpop.f32.mrb[49].mxu0  ;;  %v1900_v60 = vrot.slane %v4339_v34, 3  ;;  %vm6125_vm12 = vmmov %vm6081_vm0 }
 0x326   : > { %1766 = vst.msk [vmem:[#allocation2 + $0x2b] sm:$0xff] %vm6121_vm5, %v1754_v40  ;;  %v4340_v32 = vpop.f32.mrb[50].mxu0  ;;  %v1897_v61 = vrot.slane %v1825_v59, 3  ;;  %vm6126_vm5 = vmmov %vm6081_vm0 }
 0x327   : > { %v1744_v58 = vld [vmem:[#allocation2 + $0x3b] sm:$0xff]  ;;  %v1902_v0 = vrot.slane %v4340_v32, 3  ;;  %v1828_v1 = vpop.f32.mrb[51].mxu0 }
 0x328   : > { %v1756_v3 = vadd.f32 %v4328_v52, %v1744_v58  ;;  %v1748_v5 = vld [vmem:[#allocation2 + $0x5b] sm:$0x1f]  ;;  %v1898_v6 = vrot.slane %v1828_v1, 3  ;;  %v1747_v7 = vld [vmem:[#allocation2 + $0x53] sm:$0xff] }
 0x329   : > { %v1760_v8 = vadd.f32 %v4332_v28, %v1748_v5  ;;  %v1903_v14 = vsel %vm1896_vm11, %v1900_v60, %v1902_v0  ;;  %v1759_v15 = vadd.f32 %v4331_v18, %v1747_v7  ;;  %v1875_v26 = vld [vmem:[#allocation2 + $0x18] sm:$0xff] }
 0x32a   : > { %v1745_v10 = vld [vmem:[#allocation2 + $0x43] sm:$0xff]  ;;  %v1746_v11 = vld [vmem:[#allocation2 + $0x4b] sm:$0xff]  ;;  %1768 = vst.msk [vmem:[#allocation2 + $0x3b] sm:$0xff] %vm6122_vm2, %v1756_v3  ;;  %v1934_v25 = vadd.f32 %v1903_v14, %v1874_v13  ;;  %v1899_v52 = vsel %vm1896_vm11, %v1897_v61, %v1898_v6  ;;  %v1901_v35 = vsel %vm1896_vm11, %v1898_v6, %v1900_v60  ;;  %vm6127_vm2 = vmmov %vm6081_vm0 }
 0x32b   : > { %v1757_v16 = vadd.f32 %v1745_v10, %v1722_v27  ;;  %v1758_v21 = vadd.f32 %v1746_v11, %v1725_v38  ;;  %1773 = vst.msk [vmem:[#allocation2 + $0x5b] sm:$0x1f] %vm1772_vm4, %v1760_v8  ;;  %v1932_v28 = vadd.f32 %v1899_v52, %v1872_v63  ;;  %v1933_v18 = vadd.f32 %v1901_v35, %v1873_v24 }
 0x32c   : > { %1771 = vst.msk [vmem:[#allocation2 + $0x53] sm:$0xff] %vm6123_vm6, %v1759_v15  ;;  %v4343_v27 = vpop.f32.mrb[52].mxu0  ;;  %v1876_v32 = vld [vmem:[#allocation2 + $0x20] sm:$0xff]  ;;  %vm6128_vm6 = vmmov %vm6081_vm0 }
 0x32d   : > { %1769 = vst.msk [vmem:[#allocation2 + $0x43] sm:$0xff] %vm6081_vm0, %v1757_v16  ;;  %v1841_v19 = vpop.f32.mrb[53].mxu0  ;;  %v1908_v39 = vrot.slane %v4343_v27, 3  ;;  %v1878_v40 = vld [vmem:[#allocation2 + $0x30] sm:$0xff]  ;;  %v1877_v58 = vld [vmem:[#allocation2 + $0x28] sm:$0xff] }
 0x32e   : > { %1770 = vst.msk [vmem:[#allocation2 + $0x4b] sm:$0xff] %vm6124_vm10, %v1758_v21  ;;  %v1904_v37 = vrot.slane %v1841_v19, 3  ;;  %v4344_v38 = vpop.f32.mrb[54].mxu0  ;;  %vm6129_vm10 = vmmov %vm6081_vm0 }
 0x32f   : > { %1946 = vst.msk [vmem:[#allocation2 + $0x10] sm:$0xff] %vm6125_vm12, %v1934_v25  ;;  %v1910_v41 = vrot.slane %v4344_v38, 3  ;;  %v1844_v45 = vpop.f32.mrb[55].mxu0  ;;  %vm6130_vm12 = vmmov %vm6081_vm0 }
 0x330   : > { %1944 = vst.msk [vmem:[#allocation2] sm:$0xff] %vm6126_vm5, %v1932_v28  ;;  %v1905_v49 = vsel %vm1896_vm11, %v1902_v0, %v1904_v37  ;;  %v1906_v56 = vrot.slane %v1844_v45, 3  ;;  %vm6131_vm5 = vmmov %vm6081_vm0 }
 0x331   : > { %1945 = vst.msk [vmem:[#allocation2 + $0x8] sm:$0xff] %vm6127_vm2, %v1933_v18  ;;  %v1935_v57 = vadd.f32 %v1905_v49, %v1875_v26  ;;  %v1911_v34 = vsel %vm1896_vm11, %v1908_v39, %v1910_v41  ;;  %v1879_v24 = vld [vmem:[#allocation2 + $0x38] sm:$0xff]  ;;  %vm6132_vm2 = vmmov %vm6081_vm0 }
 0x332   : > { %v1938_v59 = vadd.f32 %v1911_v34, %v1878_v40  ;;  %v1907_v60 = vsel %vm1896_vm11, %v1904_v37, %v1906_v56  ;;  %v1909_v1 = vsel %vm1896_vm11, %v1906_v56, %v1908_v39 }
 0x333   : > { %1947 = vst.msk [vmem:[#allocation2 + $0x18] sm:$0xff] %vm6128_vm6, %v1935_v57  ;;  %v1936_v3 = vadd.f32 %v1907_v60, %v1876_v32  ;;  %v1937_v5 = vadd.f32 %v1909_v1, %v1877_v58  ;;  %v1883_v28 = vld [vmem:[#allocation2 + $0x58] sm:$0x1f]  ;;  %vm6133_vm6 = vmmov %vm6081_vm0 }
 0x334   : > { %1950 = vst.msk [vmem:[#allocation2 + $0x30] sm:$0xff] %vm6081_vm0, %v1938_v59  ;;  %v4347_v61 = vpop.f32.mrb[56].mxu0  ;;  %v1880_v49 = vld [vmem:[#allocation2 + $0x40] sm:$0xff] }
 0x335   : > { %1948 = vst.msk [vmem:[#allocation2 + $0x20] sm:$0xff] %vm6129_vm10, %v1936_v3  ;;  %v1857_v7 = vpop.f32.mrb[57].mxu0  ;;  %v1916_v16 = vrot.slane %v4347_v61, 3  ;;  %v1882_v37 = vld [vmem:[#allocation2 + $0x50] sm:$0xff]  ;;  %v1881_v56 = vld [vmem:[#allocation2 + $0x48] sm:$0xff]  ;;  %vm6135_vm10 = vmmov %vm6081_vm0 }
 0x336   : > { %v1958_v6 = vld [vmem:[#allocation2 + $0x10] sm:$0xff]  ;;  %1949 = vst.msk [vmem:[#allocation2 + $0x28] sm:$0xff] %vm6130_vm12, %v1937_v5  ;;  %v1912_v11 = vrot.slane %v1857_v7, 3  ;;  %v4348_v13 = vpop.f32.mrb[58].mxu0  ;;  %vm6137_vm12 = vmmov %vm6081_vm0 }
 0x337   : > { %v1956_v0 = vld [vmem:[#allocation2] sm:$0xff]  ;;  %v1918_v21 = vrot.slane %v4348_v13, 3  ;;  %v1860_v25 = vpop.f32.mrb[59].mxu0  ;;  %v1970_v52 = vsel %vm5089_vm7, %v1958_v6, 0.0 }
 0x338   : > { %v1957_v8 = vld [vmem:[#allocation2 + $0x8] sm:$0xff]  ;;  %v1968_v10 = vsel %vm5068_vm13, %v1956_v0, 0.0  ;;  %v1913_v35 = vsel %vm1896_vm11, %v1910_v41, %v1912_v11  ;;  %v1914_v18 = vrot.slane %v1860_v25, 3  ;;  %v1982_v59 = vmul.f32 0.01, %v1970_v52 }
 0x339   : > { %v1969_v14 = vsel %vm5078_vm15, %v1957_v8, 0.0  ;;  %v1980_v15 = vmul.f32 0.01, %v1968_v10  ;;  %v1939_v19 = vadd.f32 %v1913_v35, %v1879_v24  ;;  %v1919_v38 = vsel %vm1896_vm11, %v1916_v16, %v1918_v21 }
 0x33a   : > { %v1981_v63 = vmul.f32 0.01, %v1969_v14  ;;  %v1943_v39 = vadd.f32 %v1918_v21, %v1883_v28  ;;  %v1942_v26 = vadd.f32 %v1919_v38, %v1882_v37  ;;  %v1915_v57 = vsel %vm1896_vm11, %v1912_v11, %v1914_v18  ;;  %v1959_v34 = vld [vmem:[#allocation2 + $0x18] sm:$0xff] }
 0x33b   : > { %v1992_v27 = vmax.f32 %v1968_v10, %v1980_v15  ;;  %v1917_v40 = vsel %vm1896_vm11, %v1914_v18, %v1916_v16  ;;  %1951 = vst.msk [vmem:[#allocation2 + $0x38] sm:$0xff] %vm6131_vm5, %v1939_v19  ;;  %v1940_v41 = vadd.f32 %v1915_v57, %v1880_v49  ;;  %v1971_v60 = vsel %vm5117_vm3, %v1959_v34, 0.0  ;;  %v1962_v61 = vld [vmem:[#allocation2 + $0x30] sm:$0xff]  ;;  %vm6134_vm11 = vmmov %vm6081_vm0  ;;  %v4638_v21 = vld [vmem:[%s5974_s4 + $0x58] sm:$0xff]  }
 0x33c   : > { %v1993_v45 = vmax.f32 %v1969_v14, %v1981_v63  ;;  %1955 = vst.msk [vmem:[#allocation2 + $0x58] sm:$0x1f] %vm1772_vm4, %v1943_v39  ;;  %v1941_v32 = vadd.f32 %v1917_v40, %v1881_v56  ;;  %v1983_v1 = vmul.f32 0.01, %v1971_v60  ;;  %v1960_v3 = vld [vmem:[#allocation2 + $0x20] sm:$0xff]  ;;  %v1994_v7 = vmax.f32 %v1970_v52, %v1982_v59  ;;  %vm6136_vm4 = vmmov %vm6081_vm0 }
 0x33d   : > { %1954 = vst.msk [vmem:[#allocation2 + $0x50] sm:$0xff] %vm6132_vm2, %v1942_v26  ;;  %v1961_v5 = vld [vmem:[#allocation2 + $0x28] sm:$0xff]  ;;  %v1972_v0 = vsel %vm6086_vm8, %v1960_v3, 0.0  ;;  %v1974_v13 = vsel %vm6088_vm14, %v1962_v61, 0.0  ;;  %vm6138_vm5 = vmmov %vm6081_vm0  ;;  %v4641_v61 = vld [vmem:[%s5972_s2 + $0x60] sm:$0xff]  }
 0x33e   : > { %v2004_v58 = vpack.c.bf16 %v1993_v45, %v1992_v27  ;;  %1952 = vst.msk [vmem:[#allocation2 + $0x40] sm:$0xff] %vm6133_vm6, %v1940_v41  ;;  %v1973_v6 = vsel %vm6087_vm9, %v1961_v5, 0.0  ;;  %v1995_v8 = vmax.f32 %v1971_v60, %v1983_v1  ;;  %v1984_v10 = vmul.f32 0.01, %v1972_v0  ;;  %vm6139_vm2 = vmmov %vm6081_vm0  ;;  %v4639_v5 = vld [vmem:[%s5972_s2 + $0x70] sm:$0xff]  }
 0x33f   : > { %1953 = vst.msk [vmem:[#allocation2 + $0x48] sm:$0xff] %vm6134_vm11, %v1941_v32  ;;  %v1985_v11 = vmul.f32 0.01, %v1973_v6  ;;  %v1986_v52 = vmul.f32 0.01, %v1974_v13  ;;  %vm6140_vm6 = vnez %v6020_v46  ;;  %vm6141_vm11 = vnez %v6023_v50  ;;  %4397 = vmatprep.subr.bf16.mxu0 %v4639_v5 }
 0x340   : > { %4353 = vmatprep.mubr.msk.bf16.mxu1 %vm6081_vm0, %v2004_v58  ;;  %4369 = vmatprep.mubr.msk.bf16.mxu0 %vm6135_vm10, %v2004_v58  ;;  %v2005_v14 = vpack.c.bf16 %v1995_v8, %v1994_v7  ;;  %v1996_v15 = vmax.f32 %v1972_v0, %v1984_v10  ;;  %vm6142_vm0 = vnez %v6026_v53  ;;  %vm6143_vm10 = vnez %v6030_v48  ;;  %v4642_v0 = vld [vmem:[%s5972_s2 + $0x68] sm:$0xff]   ;;  %v3924_v7 = vld [vmem:[%s5975_s5 + $0x1] ss:$0 sm:$0xff] }
 0x341   : > { %v1997_v16 = vmax.f32 %v1973_v6, %v1985_v11  ;;  %v1998_v45 = vmax.f32 %v1974_v13, %v1986_v52  ;;  %v5547_v6 = vld [vmem:[%s5972_s2 + $0x80] sm:$0xff]  }
 0x342   : > { %4354 = vmatmul.mubr.msk.bf16.vlgmr.msra.gmra.mrb[48].mxu1 %vm6136_vm4, %v2005_v14  ;;  %4370 = vmatmul.mubr.msk.bf16.vlgmr.msra.gmra.mrb[60].mxu0 %vm6137_vm12, %v2005_v14  ;;  %v1963_v63 = vld [vmem:[#allocation2 + $0x38] sm:$0xff]  ;;  %vm6144_vm4 = vmmov %vm6139_vm2 }
 0x343   : > { %v2006_v25 = vpack.c.bf16 %v1997_v16, %v1996_v15  ;;  %v1967_v24 = vld [vmem:[#allocation2 + $0x58] sm:$0xff]  ;;  %4382 = vmatpush3.bf16.msra.mxu1 %v5433_v29  ;;  %v1975_v35 = vsel %vm5176_vm1, %v1963_v63, 0.0  ;;  %vm6145_vm12 = vmmov %vm6139_vm2  ;;  %4398 = vmatpush3.bf16.msra.mxu0 %v4639_v5 }
 0x344   : > { %v1966_v28 = vld [vmem:[#allocation2 + $0x50] sm:$0xff]  ;;  %v1987_v18 = vmul.f32 0.01, %v1975_v35  ;;  %4383 = vmatprep.subr.bf16.mxu1 %v4638_v21  ;;  %v1979_v39 = vsel %vm6143_vm10, %v1967_v24, 0.0 }
 0x345   : > { %4357 = vmatprep.mubr.msk.bf16.mxu1 %vm6138_vm5, %v2006_v25  ;;  %4373 = vmatprep.mubr.msk.bf16.mxu0 %vm6139_vm2, %v2006_v25  ;;  %v1964_v27 = vld [vmem:[#allocation2 + $0x40] sm:$0xff]  ;;  %v1978_v37 = vsel %vm6140_vm6, %v1966_v28, 0.0  ;;  %v1991_v41 = vmul.f32 0.01, %v1979_v39  ;;  %vm6146_vm5 = vmmov %vm6139_vm2 }
 0x346   : > { %v1965_v19 = vld [vmem:[#allocation2 + $0x48] sm:$0xff]  ;;  %v1976_v38 = vsel %vm6141_vm11, %v1964_v27, 0.0  ;;  %v1999_v26 = vmax.f32 %v1975_v35, %v1987_v18  ;;  %v1990_v57 = vmul.f32 0.01, %v1978_v37 }
 0x347   : > { %v1977_v29 = vsel %vm6142_vm0, %v1965_v19, 0.0  ;;  %v1988_v49 = vmul.f32 0.01, %v1976_v38  ;;  %4384 = vmatpush3.bf16.msra.mxu1 %v4638_v21  ;;  %v2003_v1 = vmax.f32 %v1979_v39, %v1991_v41  ;;  %vm6147_vm0 = vmmov %vm6139_vm2 }
 0x348   : > { %v1989_v56 = vmul.f32 0.01, %v1977_v29  ;;  %v2007_v40 = vpack.c.bf16 %v1999_v26, %v1998_v45  ;;  %v2002_v60 = vmax.f32 %v1978_v37, %v1990_v57  ;;  %vm6148_vm11 = vmmov %vm6147_vm0  ;;  %4413 = vmatprep.subr.bf16.mxu1 %v4641_v61 }
 0x349   : > { %v2000_v34 = vmax.f32 %v1976_v38, %v1988_v49  ;;  %vm6149_vm6 = vmmov %vm6147_vm0 }
 0x34a   : > { %v2001_v59 = vmax.f32 %v1977_v29, %v1989_v56  ;;  %4358 = vmatmul.mubr.msk.bf16.gmra.mrb[52].mxu1 %vm6144_vm4, %v2007_v40  ;;  %4374 = vmatmul.mubr.msk.bf16.gmra.mrb[64].mxu0 %vm6145_vm12, %v2007_v40  ;;  %v2009_v3 = vpack.c.bf16 %v2003_v1, %v2002_v60  ;;  %vm6150_vm10 = vmmov %vm6147_vm0 }
 0x34b   : > { %vm6151_vm1 = vmmov %vm6147_vm0 }
 0x34c   : > { %v2008_v32 = vpack.c.bf16 %v2001_v59, %v2000_v34  ;;  %vm6152_vm4 = vmmov %vm6147_vm0 }
 0x34d   : > { %vm6153_vm12 = vmmov %vm6147_vm0 }
 0x34e   : > { %4361 = vmatprep.mubr.msk.bf16.mxu1 %vm6146_vm5, %v2008_v32  ;;  %4377 = vmatprep.mubr.msk.bf16.mxu0 %vm6139_vm2, %v2008_v32  ;;  %vm6154_vm5 = vmmov %vm6147_vm0 }
 0x34f   : > { %vm6159_vm2 = vmmov %vm6147_vm0 }
 0x352   : > { %4362 = vmatmul.mubr.msk.bf16.gmra.mrb[56].mxu1 %vm6147_vm0, %v2009_v3  ;;  %4378 = vmatmul.mubr.msk.bf16.gmra.mrb[68].mxu0 %vm6148_vm11, %v2009_v3  ;;  %vm6157_vm11 = vmmov %vm6147_vm0 }
 0x353   : > { %4385 = vmatprep.mubr.msk.bf16.mxu1 %vm6149_vm6, %v2004_v58  ;;  %v4640_v58 = vld [vmem:[%s5972_s2 + $0x78] sm:$0xff]   ;;  %vm6156_vm6 = vmmov %vm6147_vm0 }
 0x354   : > { %4399 = vmatprep.subr.bf16.mxu0 %v4640_v58 }
 0x355   : > { %4400 = vmatpush3.bf16.msra.mxu0 %v4640_v58 }
 0x356   : > { %4429 = vmatprep.subr.bf16.mxu0 %v5547_v6 }
 0x35a   : > { %4386 = vmatmul.mubr.msk.bf16.vlgmr.msra.gmra.mrb[60].mxu1 %vm6150_vm10, %v2005_v14  ;;  %vm6158_vm10 = vmmov %vm6147_vm0 }
 0x35b   : > { %4389 = vmatprep.mubr.msk.bf16.mxu1 %vm6151_vm1, %v2006_v25  ;;  %4414 = vmatpush3.bf16.msra.mxu1 %v4641_v61  ;;  %vm6155_vm1 = vmmov %vm6147_vm0 }
 0x35c   : > { %4415 = vmatprep.subr.bf16.mxu1 %v4642_v0 }
 0x35f   : > { %4416 = vmatpush3.bf16.msra.mxu1 %v4642_v0 }
 0x362   : > { %4390 = vmatmul.mubr.msk.bf16.gmra.mrb[64].mxu1 %vm6152_vm4, %v2007_v40  ;;  %vm6160_vm4 = vmmov %vm6147_vm0 }
 0x363   : > { %4393 = vmatprep.mubr.msk.bf16.mxu1 %vm6153_vm12, %v2008_v32  ;;  %vm6161_vm12 = vmmov %vm6147_vm0 }
 0x36a   : > { %4394 = vmatmul.mubr.msk.bf16.gmra.mrb[68].mxu1 %vm6154_vm5, %v2009_v3  ;;  %vm6162_vm5 = vmmov %vm6147_vm0 }
 0x415   : > { %v4355_v8 = vpop.f32.mrb[48].mxu1  ;;  %v4371_v10 = vpop.f32.mrb[60].mxu0 }
 0x416   : > { %v2096_v11 = vadd.f32 %v4355_v8, %v3924_v7  ;;  %v2087_v13 = vpop.f32.mrb[49].mxu1  ;;  %v2197_v14 = vpop.f32.mrb[61].mxu0 }
 0x417   : > { %v2088_v15 = vadd.f32 %v3924_v7, %v2087_v13  ;;  %v4356_v16 = vpop.f32.mrb[50].mxu1  ;;  %v4372_v21 = vpop.f32.mrb[62].mxu0 }
 0x418   : > { %2136 = vst.msk [vmem:[#allocation2 + $0x10] sm:$0xff] %vm6155_vm1, %v2096_v11  ;;  %v2099_v25 = vadd.f32 %v4356_v16, %v3924_v7  ;;  %v2090_v63 = vpop.f32.mrb[51].mxu1  ;;  %v2200_v52 = vpop.f32.mrb[63].mxu0  ;;  %vm6163_vm1 = vmmov %vm6147_vm0 }
 0x419   : > { %2134 = vst.msk [vmem:[#allocation2] sm:$0xff] %vm6156_vm6, %v2088_v15  ;;  %v2091_v24 = vadd.f32 %v3924_v7, %v2090_v63  ;;  %vm6164_vm6 = vmmov %vm6147_vm0 }
 0x41a   : > { %2137 = vst.msk [vmem:[#allocation2 + $0x18] sm:$0xff] %vm6157_vm11, %v2099_v25  ;;  %vm6165_vm11 = vmmov %vm6147_vm0 }
 0x41b   : > { %2135 = vst.msk [vmem:[#allocation2 + $0x8] sm:$0xff] %vm6147_vm0, %v2091_v24 }
 0x41d   : > { %v4359_v35 = vpop.f32.mrb[52].mxu1  ;;  %v4375_v28 = vpop.f32.mrb[64].mxu0 }
 0x41e   : > { %v2112_v18 = vadd.f32 %v4359_v35, %v3924_v7  ;;  %v2103_v27 = vpop.f32.mrb[53].mxu1  ;;  %v2213_v19 = vpop.f32.mrb[65].mxu0 }
 0x41f   : > { %v2104_v37 = vadd.f32 %v3924_v7, %v2103_v27  ;;  %v4360_v38 = vpop.f32.mrb[54].mxu1  ;;  %v4376_v29 = vpop.f32.mrb[66].mxu0 }
 0x420   : > { %2140 = vst.msk [vmem:[#allocation2 + $0x30] sm:$0xff] %vm6158_vm10, %v2112_v18  ;;  %v2115_v39 = vadd.f32 %v4360_v38, %v3924_v7  ;;  %v2106_v45 = vpop.f32.mrb[55].mxu1  ;;  %v2216_v26 = vpop.f32.mrb[67].mxu0  ;;  %vm6166_vm10 = vmmov %vm6147_vm0 }
 0x421   : > { %v2246_v49 = vld [vmem:[#allocation2 + $0x11] sm:$0xff]  ;;  %2138 = vst.msk [vmem:[#allocation2 + $0x20] sm:$0xff] %vm6159_vm2, %v2104_v37  ;;  %v2107_v56 = vadd.f32 %v3924_v7, %v2106_v45  ;;  %vm6167_vm2 = vmmov %vm6147_vm0 }
 0x422   : > { %v2258_v57 = vadd.f32 %v4371_v10, %v2246_v49  ;;  %v2244_v40 = vld [vmem:[#allocation2 + $0x1] sm:$0xff]  ;;  %v2245_v34 = vld [vmem:[#allocation2 + $0x9] sm:$0xff]  ;;  %2141 = vst.msk [vmem:[#allocation2 + $0x38] sm:$0xff] %vm6160_vm4, %v2115_v39  ;;  %vm6168_vm4 = vmmov %vm6147_vm0 }
 0x423   : > { %v2256_v59 = vadd.f32 %v2244_v40, %v2197_v14  ;;  %v2257_v41 = vadd.f32 %v2245_v34, %v2200_v52  ;;  %2139 = vst.msk [vmem:[#allocation2 + $0x28] sm:$0xff] %vm6161_vm12, %v2107_v56  ;;  %vm6169_vm12 = vmmov %vm6147_vm0 }
 0x424   : > { %2270 = vst.msk [vmem:[#allocation2 + $0x11] sm:$0xff] %vm6162_vm5, %v2258_v57  ;;  %vm6170_vm5 = vmmov %vm6147_vm0 }
 0x425   : > { %2268 = vst.msk [vmem:[#allocation2 + $0x1] sm:$0xff] %vm6163_vm1, %v2256_v59  ;;  %v4363_v32 = vpop.f32.mrb[56].mxu1  ;;  %v4379_v60 = vpop.f32.mrb[68].mxu0  ;;  %vm6171_vm1 = vmmov %vm6147_vm0 }
 0x426   : > { %2269 = vst.msk [vmem:[#allocation2 + $0x9] sm:$0xff] %vm6164_vm6, %v2257_v41  ;;  %v2128_v1 = vadd.f32 %v4363_v32, %v3924_v7  ;;  %v2119_v3 = vpop.f32.mrb[57].mxu1  ;;  %v2229_v5 = vpop.f32.mrb[69].mxu0  ;;  %vm6172_vm6 = vcmask 1046528  }
 0x427   : > { %v2120_v58 = vadd.f32 %v3924_v7, %v2119_v3  ;;  %v4364_v61 = vpop.f32.mrb[58].mxu1  ;;  %v4380_v0 = vpop.f32.mrb[70].mxu0 }
 0x428   : > { %v2247_v8 = vld [vmem:[#allocation2 + $0x19] sm:$0xff]  ;;  %2144 = vst.msk [vmem:[#allocation2 + $0x50] sm:$0xff] %vm6165_vm11, %v2128_v1  ;;  %v2131_v10 = vadd.f32 %v4364_v61, %v3924_v7  ;;  %v2122_v11 = vpop.f32.mrb[59].mxu1  ;;  %v2232_v13 = vpop.f32.mrb[71].mxu0  ;;  %vm6173_vm11 = vmmov %vm6147_vm0 }
 0x429   : > { %v2259_v14 = vadd.f32 %v4372_v21, %v2247_v8  ;;  %v2250_v15 = vld [vmem:[#allocation2 + $0x31] sm:$0xff]  ;;  %2142 = vst.msk [vmem:[#allocation2 + $0x40] sm:$0xff] %vm6147_vm0, %v2120_v58  ;;  %v2123_v16 = vadd.f32 %v3924_v7, %v2122_v11  ;;  %vm6174_vm0 = vmmov %vm6172_vm6 }
 0x42a   : > { %v2262_v25 = vadd.f32 %v4375_v28, %v2250_v15  ;;  %v2248_v63 = vld [vmem:[#allocation2 + $0x21] sm:$0xff]  ;;  %v2249_v52 = vld [vmem:[#allocation2 + $0x29] sm:$0xff]  ;;  %2145 = vst.msk [vmem:[#allocation2 + $0x58] sm:$0xff] %vm6166_vm10, %v2131_v10  ;;  %vm6175_vm10 = vcmask 260096  }
 0x42b   : > { %2271 = vst.msk [vmem:[#allocation2 + $0x19] sm:$0xff] %vm6167_vm2, %v2259_v14  ;;  %v2260_v24 = vadd.f32 %v2248_v63, %v2213_v19  ;;  %v2261_v35 = vadd.f32 %v2249_v52, %v2216_v26  ;;  %vm6176_vm2 = vmmov %vm6174_vm0 }
 0x42c   : > { %2143 = vst.msk [vmem:[#allocation2 + $0x48] sm:$0xff] %vm6168_vm4, %v2123_v16  ;;  %v2378_v58 = vld [vmem:[#allocation2] sm:$0xff]  ;;  %vm6177_vm4 = vmmov %vm6171_vm1 }
 0x42d   : > { %2274 = vst.msk [vmem:[#allocation2 + $0x31] sm:$0xff] %vm6169_vm12, %v2262_v25  ;;  %v4387_v21 = vpop.f32.mrb[60].mxu1  ;;  %v2380_v34 = vld [vmem:[#allocation2 + $0x10] sm:$0xff]  ;;  %vm6178_vm12 = vmmov %vm6171_vm1 }
 0x42e   : > { %2272 = vst.msk [vmem:[#allocation2 + $0x21] sm:$0xff] %vm6170_vm5, %v2260_v24  ;;  %v2331_v18 = vpop.f32.mrb[61].mxu1  ;;  %v2405_v27 = vrot.slane %v4387_v21, 1  ;;  %vm6179_vm5 = vmmov %vm6171_vm1 }
 0x42f   : > { %2273 = vst.msk [vmem:[#allocation2 + $0x29] sm:$0xff] %vm6171_vm1, %v2261_v35  ;;  %v4388_v7 = vpop.f32.mrb[62].mxu1  ;;  %v2402_v49 = vrot.slane %v2331_v18, 1 }
 0x430   : > { %v2251_v28 = vld [vmem:[#allocation2 + $0x39] sm:$0xff]  ;;  %v2407_v37 = vrot.slane %v4388_v7, 1  ;;  %v2334_v38 = vpop.f32.mrb[63].mxu1 }
 0x431   : > { %v2263_v39 = vadd.f32 %v4376_v29, %v2251_v28  ;;  %v2255_v45 = vld [vmem:[#allocation2 + $0x59] sm:$0x7f]  ;;  %v2403_v19 = vrot.slane %v2334_v38, 1  ;;  %v2254_v26 = vld [vmem:[#allocation2 + $0x51] sm:$0xff]  ;;  %v2379_v29 = vld [vmem:[#allocation2 + $0x8] sm:$0xff] }
 0x432   : > { %v2267_v56 = vadd.f32 %v4380_v0, %v2255_v45  ;;  %v2408_v59 = vsel %vm6172_vm6, %v2405_v27, %v2407_v37  ;;  %v2266_v41 = vadd.f32 %v4379_v60, %v2254_v26  ;;  %vm6180_vm6 = vmmov %vm6171_vm1  ;;  %v2381_v25 = vld [vmem:[#allocation2 + $0x18] sm:$0xff] }
 0x433   : > { %v2252_v57 = vld [vmem:[#allocation2 + $0x41] sm:$0xff]  ;;  %v2253_v40 = vld [vmem:[#allocation2 + $0x49] sm:$0xff]  ;;  %2275 = vst.msk [vmem:[#allocation2 + $0x39] sm:$0xff] %vm6173_vm11, %v2263_v39  ;;  %v2439_v3 = vadd.f32 %v2408_v59, %v2380_v34  ;;  %v2404_v61 = vsel %vm6174_vm0, %v2402_v49, %v2403_v19  ;;  %v2406_v8 = vsel %vm6176_vm2, %v2403_v19, %v2405_v27  ;;  %vm6181_vm11 = vmmov %vm6171_vm1 }
 0x434   : > { %v2264_v32 = vadd.f32 %v2252_v57, %v2229_v5  ;;  %v2265_v1 = vadd.f32 %v2253_v40, %v2232_v13  ;;  %2279 = vst.msk [vmem:[#allocation2 + $0x59] sm:$0x7f] %vm6175_vm10, %v2267_v56  ;;  %v2437_v0 = vadd.f32 %v2404_v61, %v2378_v58  ;;  %v2438_v60 = vadd.f32 %v2406_v8, %v2379_v29  ;;  %vm6182_vm10 = vmmov %vm6174_vm0 }
 0x435   : > { %2278 = vst.msk [vmem:[#allocation2 + $0x51] sm:$0xff] %vm6177_vm4, %v2266_v41  ;;  %v4391_v5 = vpop.f32.mrb[64].mxu1  ;;  %v2382_v7 = vld [vmem:[#allocation2 + $0x20] sm:$0xff]  ;;  %vm6183_vm2 = vmmov %vm6174_vm0 }
 0x436   : > { %2276 = vst.msk [vmem:[#allocation2 + $0x41] sm:$0xff] %vm6178_vm12, %v2264_v32  ;;  %v2347_v10 = vpop.f32.mrb[65].mxu1  ;;  %v2413_v14 = vrot.slane %v4391_v5, 1  ;;  %v2384_v35 = vld [vmem:[#allocation2 + $0x30] sm:$0xff]  ;;  %v2383_v28 = vld [vmem:[#allocation2 + $0x28] sm:$0xff]  ;;  %vm6184_vm4 = vmmov %vm6174_vm0 }
 0x437   : > { %2277 = vst.msk [vmem:[#allocation2 + $0x49] sm:$0xff] %vm6179_vm5, %v2265_v1  ;;  %v2409_v11 = vrot.slane %v2347_v10, 1  ;;  %v4392_v13 = vpop.f32.mrb[66].mxu1  ;;  %vm6185_vm12 = vmmov %vm6171_vm1 }
 0x438   : > { %2451 = vst.msk [vmem:[#allocation2 + $0x10] sm:$0xff] %vm6171_vm1, %v2439_v3  ;;  %v2415_v15 = vrot.slane %v4392_v13, 1  ;;  %v2350_v16 = vpop.f32.mrb[67].mxu1  ;;  %vm6186_vm5 = vmmov %vm6171_vm1 }
 0x439   : > { %2449 = vst.msk [vmem:[#allocation2] sm:$0xff] %vm6180_vm6, %v2437_v0  ;;  %v2410_v63 = vsel %vm6174_vm0, %v2407_v37, %v2409_v11  ;;  %v2411_v52 = vrot.slane %v2350_v16, 1  ;;  %vm6187_vm6 = vmmov %vm6171_vm1 }
 0x43a   : > { %2450 = vst.msk [vmem:[#allocation2 + $0x8] sm:$0xff] %vm6181_vm11, %v2438_v60  ;;  %v2440_v24 = vadd.f32 %v2410_v63, %v2381_v25  ;;  %v2416_v21 = vsel %vm6182_vm10, %v2413_v14, %v2415_v15  ;;  %v2385_v0 = vld [vmem:[#allocation2 + $0x38] sm:$0xff]  ;;  %vm6188_vm11 = vmmov %vm6174_vm0 }
 0x43b   : > { %v2443_v18 = vadd.f32 %v2416_v21, %v2384_v35  ;;  %v2412_v27 = vsel %vm6183_vm2, %v2409_v11, %v2411_v52  ;;  %v2414_v38 = vsel %vm6184_vm4, %v2411_v52, %v2413_v14  ;;  %vm6189_vm10 = vmmov %vm6174_vm0 }
 0x43c   : > { %2452 = vst.msk [vmem:[#allocation2 + $0x18] sm:$0xff] %vm6185_vm12, %v2440_v24  ;;  %v2441_v39 = vadd.f32 %v2412_v27, %v2382_v7  ;;  %v2442_v45 = vadd.f32 %v2414_v38, %v2383_v28  ;;  %v2389_v58 = vld [vmem:[#allocation2 + $0x58] sm:$0x7f]  ;;  %vm6190_vm2 = vmmov %vm6174_vm0  ;;  %vm6192_vm12 = vcmask 260096  }
 0x43d   : > { %2455 = vst.msk [vmem:[#allocation2 + $0x30] sm:$0xff] %vm6186_vm5, %v2443_v18  ;;  %v4395_v49 = vpop.f32.mrb[68].mxu1  ;;  %v2386_v63 = vld [vmem:[#allocation2 + $0x40] sm:$0xff]  ;;  %vm6191_vm4 = vmmov %vm6171_vm1 }
 0x43e   : > { %2453 = vst.msk [vmem:[#allocation2 + $0x20] sm:$0xff] %vm6171_vm1, %v2441_v39  ;;  %v2363_v26 = vpop.f32.mrb[69].mxu1  ;;  %v2421_v3 = vrot.slane %v4395_v49, 1  ;;  %v2388_v14 = vld [vmem:[#allocation2 + $0x50] sm:$0xff]  ;;  %v2387_v52 = vld [vmem:[#allocation2 + $0x48] sm:$0xff]  ;;  %vm6193_vm5 = vmmov %vm6171_vm1 }
 0x43f   : > { %v2463_v19 = vld [vmem:[#allocation2 + $0x10] sm:$0xff]  ;;  %2454 = vst.msk [vmem:[#allocation2 + $0x28] sm:$0xff] %vm6187_vm6, %v2442_v45  ;;  %v2417_v34 = vrot.slane %v2363_v26, 1  ;;  %v4396_v59 = vpop.f32.mrb[70].mxu1  ;;  %vm6194_vm6 = vmmov %vm6171_vm1 }
 0x440   : > { %v2461_v37 = vld [vmem:[#allocation2] sm:$0xff]  ;;  %v2475_v40 = vsel %vm5089_vm7, %v2463_v19, 0.0  ;;  %v2423_v61 = vrot.slane %v4396_v59, 1  ;;  %v2366_v29 = vpop.f32.mrb[71].mxu1 }
 0x441   : > { %v2462_v56 = vld [vmem:[#allocation2 + $0x8] sm:$0xff]  ;;  %v2473_v57 = vsel %vm5068_vm13, %v2461_v37, 0.0  ;;  %v5599_v1 = vadd.f32 %v2475_v40, %v5308_v36  ;;  %v2418_v60 = vsel %vm6188_vm11, %v2415_v15, %v2417_v34  ;;  %v2419_v5 = vrot.slane %v2366_v29, 1  ;;  %vm6195_vm11 = vmmov %vm6171_vm1 }
 0x442   : > { %v2474_v41 = vsel %vm5078_vm15, %v2462_v56, 0.0  ;;  %v2485_v32 = vadd.f32 %v2473_v57, %v5305_v33  ;;  %v2444_v13 = vadd.f32 %v2418_v60, %v2385_v0  ;;  %v2424_v33 = vsel %vm6174_vm0, %v2421_v3, %v2423_v61  ;;  %vm6196_vm0 = vmmov %vm6171_vm1 }
 0x443   : > { %v2486_v8 = vadd.f32 %v2474_v41, %v5311_v42  ;;  %v2499_v11 = vmul.f32 0.01, %v5599_v1  ;;  %v2448_v16 = vadd.f32 %v2423_v61, %v2389_v58  ;;  %v2447_v25 = vadd.f32 %v2424_v33, %v2388_v14  ;;  %v2464_v21 = vld [vmem:[#allocation2 + $0x18] sm:$0xff] }
 0x444   : > { %v2497_v10 = vmul.f32 0.01, %v2485_v32  ;;  %v2420_v24 = vsel %vm6189_vm10, %v2417_v34, %v2419_v5  ;;  %v2422_v42 = vsel %vm6190_vm2, %v2419_v5, %v2421_v3  ;;  %2456 = vst.msk [vmem:[#allocation2 + $0x38] sm:$0xff] %vm6191_vm4, %v2444_v13  ;;  %v2476_v28 = vsel %vm5117_vm3, %v2464_v21, 0.0  ;;  %v2467_v27 = vld [vmem:[#allocation2 + $0x30] sm:$0xff]  ;;  %vm6199_vm4 = vmmov %vm6196_vm0 }
 0x445   : > { %v2498_v36 = vmul.f32 0.01, %v2486_v8  ;;  %2460 = vst.msk [vmem:[#allocation2 + $0x58] sm:$0x7f] %vm6192_vm12, %v2448_v16  ;;  %v2445_v15 = vadd.f32 %v2420_v24, %v2386_v63  ;;  %v2446_v18 = vadd.f32 %v2422_v42, %v2387_v52  ;;  %v5613_v38 = vadd.f32 %v2476_v28, %v5328_v9  ;;  %v2465_v39 = vld [vmem:[#allocation2 + $0x20] sm:$0xff]  ;;  %vm6200_vm12 = vmmov %vm6196_vm0 }
 0x446   : > { %v2509_v35 = vmax.f32 %v2485_v32, %v2497_v10  ;;  %2459 = vst.msk [vmem:[#allocation2 + $0x50] sm:$0xff] %vm6193_vm5, %v2447_v25  ;;  %v2466_v45 = vld [vmem:[#allocation2 + $0x28] sm:$0xff]  ;;  %v2477_v37 = vsel %vm6086_vm8, %v2465_v39, 0.0  ;;  %v2479_v26 = vsel %vm6088_vm14, %v2467_v27, 0.0  ;;  %v2511_v40 = vmax.f32 %v5599_v1, %v2499_v11  ;;  %v4645_v27 = vld [vmem:[%s5974_s4 + $0x70] sm:$0xff]   ;;  %v4646_v39 = vld [vmem:[%s5974_s4 + $0x78] sm:$0xff]  }
 0x447   : > { %v2510_v7 = vmax.f32 %v2486_v8, %v2498_v36  ;;  %2457 = vst.msk [vmem:[#allocation2 + $0x40] sm:$0xff] %vm6171_vm1, %v2445_v15  ;;  %v2478_v19 = vsel %vm6087_vm9, %v2466_v45, 0.0  ;;  %v2500_v56 = vmul.f32 0.01, %v5613_v38  ;;  %v5625_v9 = vadd.f32 %v2477_v37, %v5342_v20  ;;  %v4644_v8 = vld [vmem:[%s5972_s2 + $0x88] sm:$0xff]   ;;  %4445 = vmatprep.subr.bf16.mxu1 %v4645_v27  ;;  %v4647_v45 = vld [vmem:[%s5974_s4 + $0x60] sm:$0xff]  }
 0x448   : > { %2458 = vst.msk [vmem:[#allocation2 + $0x48] sm:$0xff] %vm6194_vm6, %v2446_v18  ;;  %v5628_v57 = vadd.f32 %v2478_v19, %v5345_v22  ;;  %v5637_v32 = vadd.f32 %v2479_v26, %v5356_v30  ;;  %vm6197_vm10 = vnez %v6017_v44  ;;  %vm6198_vm2 = vnez %v6030_v48  ;;  %v5705_v37 = vld [vmem:[%s5974_s4 + $0x80] sm:$0xff]  }
 0x449   : > { %v2521_v49 = vpack.c.bf16 %v2510_v7, %v2509_v35  ;;  %v2512_v34 = vmax.f32 %v5613_v38, %v2500_v56  ;;  %v2501_v59 = vmul.f32 0.01, %v5625_v9  ;;  %vm6201_vm5 = vnez %v6020_v46  ;;  %v3962_v19 = vld [vmem:[%s5973_s3 + $0x2] ss:$0 sm:$0xff] }
 0x44a   : > { %v2502_v41 = vmul.f32 0.01, %v5628_v57  ;;  %v2503_v10 = vmul.f32 0.01, %v5637_v32  ;;  %vm6202_vm1 = vnez %v6023_v50  ;;  %vm6203_vm6 = vnez %v6026_v53 }
 0x44b   : > { %4401 = vmatprep.mubr.msk.bf16.mxu0 %vm6195_vm11, %v2521_v49  ;;  %4417 = vmatprep.mubr.msk.bf16.mxu1 %vm6196_vm0, %v2521_v49  ;;  %v2522_v20 = vpack.c.bf16 %v2512_v34, %v2511_v40  ;;  %v2513_v3 = vmax.f32 %v5625_v9, %v2501_v59  ;;  %v2468_v58 = vld [vmem:[#allocation2 + $0x38] sm:$0xff]  ;;  %vm6204_vm11 = vmmov %vm6196_vm0 }
 0x44c   : > { %v2514_v22 = vmax.f32 %v5628_v57, %v2502_v41  ;;  %v2472_v61 = vld [vmem:[#allocation2 + $0x58] sm:$0xff]  ;;  %v2480_v29 = vsel %vm6197_vm10, %v2468_v58, 0.0  ;;  %v2515_v52 = vmax.f32 %v5637_v32, %v2503_v10  ;;  %vm6212_vm10 = vmmov %vm6196_vm0 }
 0x44d   : > { %v2471_v0 = vld [vmem:[#allocation2 + $0x50] sm:$0xff]  ;;  %v2484_v60 = vsel %vm6198_vm2, %v2472_v61, 0.0  ;;  %4402 = vmatmul.mubr.msk.bf16.vlgmr.msra.gmra.mrb[72].mxu0 %vm6199_vm4, %v2522_v20  ;;  %4418 = vmatmul.mubr.msk.bf16.vlgmr.msra.gmra.mrb[72].mxu1 %vm6200_vm12, %v2522_v20  ;;  %v5651_v5 = vadd.f32 %v2480_v29, %v5370_v55  ;;  %vm6205_vm4 = vmmov %vm6196_vm0 }
 0x44e   : > { %v2523_v30 = vpack.c.bf16 %v2514_v22, %v2513_v3  ;;  %v2469_v11 = vld [vmem:[#allocation2 + $0x40] sm:$0xff]  ;;  %v2483_v14 = vsel %vm6201_vm5, %v2471_v0, 0.0  ;;  %4430 = vmatpush3.bf16.msra.mxu0 %v5547_v6  ;;  %v2496_v36 = vadd.f32 %v2484_v60, %v5381_v62  ;;  %vm6206_vm12 = vmmov %vm6196_vm0  ;;  %4446 = vmatpush3.bf16.msra.mxu1 %v4645_v27 }
 0x44f   : > { %v2470_v13 = vld [vmem:[#allocation2 + $0x48] sm:$0xff]  ;;  %v2481_v33 = vsel %vm6202_vm1, %v2469_v11, 0.0  ;;  %v2504_v55 = vmul.f32 0.01, %v5651_v5  ;;  %v2495_v6 = vadd.f32 %v2483_v14, %v5393_v4  ;;  %4431 = vmatprep.subr.bf16.mxu0 %v4644_v8  ;;  %vm6208_vm2 = vmmov %vm6196_vm0  ;;  %4447 = vmatprep.subr.bf16.mxu1 %v4646_v39 }
 0x450   : > { %v2482_v16 = vsel %vm6203_vm6, %v2470_v13, 0.0  ;;  %4405 = vmatprep.mubr.msk.bf16.mxu0 %vm6204_vm11, %v2523_v30  ;;  %4421 = vmatprep.mubr.msk.bf16.mxu1 %vm6196_vm0, %v2523_v30  ;;  %v5666_v25 = vadd.f32 %v2481_v33, %v5387_v2  ;;  %v2508_v35 = vmul.f32 0.01, %v2496_v36  ;;  %vm6207_vm11 = vmmov %vm6196_vm0 }
 0x451   : > { %v5669_v63 = vadd.f32 %v2482_v16, %v5390_v23  ;;  %v2516_v24 = vmax.f32 %v5651_v5, %v2504_v55  ;;  %v2507_v23 = vmul.f32 0.01, %v2495_v6  ;;  %vm6209_vm6 = vmmov %vm6196_vm0 }
 0x452   : > { %v2505_v62 = vmul.f32 0.01, %v5666_v25  ;;  %4432 = vmatpush3.bf16.msra.mxu0 %v4644_v8  ;;  %v2520_v7 = vmax.f32 %v2496_v36, %v2508_v35  ;;  %vm6210_vm1 = vmmov %vm6196_vm0  ;;  %4448 = vmatpush3.bf16.msra.mxu1 %v4646_v39 }
 0x453   : > { %v2506_v42 = vmul.f32 0.01, %v5669_v63  ;;  %v2524_v21 = vpack.c.bf16 %v2516_v24, %v2515_v52  ;;  %v2519_v18 = vmax.f32 %v2495_v6, %v2507_v23  ;;  %vm6211_vm5 = vmmov %vm6196_vm0  ;;  %4461 = vmatprep.subr.bf16.mxu0 %v4647_v45  ;;  %4477 = vmatprep.subr.bf16.mxu1 %v5705_v37 }
 0x454   : > { %v2517_v2 = vmax.f32 %v5666_v25, %v2505_v62 }
 0x455   : > { %v2518_v15 = vmax.f32 %v5669_v63, %v2506_v42  ;;  %4406 = vmatmul.mubr.msk.bf16.gmra.mrb[76].mxu0 %vm6205_vm4, %v2524_v21  ;;  %4422 = vmatmul.mubr.msk.bf16.gmra.mrb[76].mxu1 %vm6206_vm12, %v2524_v21  ;;  %v2526_v28 = vpack.c.bf16 %v2520_v7, %v2519_v18  ;;  %vm6213_vm4 = vmmov %vm6196_vm0 }
 0x456   : > { %vm6214_vm12 = vmmov %vm6196_vm0 }
 0x457   : > { %v2525_v4 = vpack.c.bf16 %v2518_v15, %v2517_v2 }
 0x459   : > { %4409 = vmatprep.mubr.msk.bf16.mxu0 %vm6207_vm11, %v2525_v4  ;;  %4425 = vmatprep.mubr.msk.bf16.mxu1 %vm6196_vm0, %v2525_v4  ;;  %vm6215_vm11 = vmmov %vm6196_vm0 }
 0x45d   : > { %4410 = vmatmul.mubr.msk.bf16.gmra.mrb[80].mxu0 %vm6208_vm2, %v2526_v28  ;;  %4426 = vmatmul.mubr.msk.bf16.gmra.mrb[80].mxu1 %vm6209_vm6, %v2526_v28  ;;  %vm6217_vm2 = vmmov %vm6196_vm0 }
 0x45e   : > { %4433 = vmatprep.mubr.msk.bf16.mxu0 %vm6210_vm1, %v2521_v49  ;;  %v4648_v49 = vld [vmem:[%s5974_s4 + $0x68] sm:$0xff]   ;;  %vm6219_vm1 = vmmov %vm6196_vm0 }
 0x45f   : > { %vm6220_vm6 = vmmov %vm6196_vm0 }
 0x465   : > { %4434 = vmatmul.mubr.msk.bf16.vlgmr.msra.gmra.mrb[84].mxu0 %vm6211_vm5, %v2522_v20  ;;  %vm6218_vm5 = vmmov %vm6196_vm0 }
 0x466   : > { %4437 = vmatprep.mubr.msk.bf16.mxu0 %vm6212_vm10, %v2523_v30  ;;  %4462 = vmatpush3.bf16.msra.mxu0 %v4647_v45  ;;  %vm6216_vm10 = vmmov %vm6196_vm0 }
 0x467   : > { %4463 = vmatprep.subr.bf16.mxu0 %v4648_v49 }
 0x46a   : > { %4464 = vmatpush3.bf16.msra.mxu0 %v4648_v49 }
 0x46d   : > { %4438 = vmatmul.mubr.msk.bf16.gmra.mrb[88].mxu0 %vm6213_vm4, %v2524_v21  ;;  %vm6221_vm4 = vmmov %vm6196_vm0 }
 0x46e   : > { %4441 = vmatprep.mubr.msk.bf16.mxu0 %vm6214_vm12, %v2525_v4  ;;  %vm6222_vm12 = vmmov %vm6196_vm0 }
 0x475   : > { %4442 = vmatmul.mubr.msk.bf16.gmra.mrb[92].mxu0 %vm6215_vm11, %v2526_v28  ;;  %vm6223_vm11 = vmmov %vm6196_vm0 }
 0x520   : > { %v4403_v26 = vpop.f32.mrb[72].mxu0  ;;  %v4419_v56 = vpop.f32.mrb[72].mxu1 }
 0x521   : > { %v2613_v40 = vadd.f32 %v4403_v26, %v3962_v19  ;;  %v2604_v34 = vpop.f32.mrb[73].mxu0  ;;  %v2714_v59 = vpop.f32.mrb[73].mxu1 }
 0x522   : > { %v2605_v41 = vadd.f32 %v3962_v19, %v2604_v34  ;;  %v4404_v20 = vpop.f32.mrb[74].mxu0  ;;  %v4420_v3 = vpop.f32.mrb[74].mxu1 }
 0x523   : > { %2653 = vst.msk [vmem:[#allocation2 + $0x10] sm:$0xff] %vm6216_vm10, %v2613_v40  ;;  %v2616_v22 = vadd.f32 %v4404_v20, %v3962_v19  ;;  %v2607_v58 = vpop.f32.mrb[75].mxu0  ;;  %v2717_v61 = vpop.f32.mrb[75].mxu1  ;;  %vm6224_vm10 = vmmov %vm6196_vm0 }
 0x524   : > { %2651 = vst.msk [vmem:[#allocation2] sm:$0xff] %vm6217_vm2, %v2605_v41  ;;  %v2608_v29 = vadd.f32 %v3962_v19, %v2607_v58  ;;  %vm6225_vm2 = vmmov %vm6196_vm0 }
 0x525   : > { %2654 = vst.msk [vmem:[#allocation2 + $0x18] sm:$0xff] %vm6218_vm5, %v2616_v22  ;;  %vm6226_vm5 = vmmov %vm6196_vm0 }
 0x526   : > { %2652 = vst.msk [vmem:[#allocation2 + $0x8] sm:$0xff] %vm6219_vm1, %v2608_v29  ;;  %vm6227_vm1 = vmmov %vm6196_vm0 }
 0x528   : > { %v4407_v8 = vpop.f32.mrb[76].mxu0  ;;  %v4423_v0 = vpop.f32.mrb[76].mxu1 }
 0x529   : > { %v2629_v60 = vadd.f32 %v4407_v8, %v3962_v19  ;;  %v2620_v30 = vpop.f32.mrb[77].mxu0  ;;  %v2730_v10 = vpop.f32.mrb[77].mxu1 }
 0x52a   : > { %v2621_v11 = vadd.f32 %v3962_v19, %v2620_v30  ;;  %v4408_v13 = vpop.f32.mrb[78].mxu0  ;;  %v4424_v14 = vpop.f32.mrb[78].mxu1 }
 0x52b   : > { %2657 = vst.msk [vmem:[#allocation2 + $0x30] sm:$0xff] %vm6220_vm6, %v2629_v60  ;;  %v2632_v33 = vadd.f32 %v4408_v13, %v3962_v19  ;;  %v2623_v16 = vpop.f32.mrb[79].mxu0  ;;  %v2733_v36 = vpop.f32.mrb[79].mxu1  ;;  %vm6228_vm6 = vmmov %vm6196_vm0 }
 0x52c   : > { %v2763_v55 = vld [vmem:[#allocation2 + $0x15] sm:$0xff]  ;;  %2655 = vst.msk [vmem:[#allocation2 + $0x20] sm:$0xff] %vm6196_vm0, %v2621_v11  ;;  %v2624_v6 = vadd.f32 %v3962_v19, %v2623_v16 }
 0x52d   : > { %v2775_v52 = vadd.f32 %v4419_v56, %v2763_v55  ;;  %v2761_v24 = vld [vmem:[#allocation2 + $0x5] sm:$0xff]  ;;  %v2762_v62 = vld [vmem:[#allocation2 + $0xd] sm:$0xff]  ;;  %2658 = vst.msk [vmem:[#allocation2 + $0x38] sm:$0xff] %vm6221_vm4, %v2632_v33  ;;  %vm6229_vm4 = vmmov %vm6196_vm0 }
 0x52e   : > { %v2773_v42 = vadd.f32 %v2761_v24, %v2714_v59  ;;  %v2774_v35 = vadd.f32 %v2762_v62, %v2717_v61  ;;  %2656 = vst.msk [vmem:[#allocation2 + $0x28] sm:$0xff] %vm6222_vm12, %v2624_v6  ;;  %vm6230_vm12 = vmmov %vm6196_vm0 }
 0x52f   : > { %2787 = vst.msk [vmem:[#allocation2 + $0x15] sm:$0xff] %vm6223_vm11, %v2775_v52  ;;  %vm6231_vm11 = vmmov %vm6196_vm0 }
 0x530   : > { %2785 = vst.msk [vmem:[#allocation2 + $0x5] sm:$0xff] %vm6224_vm10, %v2773_v42  ;;  %v4411_v21 = vpop.f32.mrb[80].mxu0  ;;  %v4427_v2 = vpop.f32.mrb[80].mxu1  ;;  %vm6232_vm10 = vmmov %vm6196_vm0 }
 0x531   : > { %2786 = vst.msk [vmem:[#allocation2 + $0xd] sm:$0xff] %vm6225_vm2, %v2774_v35  ;;  %v2645_v15 = vadd.f32 %v4411_v21, %v3962_v19  ;;  %v2636_v23 = vpop.f32.mrb[81].mxu0  ;;  %v2746_v4 = vpop.f32.mrb[81].mxu1  ;;  %vm2920_vm2 = vcmask 1042432  }
 0x532   : > { %v2637_v18 = vadd.f32 %v3962_v19, %v2636_v23  ;;  %v4412_v7 = vpop.f32.mrb[82].mxu0  ;;  %v4428_v28 = vpop.f32.mrb[82].mxu1 }
 0x533   : > { %v2764_v27 = vld [vmem:[#allocation2 + $0x1d] sm:$0xff]  ;;  %2661 = vst.msk [vmem:[#allocation2 + $0x50] sm:$0xff] %vm6226_vm5, %v2645_v15  ;;  %v2648_v39 = vadd.f32 %v4412_v7, %v3962_v19  ;;  %v2639_v45 = vpop.f32.mrb[83].mxu0  ;;  %v2749_v49 = vpop.f32.mrb[83].mxu1  ;;  %vm2796_vm5 = vcmask 256000  }
 0x534   : > { %v2776_v26 = vadd.f32 %v4420_v3, %v2764_v27  ;;  %v2767_v56 = vld [vmem:[#allocation2 + $0x35] sm:$0xff]  ;;  %2659 = vst.msk [vmem:[#allocation2 + $0x40] sm:$0xff] %vm6227_vm1, %v2637_v18  ;;  %v2640_v40 = vadd.f32 %v3962_v19, %v2639_v45  ;;  %vm6233_vm1 = vmmov %vm6196_vm0 }
 0x535   : > { %v2779_v34 = vadd.f32 %v4423_v0, %v2767_v56  ;;  %v2765_v59 = vld [vmem:[#allocation2 + $0x25] sm:$0xff]  ;;  %v2766_v41 = vld [vmem:[#allocation2 + $0x2d] sm:$0xff]  ;;  %2662 = vst.msk [vmem:[#allocation2 + $0x58] sm:$0xff] %vm6228_vm6, %v2648_v39  ;;  %vm6234_vm6 = vmmov %vm6196_vm0 }
 0x536   : > { %2788 = vst.msk [vmem:[#allocation2 + $0x1d] sm:$0xff] %vm6196_vm0, %v2776_v26  ;;  %v2777_v20 = vadd.f32 %v2765_v59, %v2730_v10  ;;  %v2778_v22 = vadd.f32 %v2766_v41, %v2733_v36 }
 0x537   : > { %2660 = vst.msk [vmem:[#allocation2 + $0x48] sm:$0xff] %vm6229_vm4, %v2640_v40  ;;  %v2896_v35 = vld [vmem:[#allocation2] sm:$0xff]  ;;  %vm6235_vm4 = vmmov %vm6196_vm0 }
 0x538   : > { %2791 = vst.msk [vmem:[#allocation2 + $0x35] sm:$0xff] %vm6230_vm12, %v2779_v34  ;;  %v4435_v3 = vpop.f32.mrb[84].mxu0  ;;  %v2898_v55 = vld [vmem:[#allocation2 + $0x10] sm:$0xff]  ;;  %v2897_v21 = vld [vmem:[#allocation2 + $0x8] sm:$0xff]  ;;  %vm6236_vm12 = vmmov %vm6196_vm0 }
 0x539   : > { %2789 = vst.msk [vmem:[#allocation2 + $0x25] sm:$0xff] %vm6231_vm11, %v2777_v20  ;;  %v2849_v58 = vpop.f32.mrb[85].mxu0  ;;  %v2924_v29 = vrot.slane %v4435_v3, 5  ;;  %vm6237_vm11 = vmmov %vm6196_vm0 }
 0x53a   : > { %2790 = vst.msk [vmem:[#allocation2 + $0x2d] sm:$0xff] %vm6232_vm10, %v2778_v22  ;;  %v4436_v19 = vpop.f32.mrb[86].mxu0  ;;  %v2921_v10 = vrot.slane %v2849_v58, 5  ;;  %vm6238_vm10 = vmmov %vm6196_vm0 }
 0x53b   : > { %v2768_v61 = vld [vmem:[#allocation2 + $0x3d] sm:$0xff]  ;;  %v2926_v8 = vrot.slane %v4436_v19, 5  ;;  %v2852_v0 = vpop.f32.mrb[87].mxu0 }
 0x53c   : > { %v2780_v60 = vadd.f32 %v4424_v14, %v2768_v61  ;;  %v2772_v30 = vld [vmem:[#allocation2 + $0x5d] sm:$0x7]  ;;  %v2922_v11 = vrot.slane %v2852_v0, 5  ;;  %v2771_v13 = vld [vmem:[#allocation2 + $0x55] sm:$0xff] }
 0x53d   : > { %v2784_v33 = vadd.f32 %v4428_v28, %v2772_v30  ;;  %v2927_v6 = vsel %vm2920_vm2, %v2924_v29, %v2926_v8  ;;  %v2783_v52 = vadd.f32 %v4427_v2, %v2771_v13 }
 0x53e   : > { %v2769_v16 = vld [vmem:[#allocation2 + $0x45] sm:$0xff]  ;;  %v2770_v36 = vld [vmem:[#allocation2 + $0x4d] sm:$0xff]  ;;  %2792 = vst.msk [vmem:[#allocation2 + $0x3d] sm:$0xff] %vm6233_vm1, %v2780_v60  ;;  %v2958_v42 = vadd.f32 %v2927_v6, %v2898_v55  ;;  %v2923_v14 = vsel %vm2920_vm2, %v2921_v10, %v2922_v11  ;;  %v2925_v15 = vsel %vm2920_vm2, %v2922_v11, %v2924_v29  ;;  %vm6239_vm1 = vmmov %vm6196_vm0 }
 0x53f   : > { %v2781_v24 = vadd.f32 %v2769_v16, %v2746_v4  ;;  %v2782_v62 = vadd.f32 %v2770_v36, %v2749_v49  ;;  %2797 = vst.msk [vmem:[#allocation2 + $0x5d] sm:$0x7] %vm2796_vm5, %v2784_v33  ;;  %v2956_v23 = vadd.f32 %v2923_v14, %v2896_v35  ;;  %v2957_v2 = vadd.f32 %v2925_v15, %v2897_v21  ;;  %v2899_v49 = vld [vmem:[#allocation2 + $0x18] sm:$0xff] }
 0x540   : > { %2795 = vst.msk [vmem:[#allocation2 + $0x55] sm:$0xff] %vm6234_vm6, %v2783_v52  ;;  %v4439_v4 = vpop.f32.mrb[88].mxu0  ;;  %v2900_v20 = vld [vmem:[#allocation2 + $0x20] sm:$0xff]  ;;  %vm6240_vm6 = vmmov %vm6196_vm0 }
 0x541   : > { %2793 = vst.msk [vmem:[#allocation2 + $0x45] sm:$0xff] %vm6196_vm0, %v2781_v24  ;;  %v2865_v18 = vpop.f32.mrb[89].mxu0  ;;  %v2932_v27 = vrot.slane %v4439_v4, 5  ;;  %v2902_v34 = vld [vmem:[#allocation2 + $0x30] sm:$0xff]  ;;  %v2901_v22 = vld [vmem:[#allocation2 + $0x28] sm:$0xff] }
 0x542   : > { %2794 = vst.msk [vmem:[#allocation2 + $0x4d] sm:$0xff] %vm6235_vm4, %v2782_v62  ;;  %v2928_v7 = vrot.slane %v2865_v18, 5  ;;  %v4440_v28 = vpop.f32.mrb[90].mxu0  ;;  %vm6241_vm4 = vmmov %vm6196_vm0 }
 0x543   : > { %2970 = vst.msk [vmem:[#allocation2 + $0x10] sm:$0xff] %vm6236_vm12, %v2958_v42  ;;  %v2934_v39 = vrot.slane %v4440_v28, 5  ;;  %v2868_v45 = vpop.f32.mrb[91].mxu0  ;;  %vm6244_vm12 = vmmov %vm6196_vm0 }
 0x544   : > { %2968 = vst.msk [vmem:[#allocation2] sm:$0xff] %vm6237_vm11, %v2956_v23  ;;  %v2929_v26 = vsel %vm2920_vm2, %v2926_v8, %v2928_v7  ;;  %v2930_v56 = vrot.slane %v2868_v45, 5  ;;  %vm6246_vm11 = vmmov %vm6196_vm0 }
 0x545   : > { %2969 = vst.msk [vmem:[#allocation2 + $0x8] sm:$0xff] %vm6238_vm10, %v2957_v2  ;;  %v2959_v40 = vadd.f32 %v2929_v26, %v2899_v49  ;;  %v2935_v59 = vsel %vm2920_vm2, %v2932_v27, %v2934_v39  ;;  %v2903_v62 = vld [vmem:[#allocation2 + $0x38] sm:$0xff]  ;;  %vm6247_vm10 = vmmov %vm6196_vm0 }
 0x546   : > { %v2962_v41 = vadd.f32 %v2935_v59, %v2902_v34  ;;  %v2931_v3 = vsel %vm2920_vm2, %v2928_v7, %v2930_v56  ;;  %v2933_v58 = vsel %vm2920_vm2, %v2930_v56, %v2932_v27 }
 0x547   : > { %2971 = vst.msk [vmem:[#allocation2 + $0x18] sm:$0xff] %vm6239_vm1, %v2959_v40  ;;  %v2960_v19 = vadd.f32 %v2931_v3, %v2900_v20  ;;  %v2961_v61 = vadd.f32 %v2933_v58, %v2901_v22  ;;  %v2907_v35 = vld [vmem:[#allocation2 + $0x58] sm:$0x7]  ;;  %vm6249_vm1 = vmmov %vm6196_vm0 }
 0x548   : > { %2974 = vst.msk [vmem:[#allocation2 + $0x30] sm:$0xff] %vm6240_vm6, %v2962_v41  ;;  %v4443_v29 = vpop.f32.mrb[92].mxu0  ;;  %v2904_v18 = vld [vmem:[#allocation2 + $0x40] sm:$0xff]  ;;  %vm6250_vm6 = vnez %v6017_v44 }
 0x549   : > { %2972 = vst.msk [vmem:[#allocation2 + $0x20] sm:$0xff] %vm6196_vm0, %v2960_v19  ;;  %v2881_v60 = vpop.f32.mrb[93].mxu0  ;;  %v2940_v36 = vrot.slane %v4443_v29, 5  ;;  %v2906_v15 = vld [vmem:[#allocation2 + $0x50] sm:$0xff]  ;;  %v2905_v7 = vld [vmem:[#allocation2 + $0x48] sm:$0xff] }
 0x54a   : > { %v2982_v0 = vld [vmem:[#allocation2 + $0x10] sm:$0xff]  ;;  %2973 = vst.msk [vmem:[#allocation2 + $0x28] sm:$0xff] %vm6241_vm4, %v2961_v61  ;;  %v2936_v11 = vrot.slane %v2881_v60, 5  ;;  %v4444_v13 = vpop.f32.mrb[94].mxu0  ;;  %vm6251_vm4 = vmmov %vm6196_vm0 }
 0x54b   : > { %v2980_v8 = vld [vmem:[#allocation2] sm:$0xff]  ;;  %v2942_v55 = vrot.slane %v4444_v13, 5  ;;  %v2884_v6 = vpop.f32.mrb[95].mxu0  ;;  %v2994_v24 = vsel %vm5089_vm7, %v2982_v0, 0.0 }
 0x54c   : > { %v2981_v30 = vld [vmem:[#allocation2 + $0x8] sm:$0xff]  ;;  %v2992_v10 = vsel %vm5068_vm13, %v2980_v8, 0.0  ;;  %v2937_v42 = vsel %vm2920_vm2, %v2934_v39, %v2936_v11  ;;  %v2938_v14 = vrot.slane %v2884_v6, 5  ;;  %v3006_v49 = vmul.f32 0.01, %v2994_v24  ;;  %vm6242_vm13 = vmmov %vm6196_vm0 }
 0x54d   : > { %v2993_v33 = vsel %vm5078_vm15, %v2981_v30, 0.0  ;;  %v3004_v16 = vmul.f32 0.01, %v2992_v10  ;;  %v2963_v21 = vadd.f32 %v2937_v42, %v2903_v62  ;;  %v2943_v23 = vsel %vm2920_vm2, %v2940_v36, %v2942_v55  ;;  %vm6243_vm15 = vmmov %vm6196_vm0 }
 0x54e   : > { %v3005_v52 = vmul.f32 0.01, %v2993_v33  ;;  %v2967_v51 = vadd.f32 %v2942_v55, %v2907_v35  ;;  %v2966_v4 = vadd.f32 %v2943_v23, %v2906_v15  ;;  %v2939_v28 = vsel %vm2920_vm2, %v2936_v11, %v2938_v14  ;;  %v2983_v45 = vld [vmem:[#allocation2 + $0x18] sm:$0xff] }
 0x54f   : > { %v3016_v47 = vmax.f32 %v2992_v10, %v3004_v16  ;;  %v2941_v27 = vsel %vm2920_vm2, %v2938_v14, %v2940_v36  ;;  %2975 = vst.msk [vmem:[#allocation2 + $0x38] sm:$0xff] %vm6242_vm13, %v2963_v21  ;;  %v2964_v39 = vadd.f32 %v2939_v28, %v2904_v18  ;;  %v2995_v40 = vsel %vm5117_vm3, %v2983_v45, 0.0  ;;  %v2986_v20 = vld [vmem:[#allocation2 + $0x30] sm:$0xff]  ;;  %vm6245_vm2 = vmmov %vm6196_vm0  ;;  %v4650_v10 = vld [vmem:[%s5974_s4 + $0x88] sm:$0xff]  }
 0x550   : > { %v3017_v2 = vmax.f32 %v2993_v33, %v3005_v52  ;;  %2979 = vst.msk [vmem:[#allocation2 + $0x58] sm:$0x7] %vm2796_vm5, %v2967_v51  ;;  %v2965_v26 = vadd.f32 %v2941_v27, %v2905_v7  ;;  %v3007_v34 = vmul.f32 0.01, %v2995_v40  ;;  %v2984_v59 = vld [vmem:[#allocation2 + $0x20] sm:$0xff]  ;;  %v3018_v58 = vmax.f32 %v2994_v24, %v3006_v49  ;;  %vm6248_vm5 = vmmov %vm6196_vm0 }
 0x551   : > { %2978 = vst.msk [vmem:[#allocation2 + $0x50] sm:$0xff] %vm6243_vm15, %v2966_v4  ;;  %v2985_v41 = vld [vmem:[#allocation2 + $0x28] sm:$0xff]  ;;  %v2996_v22 = vsel %vm6086_vm8, %v2984_v59, 0.0  ;;  %v2998_v8 = vsel %vm6088_vm14, %v2986_v20, 0.0  ;;  %vm6252_vm13 = vnez %v6020_v46  ;;  %vm6253_vm15 = vnez %v6023_v50  ;;  %v4000_v27 = vld [vmem:[%s5975_s5 + $0x2] ss:$0 sm:$0xff] }
 0x552   : > { %v3028_v56 = vpack.c.bf16 %v3017_v2, %v3016_v47  ;;  %2976 = vst.msk [vmem:[#allocation2 + $0x40] sm:$0xff] %vm6244_vm12, %v2964_v39  ;;  %v2997_v3 = vsel %vm6087_vm9, %v2985_v41, 0.0  ;;  %v3019_v19 = vmax.f32 %v2995_v40, %v3007_v34  ;;  %v3008_v61 = vmul.f32 0.01, %v2996_v22 }
 0x553   : > { %2977 = vst.msk [vmem:[#allocation2 + $0x48] sm:$0xff] %vm6245_vm2, %v2965_v26  ;;  %v3009_v29 = vmul.f32 0.01, %v2997_v3  ;;  %v3010_v33 = vmul.f32 0.01, %v2998_v8  ;;  %vm6254_vm12 = vnez %v6026_v53  ;;  %vm6255_vm2 = vnez %v6030_v48 }
 0x554   : > { %4449 = vmatprep.mubr.msk.bf16.mxu1 %vm6246_vm11, %v3028_v56  ;;  %4465 = vmatprep.mubr.msk.bf16.mxu0 %vm6247_vm10, %v3028_v56  ;;  %v3029_v0 = vpack.c.bf16 %v3019_v19, %v3018_v58  ;;  %v3020_v60 = vmax.f32 %v2996_v22, %v3008_v61  ;;  %vm6256_vm11 = vmmov %vm6196_vm0 }
 0x555   : > { %v3021_v30 = vmax.f32 %v2997_v3, %v3009_v29  ;;  %v3022_v14 = vmax.f32 %v2998_v8, %v3010_v33  ;;  %vm6257_vm10 = vmmov %vm6196_vm0 }
 0x556   : > { %4450 = vmatmul.mubr.msk.bf16.vlgmr.msra.gmra.mrb[84].mxu1 %vm6248_vm5, %v3029_v0  ;;  %4466 = vmatmul.mubr.msk.bf16.vlgmr.msra.gmra.mrb[96].mxu0 %vm6249_vm1, %v3029_v0  ;;  %v2987_v13 = vld [vmem:[#allocation2 + $0x38] sm:$0xff]  ;;  %vm6258_vm5 = vmmov %vm6196_vm0 }
 0x557   : > { %v3030_v11 = vpack.c.bf16 %v3021_v30, %v3020_v60  ;;  %v2991_v16 = vld [vmem:[#allocation2 + $0x58] sm:$0xff]  ;;  %4478 = vmatpush3.bf16.msra.mxu1 %v5705_v37  ;;  %v2999_v36 = vsel %vm6250_vm6, %v2987_v13, 0.0  ;;  %vm6259_vm1 = vmmov %vm6196_vm0 }
 0x558   : > { %v2990_v55 = vld [vmem:[#allocation2 + $0x50] sm:$0xff]  ;;  %v3011_v6 = vmul.f32 0.01, %v2999_v36  ;;  %4479 = vmatprep.subr.bf16.mxu1 %v4650_v10  ;;  %v3003_v35 = vsel %vm6255_vm2, %v2991_v16, 0.0  ;;  %vm6262_vm2 = vmmov %vm6196_vm0 }
 0x559   : > { %4453 = vmatprep.mubr.msk.bf16.mxu1 %vm6196_vm0, %v3030_v11  ;;  %4469 = vmatprep.mubr.msk.bf16.mxu0 %vm6251_vm4, %v3030_v11  ;;  %v2988_v52 = vld [vmem:[#allocation2 + $0x40] sm:$0xff]  ;;  %v3002_v62 = vsel %vm6252_vm13, %v2990_v55, 0.0  ;;  %v3015_v4 = vmul.f32 0.01, %v3003_v35  ;;  %vm6260_vm4 = vmmov %vm6196_vm0 }
 0x55a   : > { %v2989_v24 = vld [vmem:[#allocation2 + $0x48] sm:$0xff]  ;;  %v3000_v42 = vsel %vm6253_vm15, %v2988_v52, 0.0  ;;  %v3023_v47 = vmax.f32 %v2999_v36, %v3011_v6  ;;  %v3014_v23 = vmul.f32 0.01, %v3002_v62  ;;  %vm6261_vm13 = vmmov %vm6196_vm0 }
 0x55b   : > { %v3001_v37 = vsel %vm6254_vm12, %v2989_v24, 0.0  ;;  %v3012_v21 = vmul.f32 0.01, %v3000_v42  ;;  %4480 = vmatpush3.bf16.msra.mxu1 %v4650_v10  ;;  %v3027_v7 = vmax.f32 %v3003_v35, %v3015_v4  ;;  %vm6263_vm12 = vmmov %vm6196_vm0 }
 0x55c   : > { %v3013_v15 = vmul.f32 0.01, %v3001_v37  ;;  %v3031_v51 = vpack.c.bf16 %v3023_v47, %v3022_v14  ;;  %v3026_v48 = vmax.f32 %v3002_v62, %v3014_v23 }
 0x55d   : > { %v3024_v2 = vmax.f32 %v3000_v42, %v3012_v21 }
 0x55e   : > { %v3025_v46 = vmax.f32 %v3001_v37, %v3013_v15  ;;  %4454 = vmatmul.mubr.msk.bf16.gmra.mrb[88].mxu1 %vm6256_vm11, %v3031_v51  ;;  %4470 = vmatmul.mubr.msk.bf16.gmra.mrb[100].mxu0 %vm6257_vm10, %v3031_v51  ;;  %v3033_v28 = vpack.c.bf16 %v3027_v7, %v3026_v48  ;;  %vm6264_vm11 = vmmov %vm6196_vm0 }
 0x55f   : > { %vm6265_vm10 = vmmov %vm6196_vm0 }
 0x560   : > { %v3032_v18 = vpack.c.bf16 %v3025_v46, %v3024_v2 }
 0x562   : > { %4457 = vmatprep.mubr.msk.bf16.mxu1 %vm6258_vm5, %v3032_v18  ;;  %4473 = vmatprep.mubr.msk.bf16.mxu0 %vm6259_vm1, %v3032_v18  ;;  %vm6266_vm5 = vmmov %vm6196_vm0 }
 0x563   : > { %vm6267_vm1 = vmmov %vm6196_vm0 }
 0x566   : > { %4458 = vmatmul.mubr.msk.bf16.gmra.mrb[92].mxu1 %vm6196_vm0, %v3033_v28  ;;  %4474 = vmatmul.mubr.msk.bf16.gmra.mrb[104].mxu0 %vm6260_vm4, %v3033_v28  ;;  %vm6269_vm4 = vmmov %vm6196_vm0 }
 0x567   : > { %4481 = vmatprep.mubr.msk.bf16.mxu1 %vm6261_vm13, %v3028_v56  ;;  %vm6270_vm13 = vmmov %vm6196_vm0 }
 0x56e   : > { %4482 = vmatmul.mubr.msk.bf16.vlgmr.msra.gmra.mrb[96].mxu1 %vm6262_vm2, %v3029_v0  ;;  %vm6271_vm2 = vmmov %vm6196_vm0 }
 0x56f   : > { %4485 = vmatprep.mubr.msk.bf16.mxu1 %vm6263_vm12, %v3030_v11  ;;  %vm6268_vm12 = vmmov %vm6196_vm0 }
 0x576   : > { %4486 = vmatmul.mubr.msk.bf16.gmra.mrb[100].mxu1 %vm6264_vm11, %v3031_v51  ;;  %vm6272_vm11 = vmmov %vm6196_vm0 }
 0x577   : > { %4489 = vmatprep.mubr.msk.bf16.mxu1 %vm6265_vm10, %v3032_v18  ;;  %vm6273_vm10 = vmmov %vm6196_vm0 }
 0x57e   : > { %4490 = vmatmul.mubr.msk.bf16.gmra.mrb[104].mxu1 %vm6266_vm5, %v3033_v28  ;;  %vm6274_vm5 = vmmov %vm6196_vm0 }
 0x629   : > { %v4451_v45 = vpop.f32.mrb[84].mxu1  ;;  %v4467_v49 = vpop.f32.mrb[96].mxu0 }
 0x62a   : > { %v3120_v39 = vadd.f32 %v4451_v45, %v4000_v27  ;;  %v3111_v26 = vpop.f32.mrb[85].mxu1  ;;  %v3221_v40 = vpop.f32.mrb[97].mxu0 }
 0x62b   : > { %v3112_v56 = vadd.f32 %v4000_v27, %v3111_v26  ;;  %v4452_v34 = vpop.f32.mrb[86].mxu1  ;;  %v4468_v59 = vpop.f32.mrb[98].mxu0 }
 0x62c   : > { %3160 = vst.msk [vmem:[#allocation2 + $0x10] sm:$0xff] %vm6267_vm1, %v3120_v39  ;;  %v3123_v41 = vadd.f32 %v4452_v34, %v4000_v27  ;;  %v3114_v20 = vpop.f32.mrb[87].mxu1  ;;  %v3224_v22 = vpop.f32.mrb[99].mxu0  ;;  %vm6275_vm1 = vmmov %vm6196_vm0 }
 0x62d   : > { %3158 = vst.msk [vmem:[#allocation2] sm:$0xff] %vm6268_vm12, %v3112_v56  ;;  %v3115_v3 = vadd.f32 %v4000_v27, %v3114_v20  ;;  %vm6276_vm12 = vmmov %vm6196_vm0 }
 0x62e   : > { %3161 = vst.msk [vmem:[#allocation2 + $0x18] sm:$0xff] %vm6196_vm0, %v3123_v41 }
 0x62f   : > { %3159 = vst.msk [vmem:[#allocation2 + $0x8] sm:$0xff] %vm6269_vm4, %v3115_v3  ;;  %vm6277_vm4 = vmmov %vm6196_vm0 }
 0x631   : > { %v4455_v58 = vpop.f32.mrb[88].mxu1  ;;  %v4471_v19 = vpop.f32.mrb[100].mxu0 }
 0x632   : > { %v3136_v61 = vadd.f32 %v4455_v58, %v4000_v27  ;;  %v3127_v29 = vpop.f32.mrb[89].mxu1  ;;  %v3237_v8 = vpop.f32.mrb[101].mxu0 }
 0x633   : > { %v3128_v0 = vadd.f32 %v4000_v27, %v3127_v29  ;;  %v4456_v60 = vpop.f32.mrb[90].mxu1  ;;  %v4472_v30 = vpop.f32.mrb[102].mxu0 }
 0x634   : > { %3164 = vst.msk [vmem:[#allocation2 + $0x30] sm:$0xff] %vm6270_vm13, %v3136_v61  ;;  %v3139_v10 = vadd.f32 %v4456_v60, %v4000_v27  ;;  %v3130_v11 = vpop.f32.mrb[91].mxu1  ;;  %v3240_v13 = vpop.f32.mrb[103].mxu0  ;;  %vm6278_vm13 = vmmov %vm6196_vm0 }
 0x635   : > { %v3270_v33 = vld [vmem:[#allocation2 + $0x11] sm:$0xff]  ;;  %3162 = vst.msk [vmem:[#allocation2 + $0x20] sm:$0xff] %vm6271_vm2, %v3128_v0  ;;  %v3131_v16 = vadd.f32 %v4000_v27, %v3130_v11  ;;  %vm6279_vm2 = vmmov %vm6196_vm0 }
 0x636   : > { %v3282_v36 = vadd.f32 %v4467_v49, %v3270_v33  ;;  %v3268_v55 = vld [vmem:[#allocation2 + $0x1] sm:$0xff]  ;;  %v3269_v6 = vld [vmem:[#allocation2 + $0x9] sm:$0xff]  ;;  %3165 = vst.msk [vmem:[#allocation2 + $0x38] sm:$0xff] %vm6272_vm11, %v3139_v10  ;;  %vm6280_vm11 = vmmov %vm6196_vm0 }
 0x637   : > { %v3280_v52 = vadd.f32 %v3268_v55, %v3221_v40  ;;  %v3281_v24 = vadd.f32 %v3269_v6, %v3224_v22  ;;  %3163 = vst.msk [vmem:[#allocation2 + $0x28] sm:$0xff] %vm6273_vm10, %v3131_v16  ;;  %vm6281_vm10 = vmmov %vm6196_vm0 }
 0x638   : > { %3294 = vst.msk [vmem:[#allocation2 + $0x11] sm:$0xff] %vm6274_vm5, %v3282_v36  ;;  %vm6282_vm5 = vmmov %vm6196_vm0 }
 0x639   : > { %3292 = vst.msk [vmem:[#allocation2 + $0x1] sm:$0xff] %vm6275_vm1, %v3280_v52  ;;  %v4459_v62 = vpop.f32.mrb[92].mxu1  ;;  %v4475_v42 = vpop.f32.mrb[104].mxu0  ;;  %vm6283_vm1 = vmmov %vm6196_vm0 }
 0x63a   : > { %3293 = vst.msk [vmem:[#allocation2 + $0x9] sm:$0xff] %vm6276_vm12, %v3281_v24  ;;  %v3152_v37 = vadd.f32 %v4459_v62, %v4000_v27  ;;  %v3143_v35 = vpop.f32.mrb[93].mxu1  ;;  %v3253_v14 = vpop.f32.mrb[105].mxu0  ;;  %vm6284_vm12 = vcmask 1046528  }
 0x63b   : > { %v3144_v47 = vadd.f32 %v4000_v27, %v3143_v35  ;;  %v4460_v21 = vpop.f32.mrb[94].mxu1  ;;  %v4476_v15 = vpop.f32.mrb[106].mxu0 }
 0x63c   : > { %v3271_v23 = vld [vmem:[#allocation2 + $0x19] sm:$0xff]  ;;  %3168 = vst.msk [vmem:[#allocation2 + $0x50] sm:$0xff] %vm6196_vm0, %v3152_v37  ;;  %v3155_v51 = vadd.f32 %v4460_v21, %v4000_v27  ;;  %v3146_v2 = vpop.f32.mrb[95].mxu1  ;;  %v3256_v46 = vpop.f32.mrb[107].mxu0 }
 0x63d   : > { %v3283_v4 = vadd.f32 %v4468_v59, %v3271_v23  ;;  %v3274_v18 = vld [vmem:[#allocation2 + $0x31] sm:$0xff]  ;;  %3166 = vst.msk [vmem:[#allocation2 + $0x40] sm:$0xff] %vm6277_vm4, %v3144_v47  ;;  %v3147_v48 = vadd.f32 %v4000_v27, %v3146_v2  ;;  %vm6285_vm4 = vmmov %vm6284_vm12 }
 0x63e   : > { %v3286_v7 = vadd.f32 %v4471_v19, %v3274_v18  ;;  %v3272_v28 = vld [vmem:[#allocation2 + $0x21] sm:$0xff]  ;;  %v3273_v45 = vld [vmem:[#allocation2 + $0x29] sm:$0xff]  ;;  %3169 = vst.msk [vmem:[#allocation2 + $0x58] sm:$0xff] %vm6278_vm13, %v3155_v51  ;;  %vm6286_vm13 = vcmask 260096  }
 0x63f   : > { %3295 = vst.msk [vmem:[#allocation2 + $0x19] sm:$0xff] %vm6279_vm2, %v3283_v4  ;;  %v3284_v49 = vadd.f32 %v3272_v28, %v3237_v8  ;;  %v3285_v39 = vadd.f32 %v3273_v45, %v3240_v13  ;;  %vm6287_vm2 = vmmov %vm6285_vm4 }
 0x640   : > { %3167 = vst.msk [vmem:[#allocation2 + $0x48] sm:$0xff] %vm6280_vm11, %v3147_v48  ;;  %v3402_v16 = vld [vmem:[#allocation2] sm:$0xff]  ;;  %vm6288_vm11 = vmmov %vm6196_vm0 }
 0x641   : > { %3298 = vst.msk [vmem:[#allocation2 + $0x31] sm:$0xff] %vm6281_vm10, %v3286_v7  ;;  %v4483_v26 = vpop.f32.mrb[96].mxu1  ;;  %v3404_v0 = vld [vmem:[#allocation2 + $0x10] sm:$0xff]  ;;  %v3403_v36 = vld [vmem:[#allocation2 + $0x8] sm:$0xff]  ;;  %vm6289_vm10 = vmmov %vm6196_vm0 }
 0x642   : > { %3296 = vst.msk [vmem:[#allocation2 + $0x21] sm:$0xff] %vm6282_vm5, %v3284_v49  ;;  %v3355_v40 = vpop.f32.mrb[97].mxu1  ;;  %v3429_v34 = vrot.slane %v4483_v26, 1  ;;  %vm6290_vm5 = vmmov %vm6196_vm0 }
 0x643   : > { %3297 = vst.msk [vmem:[#allocation2 + $0x29] sm:$0xff] %vm6283_vm1, %v3285_v39  ;;  %v4484_v27 = vpop.f32.mrb[98].mxu1  ;;  %v3426_v3 = vrot.slane %v3355_v40, 1  ;;  %vm6291_vm1 = vmmov %vm6196_vm0 }
 0x644   : > { %v3275_v56 = vld [vmem:[#allocation2 + $0x39] sm:$0xff]  ;;  %v3431_v59 = vrot.slane %v4484_v27, 1  ;;  %v3358_v41 = vpop.f32.mrb[99].mxu1 }
 0x645   : > { %v3287_v20 = vadd.f32 %v4472_v30, %v3275_v56  ;;  %v3279_v22 = vld [vmem:[#allocation2 + $0x59] sm:$0x7f]  ;;  %v3427_v58 = vrot.slane %v3358_v41, 1  ;;  %v3278_v19 = vld [vmem:[#allocation2 + $0x51] sm:$0xff] }
 0x646   : > { %v3291_v61 = vadd.f32 %v4476_v15, %v3279_v22  ;;  %v3432_v60 = vsel %vm6284_vm12, %v3429_v34, %v3431_v59  ;;  %v3290_v10 = vadd.f32 %v4475_v42, %v3278_v19  ;;  %vm6292_vm12 = vmmov %vm6196_vm0  ;;  %v3405_v21 = vld [vmem:[#allocation2 + $0x18] sm:$0xff] }
 0x647   : > { %v3276_v29 = vld [vmem:[#allocation2 + $0x41] sm:$0xff]  ;;  %v3277_v8 = vld [vmem:[#allocation2 + $0x49] sm:$0xff]  ;;  %3299 = vst.msk [vmem:[#allocation2 + $0x39] sm:$0xff] %vm6196_vm0, %v3287_v20  ;;  %v3463_v33 = vadd.f32 %v3432_v60, %v3404_v0  ;;  %v3428_v30 = vsel %vm6285_vm4, %v3426_v3, %v3427_v58  ;;  %v3430_v55 = vsel %vm6287_vm2, %v3427_v58, %v3429_v34  ;;  %vm6293_vm4 = vmmov %vm6287_vm2 }
 0x648   : > { %v3288_v11 = vadd.f32 %v3276_v29, %v3253_v14  ;;  %v3289_v13 = vadd.f32 %v3277_v8, %v3256_v46  ;;  %3303 = vst.msk [vmem:[#allocation2 + $0x59] sm:$0x7f] %vm6286_vm13, %v3291_v61  ;;  %v3461_v6 = vadd.f32 %v3428_v30, %v3402_v16  ;;  %v3462_v52 = vadd.f32 %v3430_v55, %v3403_v36  ;;  %vm6294_vm13 = vmmov %vm6287_vm2 }
 0x649   : > { %3302 = vst.msk [vmem:[#allocation2 + $0x51] sm:$0xff] %vm6288_vm11, %v3290_v10  ;;  %v4487_v24 = vpop.f32.mrb[100].mxu1  ;;  %v3406_v18 = vld [vmem:[#allocation2 + $0x20] sm:$0xff]  ;;  %vm6295_vm11 = vmmov %vm6287_vm2 }
 0x64a   : > { %3300 = vst.msk [vmem:[#allocation2 + $0x41] sm:$0xff] %vm6289_vm10, %v3288_v11  ;;  %v3371_v62 = vpop.f32.mrb[101].mxu1  ;;  %v3437_v35 = vrot.slane %v4487_v24, 1  ;;  %v3408_v2 = vld [vmem:[#allocation2 + $0x30] sm:$0xff]  ;;  %v3407_v48 = vld [vmem:[#allocation2 + $0x28] sm:$0xff]  ;;  %vm6296_vm10 = vmmov %vm6196_vm0 }
 0x64b   : > { %3301 = vst.msk [vmem:[#allocation2 + $0x49] sm:$0xff] %vm6290_vm5, %v3289_v13  ;;  %v3433_v42 = vrot.slane %v3371_v62, 1  ;;  %v4488_v37 = vpop.f32.mrb[102].mxu1  ;;  %vm6297_vm5 = vmmov %vm6196_vm0 }
 0x64c   : > { %3475 = vst.msk [vmem:[#allocation2 + $0x10] sm:$0xff] %vm6291_vm1, %v3463_v33  ;;  %v3439_v14 = vrot.slane %v4488_v37, 1  ;;  %v3374_v47 = vpop.f32.mrb[103].mxu1  ;;  %vm6298_vm1 = vmmov %vm6196_vm0 }
 0x64d   : > { %3473 = vst.msk [vmem:[#allocation2] sm:$0xff] %vm6292_vm12, %v3461_v6  ;;  %v3434_v15 = vsel %vm6293_vm4, %v3431_v59, %v3433_v42  ;;  %v3435_v23 = vrot.slane %v3374_v47, 1  ;;  %vm6299_vm12 = vmmov %vm6196_vm0 }
 0x64e   : > { %3474 = vst.msk [vmem:[#allocation2 + $0x8] sm:$0xff] %vm6196_vm0, %v3462_v52  ;;  %v3464_v51 = vadd.f32 %v3434_v15, %v3405_v21  ;;  %v3440_v46 = vsel %vm6294_vm13, %v3437_v35, %v3439_v14  ;;  %v3409_v22 = vld [vmem:[#allocation2 + $0x38] sm:$0xff]  ;;  %vm6301_vm4 = vmmov %vm6287_vm2 }
 0x64f   : > { %v3467_v4 = vadd.f32 %v3440_v46, %v3408_v2  ;;  %v3436_v7 = vsel %vm6287_vm2, %v3433_v42, %v3435_v23  ;;  %v3438_v28 = vsel %vm6295_vm11, %v3435_v23, %v3437_v35  ;;  %vm6302_vm13 = vmmov %vm6287_vm2 }
 0x650   : > { %3476 = vst.msk [vmem:[#allocation2 + $0x18] sm:$0xff] %vm6296_vm10, %v3464_v51  ;;  %v3465_v49 = vadd.f32 %v3436_v7, %v3406_v18  ;;  %v3466_v39 = vadd.f32 %v3438_v28, %v3407_v48  ;;  %v3413_v58 = vld [vmem:[#allocation2 + $0x58] sm:$0x7f]  ;;  %vm6303_vm11 = vmmov %vm6196_vm0  ;;  %vm6304_vm10 = vcmask 260096  }
 0x651   : > { %3479 = vst.msk [vmem:[#allocation2 + $0x30] sm:$0xff] %vm6297_vm5, %v3467_v4  ;;  %v4491_v40 = vpop.f32.mrb[104].mxu1  ;;  %v3410_v10 = vld [vmem:[#allocation2 + $0x40] sm:$0xff]  ;;  %vm6305_vm5 = vmmov %vm6196_vm0 }
 0x652   : > { %3477 = vst.msk [vmem:[#allocation2 + $0x20] sm:$0xff] %vm6298_vm1, %v3465_v49  ;;  %v3387_v56 = vpop.f32.mrb[105].mxu1  ;;  %v3445_v41 = vrot.slane %v4491_v40, 1  ;;  %v3412_v61 = vld [vmem:[#allocation2 + $0x50] sm:$0xff]  ;;  %v3411_v11 = vld [vmem:[#allocation2 + $0x48] sm:$0xff]  ;;  %vm6307_vm1 = vmmov %vm6196_vm0 }
 0x653   : > { %v3485_v45 = vld [vmem:[#allocation2 + $0x10] sm:$0xff]  ;;  %3478 = vst.msk [vmem:[#allocation2 + $0x28] sm:$0xff] %vm6299_vm12, %v3466_v39  ;;  %v3441_v34 = vrot.slane %v3387_v56, 1  ;;  %v4492_v59 = vpop.f32.mrb[106].mxu1  ;;  %vm6308_vm12 = vmmov %vm6196_vm0 }
 0x654   : > { %v3493_v26 = vsel %vm5089_vm7, %v3485_v45, 0.0  ;;  %v3447_v54 = vrot.slane %v4492_v59, 1  ;;  %v3390_v20 = vpop.f32.mrb[107].mxu1  ;;  %vm6300_vm7 = vmmov %vm6287_vm2 }
 0x655   : > { %v3501_v27 = vadd.f32 %v3493_v26, %v5599_v1  ;;  %v3442_v3 = vsel %vm6300_vm7, %v3439_v14, %v3441_v34  ;;  %v3443_v1 = vrot.slane %v3390_v20, 1  ;;  %vm6312_vm7 = vmmov %vm6196_vm0 }
 0x656   : > { %v3468_v19 = vadd.f32 %v3442_v3, %v3409_v22  ;;  %v3448_v29 = vsel %vm6301_vm4, %v3445_v41, %v3447_v54  ;;  %v3472_v8 = vadd.f32 %v3447_v54, %v3413_v58  ;;  %vm6313_vm4 = vmmov %vm6196_vm0 }
 0x657   : > { %3509 = vst.msk [vmem:[%s5849_s21] sm:$0xff] %vm6196_vm0, %v3501_v27  ;;  %v3486_v0 = vld [vmem:[#allocation2 + $0x18] sm:$0xff]  ;;  %v3471_v60 = vadd.f32 %v3448_v29, %v3412_v61  ;;  %v3444_v13 = vsel %vm6302_vm13, %v3441_v34, %v3443_v1  ;;  %v3446_v33 = vsel %vm6287_vm2, %v3443_v1, %v3445_v41  ;;  %vm6314_vm13 = vmmov %vm6196_vm0 }
 0x658   : > { %v3494_v16 = vsel %vm5117_vm3, %v3486_v0, 0.0  ;;  %v3489_v30 = vld [vmem:[#allocation2 + $0x30] sm:$0xff]  ;;  %3480 = vst.msk [vmem:[#allocation2 + $0x38] sm:$0xff] %vm6303_vm11, %v3468_v19  ;;  %v3469_v36 = vadd.f32 %v3444_v13, %v3410_v10  ;;  %v3470_v55 = vadd.f32 %v3446_v33, %v3411_v11  ;;  %vm6306_vm3 = vmmov %vm6196_vm0 }
 0x659   : > { %3484 = vst.msk [vmem:[#allocation2 + $0x58] sm:$0x7f] %vm6304_vm10, %v3472_v8  ;;  %v3502_v6 = vadd.f32 %v3494_v16, %v5613_v38  ;;  %v3497_v52 = vsel %vm6088_vm14, %v3489_v30, 0.0  ;;  %v3487_v24 = vld [vmem:[#allocation2 + $0x20] sm:$0xff]  ;;  %vm6309_vm14 = vmmov %vm6196_vm0 }
 0x65a   : > { %v3488_v62 = vld [vmem:[#allocation2 + $0x28] sm:$0xff]  ;;  %3483 = vst.msk [vmem:[#allocation2 + $0x50] sm:$0xff] %vm6305_vm5, %v3471_v60  ;;  %v3505_v43 = vadd.f32 %v3497_v52, %v5637_v32  ;;  %v3495_v42 = vsel %vm6086_vm8, %v3487_v24, 0.0  ;;  %vm6310_vm8 = vmmov %vm6196_vm0 }
 0x65b   : > { %v3496_v37 = vsel %vm6087_vm9, %v3488_v62, 0.0  ;;  %3481 = vst.msk [vmem:[#allocation2 + $0x40] sm:$0xff] %vm6306_vm3, %v3469_v36  ;;  %v3503_v31 = vadd.f32 %v3495_v42, %v5625_v9  ;;  %vm6311_vm9 = vnez %v6026_v53 }
 0x65c   : > { %3482 = vst.msk [vmem:[#allocation2 + $0x48] sm:$0xff] %vm6307_vm1, %v3470_v55  ;;  %v3504_v38 = vadd.f32 %v3496_v37, %v5628_v57 }
 0x65d   : > { %3510 = vst.msk [vmem:[%s5849_s21 + $0x8] sm:$0xff] %vm6308_vm12, %v3502_v6 }
 0x65e   : > { %3513 = vst.msk [vmem:[%s5849_s21 + $0x20] sm:$0xff] %vm6309_vm14, %v3505_v43 }
 0x65f   : > { %3511 = vst.msk [vmem:[%s5849_s21 + $0x10] sm:$0xff] %vm6196_vm0, %v3503_v31  ;;  %v3490_v12 = vld [vmem:[#allocation2 + $0x38] sm:$0xff] }
 0x660   : > { %3512 = vst.msk [vmem:[%s5849_s21 + $0x18] sm:$0xff] %vm6310_vm8, %v3504_v38  ;;  %v3498_v17 = vsel %vm6250_vm6, %v3490_v12, 0.0 }
 0x661   : > { %v3506_v32 = vadd.f32 %v3498_v17, %v5651_v5  ;;  %3523 = sbr.rel (!%p4864_p5) target bundleno = 1689 (0x699), region = 48 }
 0x662   : > { %v3491_v35 = vld [vmem:[#allocation2 + $0x40] sm:$0xff] }
 0x663   : > { %v3492_v14 = vld [vmem:[#allocation2 + $0x48] sm:$0xff]  ;;  %v3499_v9 = vsel %vm6253_vm15, %v3491_v35, 0.0  ;;  %3514 = vst.msk [vmem:[%s5849_s21 + $0x28] sm:$0xff] %vm6312_vm7, %v3506_v32 }
 0x664   : > { %v3500_v57 = vsel %vm6311_vm9, %v3492_v14, 0.0  ;;  %v3507_v47 = vadd.f32 %v3499_v9, %v5666_v25 }
 0x665   : > { %v3508_v21 = vadd.f32 %v3500_v57, %v5669_v63 }
 0x666   : > { %3515 = vst.msk [vmem:[%s5849_s21 + $0x30] sm:$0xff] %vm6313_vm4, %v3507_v47 }
 0x667   : > { %3516 = vst.msk [vmem:[%s5849_s21 + $0x38] sm:$0xff] %vm6314_vm13, %v3508_v21 }
 0x668   : > { %s6334_s9 = smov (!%p3526_p12, %s3525_s9), 8 }
 0x669   : > { %s4035_s16 = sshll.u32 %s6334_s9, 7 }
 0x66a   : > { %p4038_p13 = scmp.eq.s32.totalorder %s4035_s16, 0 }
 0x66b   : > { %s5911_s8 = sshrl.u32 (!%p4038_p13), %s6334_s9, 3 }
 0x66c   : > { %3536 = sbr.rel (%p4038_p13) target bundleno = 1689 (0x699), region = 52  ;;  %p4039_p0 = scmp.le.s32.totalorder (!%p4038_p13), %s5911_s8, 0 }
 0x673   : > { %3739 = sbr.rel (%p4039_p0) target bundleno = 1668 (0x684), region = 151  ;;  %s6315_s24 = smov (!%p4039_p0), %s5908_s19 }
 0x674   : > { %s6316_s15 = smov (!%p4039_p0), %s5849_s21  ;;  %s5920_s20 = smov (!%p4039_p0), 0  }
 0x675   : > { %s5922_s18 = smov (!%p4039_p0), 0  }
 0x67a LB: >> { %v3612_v44 = vld [vmem:[%s4757_s15] sm:$0xff]  ;;  %v3614_v50 = vld [vmem:[%s4757_s15 + $0x8] sm:$0xff]  ;;  %v3616_v53 = vld [vmem:[%s4757_s15 + $0x10] sm:$0xff]  ;;  %s3628_s29 = sadd.s32 1, %s4761_s20  ;;  %s3606_s18 = sadd.s32 1, %s4765_s18   ;;  %s4765_s18 = sphi %s5922_s18, %s3606_s18   ;;  %s4761_s20 = sphi %s5920_s20, %s6317_s20   ;;  %s4757_s15 = sphi %s6316_s15, %s3633_s15   ;;  %s4753_s24 = sphi %s6315_s24, %s3634_s24  }
 0x67b   : >> { %3613 = vst [vmem:[%s4753_s24] sm:$0xff] %v3612_v44  ;;  %3615 = vst [vmem:[%s4753_s24 + $0x8] sm:$0xff] %v3614_v50  ;;  %v3618_v5 = vld [vmem:[%s4757_s15 + $0x18] sm:$0xff]  ;;  %v3620_v25 = vld [vmem:[%s4757_s15 + $0x20] sm:$0xff]  ;;  %p3629_p1 = scmp.ge.s32.totalorder %s3628_s29, %s5911_s8  ;;  %p3605_p2 = scmp.ge.s32.totalorder %s3606_s18, %s5911_s8 }
 0x67c   : >> { %3617 = vst [vmem:[%s4753_s24 + $0x10] sm:$0xff] %v3616_v53  ;;  %v3622_v63 = vld [vmem:[%s4757_s15 + $0x28] sm:$0xff]  ;;  %3619 = vst [vmem:[%s4753_s24 + $0x18] sm:$0xff] %v3618_v5  ;;  %v3624_v15 = vld [vmem:[%s4757_s15 + $0x30] sm:$0xff] }
 0x67d   : >> { %3621 = vst [vmem:[%s4753_s24 + $0x20] sm:$0xff] %v3620_v25  ;;  %3623 = vst [vmem:[%s4753_s24 + $0x28] sm:$0xff] %v3622_v63  ;;  %v3626_v23 = vld [vmem:[%s4757_s15 + $0x38] sm:$0xff]  ;;  %s6336_s29 = smov (%p3629_p1, %s3628_s29), 0  ;;  %3608 = sbr.rel (!%p3605_p2) target bundleno = 1658 (0x67a), region = 157 }
 0x67e   : >> { %3625 = vst [vmem:[%s4753_s24 + $0x30] sm:$0xff] %v3624_v15  ;;  %3627 = vst [vmem:[%s4753_s24 + $0x38] sm:$0xff] %v3626_v23  ;;  %s4040_s11 = sshll.u32 %s6336_s29, 6  ;;  %s6317_s20 = smov %s6336_s29 }
 0x67f   : >> { %s3633_s15 = scalar_lea.vmem %s5849_s21, %s4040_s11 [#allocation3]   ;;  %s3634_s24 = scalar_lea.vmem %s5908_s19, %s4040_s11  }
 0x684 PF: > { %s5941_s30 = sand.u32 7, %s6334_s9   ;;  %s4057_s7 = sshll.u32 %s5911_s8, 6 }
 0x685   : > { %s3639_s10 = scalar_lea.vmem %s5849_s21, %s4057_s7 [#allocation3]   ;;  %s3641_s13 = scalar_lea.vmem %s5908_s19, %s4057_s7  }
 0x686   : > { %p4045_p3 = scmp.le.s32.totalorder %s5941_s30, 0 }
 0x687   : > { %s4767_s14 = smov (!%p4045_p3), %s3641_s13   ;;  %s4771_s16 = smov (!%p4045_p3), %s3639_s10  }
 0x688   : > { %3753 = sbr.rel (%p4045_p3) target bundleno = 1689 (0x699), region = 162  ;;  %s4775_s17 = smov (!%p4045_p3), 0  }
 0x689   : > { %s4779_s23 = smov (!%p4045_p3), 0  }
 0x68f LB: >> { %v3651_v51 = vld [vmem:[%s4773_s16] sm:$0xff]  ;;  %s3653_s9 = sadd.s32 1, %s4777_s17  ;;  %s3645_s23 = sadd.s32 1, %s4781_s23   ;;  %s4781_s23 = sphi %s4779_s23, %s3645_s23   ;;  %s4777_s17 = sphi %s4775_s17, %s4776_s17   ;;  %s4773_s16 = sphi %s4771_s16, %s3658_s16   ;;  %s4769_s14 = sphi %s4767_s14, %s3659_s14  }
 0x690   : >> { %3652 = vst [vmem:[%s4769_s14] sm:$0xff] %v3651_v51  ;;  %p3654_p4 = scmp.ge.s32.totalorder %s3653_s9, %s5941_s30  ;;  %p3644_p5 = scmp.ge.s32.totalorder %s3645_s23, %s5941_s30 }
 0x692   : >> { %s6338_s9 = smov (%p3654_p4, %s3653_s9), 0  ;;  %3647 = sbr.rel (!%p3644_p5) target bundleno = 1679 (0x68f), region = 168 }
 0x693   : >> { %s4046_s21 = sshll.u32 %s6338_s9, 3  ;;  %s4776_s17 = smov %s6338_s9  }
 0x694   : >> { %s3658_s16 = scalar_lea.vmem %s3639_s10, %s4046_s21 [#allocation3]   ;;  %s3659_s14 = scalar_lea.vmem %s3641_s13, %s4046_s21  }
 0x699 PF: > { %s16_s27 = sadd.s32 1, %s4749_s27   ;;  %s6318_s19 = sld [smem:[#allocation4_spill]] }
 0x69a   : > { %p13_p6 = scmp.ge.s32.totalorder %s16_s27, 10   ;;  %s6319_s21 = smov %s4729_s22 }
 0x69b   : > { %s6320_s22 = smov %s4875_s12  ;;  %s6321_s23 = smov %s4741_s25 }
 0x69c   : > { %s6322_s24 = smov %s4745_s26  ;;  %s6323_s25 = smov %s6326_s28 }
 0x69d   :  { %15 = sbr.rel (!%p13_p6) target bundleno = 4 (0x4), region = 179 }
 0x69f   : > { %s6324_s26 = smov %s6318_s19 }

</bundles_post_ra>
